<compile_context>
chip_gen: v5e
topology: v5e:2x2
jax: 0.10.0
libtpu: 0.0.40
codegen_flags: <defaults>
</compile_context>

<pallas_src>
import functools

import numpy as np
import jax
import jax.numpy as jnp
from jax.experimental import pallas as pl
from jax.experimental.pallas import tpu as pltpu

LN_EPS = 1e-5   # PyTorch nn.LayerNorm default eps


def _round_up(x, m):
    return (x + m - 1) // m * m


def _ln(x, g, b):
    mu = jnp.mean(x, axis=-1, keepdims=True)
    var = jnp.mean(jnp.square(x - mu), axis=-1, keepdims=True)
    return (x - mu) * jax.lax.rsqrt(var + LN_EPS) * g + b


# ----------------------------------------------------------------------------
# fused slot-attention kernel (grid over batch tiles of size bt)
# ----------------------------------------------------------------------------
def _slot_attention_kernel(feat_ref, slots0_ref, vecs_ref, grub_ref,
                           wkv_ref, wqx_ref, wi_ref, wh_ref, wm1_ref, wm2_ref,
                           slots_out_ref, attn_out_ref,
                           *, num_iters, eps, bt, n_pad, s_pad, n_real, s_real,
                           feat_size, slot_size, mlp_size, gate_pad):
    F, D, H, G = feat_size, slot_size, mlp_size, gate_pad
    bf16 = jnp.bfloat16

    # --- packed LayerNorm / bias rows (f32, VPU side) -------------------------
    lnf_g, lnf_b = vecs_ref[0:1, :F], vecs_ref[1:2, :F]
    lns_g, lns_b = vecs_ref[2:3, :D], vecs_ref[3:4, :D]
    lnm_g, lnm_b = vecs_ref[4:5, :D], vecs_ref[5:6, :D]
    bm1, bm2 = vecs_ref[6:7, :H], vecs_ref[7:8, :D]
    b_ih, b_hh = grub_ref[0:1, :], grub_ref[1:2, :]          # (1, 3G) each

    # --- feature LayerNorm + fused [v | k] projection, M = bt * n_pad ---------
    f = _ln(feat_ref[...], lnf_g, lnf_b)                      # (bt*Np, F) f32
    kv = jnp.dot(f.astype(bf16), wkv_ref[...],
                 preferred_element_type=jnp.float32)          # (bt*Np, 2D)  [v | k]
    kv_bf = kv.astype(bf16)

    # masks for padded slot rows / feature columns (softmax is over the SLOT axis)
    if s_pad != s_real:
        slot_ok = jax.lax.broadcasted_iota(jnp.int32, (s_pad, n_pad), 0) < s_real
    if n_pad != n_real:
        feat_ok = jax.lax.broadcasted_iota(jnp.int32, (s_pad, n_pad), 1) < n_real

    slots = slots0_ref[...]                                   # (bt*Sp, D) f32
    for it in range(num_iters):                               # 3 fixed iterations, unrolled
        # last-iteration straight-through trick is an identity in forward values
        slots_prev = slots
        s_norm = _ln(slots, lns_g, lns_b)
        # [0 | wq*scale] -> only the k half of kv contributes to the logits
        qx = jnp.dot(s_norm.astype(bf16), wqx_ref[...],
                     preferred_element_type=jnp.float32).astype(bf16)   # (bt*Sp, 2D)

        u_parts = []
        for b in range(bt):                                   # tiny per-batch contractions
            q_b = qx[b * s_pad:(b + 1) * s_pad, :]            # (Sp, 2D)
            kv_b = kv_bf[b * n_pad:(b + 1) * n_pad, :]        # (Np, 2D)
            logits = jax.lax.dot_general(
                q_b, kv_b, (((1,), (1,)), ((), ())),
                preferred_element_type=jnp.float32)           # (Sp, Np) = scale * q @ k.T
            if s_pad != s_real:                               # pad slots out of the softmax
                logits = jnp.where(slot_ok, logits, -1e30)
            m = jnp.max(logits, axis=0, keepdims=True)        # softmax over the SLOT axis
            e = jnp.exp(logits - m)
            attn = e / jnp.sum(e, axis=0, keepdims=True)
            if n_pad != n_real:                               # pad features out of row sums
                attn = jnp.where(feat_ok, attn, 0.0)
            if it == num_iters - 1:                           # only last attn leaves VMEM
                attn_out_ref[b * s_pad:(b + 1) * s_pad, :] = attn
            attn_wm = attn / (jnp.sum(attn, axis=-1, keepdims=True) + eps)
            # offset-0 lane slice of [v | k] -> updates use only v, no dead lanes
            u_parts.append(jnp.dot(attn_wm.astype(bf16), kv_b[:, :D],
                                   preferred_element_type=jnp.float32))
        u = u_parts[0] if bt == 1 else jnp.concatenate(u_parts, axis=0)   # (bt*Sp, D)

        # --- fused GRUCell: one input-side and one hidden-side gate matmul [r|z|n]
        gi = jnp.dot(u.astype(bf16), wi_ref[...],
                     preferred_element_type=jnp.float32) + b_ih           # (bt*Sp, 3G)
        gh = jnp.dot(slots_prev.astype(bf16), wh_ref[...],
                     preferred_element_type=jnp.float32) + b_hh
        r = jax.nn.sigmoid(gi[:, 0:D] + gh[:, 0:D])
        z = jax.nn.sigmoid(gi[:, G:G + D] + gh[:, G:G + D])
        n = jnp.tanh(gi[:, 2 * G:2 * G + D] + r * gh[:, 2 * G:2 * G + D])
        h = n + z * (slots_prev - n)                          # == (1-z)*n + z*h_prev

        # --- residual MLP with norm_mlp -------------------------------------
        hm = _ln(h, lnm_g, lnm_b)
        hm = jnp.maximum(jnp.dot(hm.astype(bf16), wm1_ref[...],
                                 preferred_element_type=jnp.float32) + bm1, 0.0)
        hm = jnp.dot(hm.astype(bf16), wm2_ref[...],
                     preferred_element_type=jnp.float32) + bm2
        slots = h + hm

    slots_out_ref[...] = slots


# ----------------------------------------------------------------------------
# wrapper: packs / pads / casts weights once and launches one pallas_call
# ----------------------------------------------------------------------------
def slot_attention_forward(features, sigma, params, key, num_iters=3, eps=1e-6, bt=None):
    f32, bf16 = jnp.float32, jnp.bfloat16
    features = features.astype(f32)
    B, N, F = features.shape
    S, D = params['slots_init'].shape
    H = params['wm1'].shape[1]
    assert params['w_ir'].shape == (D, D) and params['w_hr'].shape == (D, D), \
        "GRU weights must be per-gate (in, out) blocks (torch weight_ih/hh split + transposed)"

    if bt is None:
        # keep >= 2 grid steps so v7x's two TensorCores both get work;
        # fold the remaining batch into the matmul M dimension.
        bt = B // 2 if (B % 2 == 0 and B >= 2) else 1
    assert B % bt == 0, "batch must be divisible by the per-step batch tile"
    # TODO(synk): for production N (thousands), cap bt so that
    #   bt * (Np*F + Np*2D + Sp*Np) * 4 B * 2 (double buffering) stays under the
    #   scoped-VMEM limit (v7x has only 64 MiB physical VMEM).

    Sp = _round_up(S, 8)                 # pad slots to a sublane multiple
    Np = _round_up(N, 8)                 # pad feature positions likewise
    G = _round_up(D, 128)                # per-gate lane-block width
    Wv = _round_up(max(F, D, H), 128)    # packed-vector slab width

    # slots_init = mu + z * sigma * mu.detach()   (forward value; per-batch noise)
    mu = jnp.broadcast_to(params['slots_init'][None].astype(f32), (B, S, D))
    z = jax.random.normal(key, (B, S, D), f32)
    slots0 = mu + z * sigma * mu
    if Sp != S:
        slots0 = jnp.pad(slots0, ((0, 0), (0, Sp - S), (0, 0)))
    slots0 = slots0.reshape(B * Sp, D)

    feats = features
    if Np != N:
        feats = jnp.pad(feats, ((0, 0), (0, Np - N), (0, 0)))
    feats = feats.reshape(B * Np, F)

    cast = lambda a: jnp.asarray(a, f32)
    scale = float(D) ** -0.5

    # fused, lane-dense weight slabs (built once host-side); MXU operands in bf16
    wkv = jnp.concatenate([cast(params['wv']), cast(params['wk'])], axis=1)     # (F, 2D) [v|k]
    wq_ext = jnp.concatenate([jnp.zeros((D, D), f32),
                              cast(params['wq']) * scale], axis=1)              # (D, 2D) [0|wq*s]
    pad_g = lambda w: jnp.pad(cast(w), ((0, 0), (0, G - D)))
    wi_f = jnp.concatenate([pad_g(params['w_ir']), pad_g(params['w_iz']),
                            pad_g(params['w_in'])], axis=1)                     # (D, 3G)
    wh_f = jnp.concatenate([pad_g(params['w_hr']), pad_g(params['w_hz']),
                            pad_g(params['w_hn'])], axis=1)                     # (D, 3G)

    pad_v = lambda v, w: jnp.pad(cast(v), (0, w - v.shape[0]))
    vecs = jnp.stack([pad_v(params['lnf_g'], Wv), pad_v(params['lnf_b'], Wv),
                      pad_v(params['lns_g'], Wv), pad_v(params['lns_b'], Wv),
                      pad_v(params['lnm_g'], Wv), pad_v(params['lnm_b'], Wv),
                      pad_v(params['bm1'], Wv), pad_v(params['bm2'], Wv)], axis=0)   # (8, Wv)
    pad_b = lambda v: jnp.pad(cast(v), (0, G - D))
    grub = jnp.stack([jnp.concatenate([pad_b(params['b_ir']), pad_b(params['b_iz']),
                                       pad_b(params['b_in'])]),
                      jnp.concatenate([pad_b(params['b_hr']), pad_b(params['b_hz']),
                                       pad_b(params['b_hn'])])], axis=0)              # (2, 3G)

    kernel = functools.partial(
        _slot_attention_kernel, num_iters=num_iters, eps=eps, bt=bt,
        n_pad=Np, s_pad=Sp, n_real=N, s_real=S,
        feat_size=F, slot_size=D, mlp_size=H, gate_pad=G)

    grid = (B // bt,)
    in_specs = [
        pl.BlockSpec((bt * Np, F), lambda i: (i, 0)),        # features (padded, flattened)
        pl.BlockSpec((bt * Sp, D), lambda i: (i, 0)),        # slots_init
        pl.BlockSpec((8, Wv), lambda i: (0, 0)),             # packed LN / bias rows (f32)
        pl.BlockSpec((2, 3 * G), lambda i: (0, 0)),          # packed GRU biases (f32)
        pl.BlockSpec((F, 2 * D), lambda i: (0, 0)),          # wkv  [v | k]       (bf16)
        pl.BlockSpec((D, 2 * D), lambda i: (0, 0)),          # wq_ext [0 | wq*s]  (bf16)
        pl.BlockSpec((D, 3 * G), lambda i: (0, 0)),          # fused GRU input gates (bf16)
        pl.BlockSpec((D, 3 * G), lambda i: (0, 0)),          # fused GRU hidden gates (bf16)
        pl.BlockSpec((D, H), lambda i: (0, 0)),              # wm1 (bf16)
        pl.BlockSpec((H, D), lambda i: (0, 0)),              # wm2 (bf16)
    ]
    out_specs = (pl.BlockSpec((bt * Sp, D), lambda i: (i, 0)),
                 pl.BlockSpec((bt * Sp, Np), lambda i: (i, 0)))
    # TODO(synk): on v5e with production N not a multiple of 128, emit attn as a
    #   lane-dense flattened slab instead of masked (.., N) stores.

    # advisory cost estimate so XLA schedules the RNG / weight packing around the call
    gemm_flops = (2 * B * N * F * 2 * D
                  + num_iters * B * (2 * S * D * 2 * D + 2 * S * N * 2 * D
                                     + 2 * S * N * D + 2 * 2 * S * D * 3 * G
                                     + 4 * S * D * H))
    weight_bytes = (2 * (F * 2 * D + D * 2 * D + 2 * D * 3 * G + 2 * D * H)
                    + 4 * (8 * Wv + 2 * 3 * G)) * (B // bt)
    cost = pl.CostEstimate(
        flops=int(gemm_flops),
        transcendentals=int(num_iters * B * (S * N + 5 * S * D)),
        bytes_accessed=int(4 * (B * Np * F + 2 * B * Sp * D + B * Sp * Np) + weight_bytes))

    slots_out, attn_out = pl.pallas_call(
        kernel,
        out_shape=(jax.ShapeDtypeStruct((B * Sp, D), f32),
                   jax.ShapeDtypeStruct((B * Sp, Np), f32)),
        grid=grid,
        in_specs=in_specs,
        out_specs=out_specs,
        compiler_params=pltpu.CompilerParams(
            dimension_semantics=("parallel",),
            vmem_limit_bytes=48 * 1024 * 1024),
        cost_estimate=cost,
    )(feats, slots0, vecs, grub,
      wkv.astype(bf16), wq_ext.astype(bf16), wi_f.astype(bf16), wh_f.astype(bf16),
      cast(params['wm1']).astype(bf16), cast(params['wm2']).astype(bf16))

    slots_out = slots_out.reshape(B, Sp, D)[:, :S, :]
    attn_out = attn_out.reshape(B, Sp, Np)[:, :S, :N]
    return slots_out, attn_out


# ----------------------------------------------------------------------------
# pure-JAX f32 reference (mirrors the PyTorch forward) for correctness checking
# ----------------------------------------------------------------------------
def slot_attention_reference(features, sigma, params, key, num_iters=3, eps=1e-6):
    features = features.astype(jnp.float32)
    B, N, F = features.shape
    S, D = params['slots_init'].shape
    mu = jnp.broadcast_to(params['slots_init'][None], (B, S, D))
    z = jax.random.normal(key, (B, S, D), jnp.float32)
    slots = mu + z * sigma * mu
    feats = _ln(features, params['lnf_g'], params['lnf_b'])
    k = feats @ params['wk']
    v = feats @ params['wv']
    scale = float(D) ** -0.5
    attn = None
    for _ in range(num_iters):
        slots_prev = slots
        s = _ln(slots, params['lns_g'], params['lns_b'])
        q = s @ params['wq']
        logits = jnp.einsum('bid,bjd->bij', q, k) * scale
        attn = jax.nn.softmax(logits, axis=1)
        attn_wm = attn / (jnp.sum(attn, axis=-1, keepdims=True) + eps)
        updates = jnp.einsum('bij,bjd->bid', attn_wm, v)
        x = updates.reshape(-1, D)
        h = slots_prev.reshape(-1, D)
        r = jax.nn.sigmoid(x @ params['w_ir'] + params['b_ir'] + h @ params['w_hr'] + params['b_hr'])
        zg = jax.nn.sigmoid(x @ params['w_iz'] + params['b_iz'] + h @ params['w_hz'] + params['b_hz'])
        n = jnp.tanh(x @ params['w_in'] + params['b_in'] + r * (h @ params['w_hn'] + params['b_hn']))
        slots = ((1.0 - zg) * n + zg * h).reshape(B, S, D)
        hm = _ln(slots, params['lnm_g'], params['lnm_b'])
        hm = jnp.maximum(hm @ params['wm1'] + params['bm1'], 0.0)
        hm = hm @ params['wm2'] + params['bm2']
        slots = slots + hm
    return slots, attn


# ----------------------------------------------------------------------------
# deterministic parameter init
#   GRU weights are the torch weight_ih / weight_hh [r; z; n] row blocks,
#   transposed to (in, out); biases are zero per the reference init (kept as
#   explicit params so real checkpoints with nonzero biases load correctly).
# ----------------------------------------------------------------------------
def init_params(key, feat_size=64, slot_size=64, mlp_size=128, num_slots=11):
    D, F, H, S = slot_size, feat_size, mlp_size, num_slots
    ks = iter(jax.random.split(key, 24))

    def w(shape):
        return jax.random.normal(next(ks), shape, jnp.float32) / np.sqrt(shape[0])

    zeros = lambda n: jnp.zeros((n,), jnp.float32)
    ones = lambda n: jnp.ones((n,), jnp.float32)
    # TODO(synk): init distributions approximate the torch xavier/orthogonal/kaiming inits.
    return {
        'slots_init': w((S, D)),
        'lnf_g': ones(F), 'lnf_b': zeros(F),
        'wk': w((F, D)), 'wv': w((F, D)),
        'lns_g': ones(D), 'lns_b': zeros(D),
        'wq': w((D, D)),
        'w_ir': w((D, D)), 'w_iz': w((D, D)), 'w_in': w((D, D)),
        'w_hr': w((D, D)), 'w_hz': w((D, D)), 'w_hn': w((D, D)),
        'b_ir': zeros(D), 'b_iz': zeros(D), 'b_in': zeros(D),
        'b_hr': zeros(D), 'b_hz': zeros(D), 'b_hn': zeros(D),
        'lnm_g': ones(D), 'lnm_b': zeros(D),
        'wm1': w((D, H)), 'bm1': zeros(H),
        'wm2': w((H, D)), 'bm2': zeros(D),
    }


if __name__ == "__main__":
    B, N, FEAT, SLOT, MLP, S = 4, 16, 64, 64, 128, 11
    key = jax.random.PRNGKey(0)
    k_feat, k_par, k_noise = jax.random.split(key, 3)
    features = jax.random.normal(k_feat, (B, N, FEAT), jnp.float32)
    params = init_params(k_par, FEAT, SLOT, MLP, S)
    sigma = 0.1

    fwd = jax.jit(slot_attention_forward)
    slots, attn = fwd(features, sigma, params, k_noise)
    jax.block_until_ready((slots, attn))

    slots_ref, attn_ref = slot_attention_reference(features, sigma, params, k_noise)

    assert slots.shape == (B, S, SLOT) and attn.shape == (B, S, N)
    assert bool(jnp.all(jnp.isfinite(slots))) and bool(jnp.all(jnp.isfinite(attn)))
    # bf16 MXU operands (f32 accumulation / element-wise math) => slightly looser
    # tolerances than a pure-f32 comparison.
    assert bool(jnp.allclose(attn, attn_ref, atol=2e-2, rtol=2e-2)), \
        float(jnp.max(jnp.abs(attn - attn_ref)))
    assert bool(jnp.allclose(slots, slots_ref, atol=5e-2, rtol=5e-2)), \
        float(jnp.max(jnp.abs(slots - slots_ref)))
    print("KERNEL_OK")
</pallas_src>

<mosaic_0001>
module attributes {stable_mosaic.version = 11 : i64} {
  func.func @_slot_attention_kernel(%arg0: i32, %arg1: memref<32x64xf32, #tpu.memory_space<vmem>>, %arg2: memref<32x64xf32, #tpu.memory_space<vmem>>, %arg3: memref<8x128xf32, #tpu.memory_space<vmem>>, %arg4: memref<2x384xf32, #tpu.memory_space<vmem>>, %arg5: memref<64x128xbf16, #tpu.memory_space<vmem>>, %arg6: memref<64x128xbf16, #tpu.memory_space<vmem>>, %arg7: memref<64x384xbf16, #tpu.memory_space<vmem>>, %arg8: memref<64x384xbf16, #tpu.memory_space<vmem>>, %arg9: memref<64x128xbf16, #tpu.memory_space<vmem>>, %arg10: memref<128x64xbf16, #tpu.memory_space<vmem>>, %arg11: memref<32x64xf32, #tpu.memory_space<vmem>>, %arg12: memref<32x16xf32, #tpu.memory_space<vmem>>) attributes {dimension_semantics = [#tpu.dimension_semantics<parallel>], iteration_bounds = array<i64: 2>, scalar_prefetch = 0 : i64, scratch_operands = 0 : i64, tpu.core_type = #tpu.core_type<tc>, window_params = [{transform_indices = @transform_0, window_bounds = array<i64: 32, 64>}, {transform_indices = @transform_1, window_bounds = array<i64: 32, 64>}, {pipeline_mode = #tpu.pipeline_mode<synchronous>, transform_indices = @transform_2, window_bounds = array<i64: 8, 128>}, {pipeline_mode = #tpu.pipeline_mode<synchronous>, transform_indices = @transform_3, window_bounds = array<i64: 2, 384>}, {pipeline_mode = #tpu.pipeline_mode<synchronous>, transform_indices = @transform_4, window_bounds = array<i64: 64, 128>}, {pipeline_mode = #tpu.pipeline_mode<synchronous>, transform_indices = @transform_5, window_bounds = array<i64: 64, 128>}, {pipeline_mode = #tpu.pipeline_mode<synchronous>, transform_indices = @transform_6, window_bounds = array<i64: 64, 384>}, {pipeline_mode = #tpu.pipeline_mode<synchronous>, transform_indices = @transform_7, window_bounds = array<i64: 64, 384>}, {pipeline_mode = #tpu.pipeline_mode<synchronous>, transform_indices = @transform_8, window_bounds = array<i64: 64, 128>}, {pipeline_mode = #tpu.pipeline_mode<synchronous>, transform_indices = @transform_9, window_bounds = array<i64: 128, 64>}, {transform_indices = @transform_10, window_bounds = array<i64: 32, 64>}, {transform_indices = @transform_11, window_bounds = array<i64: 32, 16>}]} {
    %c0 = arith.constant 0 : index
    %c0_0 = arith.constant 0 : index
    %0 = vector.load %arg3[%c0, %c0_0] : memref<8x128xf32, #tpu.memory_space<vmem>>, vector<1x64xf32>
    %c1 = arith.constant 1 : index
    %c0_1 = arith.constant 0 : index
    %1 = vector.load %arg3[%c1, %c0_1] : memref<8x128xf32, #tpu.memory_space<vmem>>, vector<1x64xf32>
    %c2 = arith.constant 2 : index
    %c0_2 = arith.constant 0 : index
    %2 = vector.load %arg3[%c2, %c0_2] : memref<8x128xf32, #tpu.memory_space<vmem>>, vector<1x64xf32>
    %c3 = arith.constant 3 : index
    %c0_3 = arith.constant 0 : index
    %3 = vector.load %arg3[%c3, %c0_3] : memref<8x128xf32, #tpu.memory_space<vmem>>, vector<1x64xf32>
    %c4 = arith.constant 4 : index
    %c0_4 = arith.constant 0 : index
    %4 = vector.load %arg3[%c4, %c0_4] : memref<8x128xf32, #tpu.memory_space<vmem>>, vector<1x64xf32>
    %c5 = arith.constant 5 : index
    %c0_5 = arith.constant 0 : index
    %5 = vector.load %arg3[%c5, %c0_5] : memref<8x128xf32, #tpu.memory_space<vmem>>, vector<1x64xf32>
    %c6 = arith.constant 6 : index
    %c0_6 = arith.constant 0 : index
    %6 = vector.load %arg3[%c6, %c0_6] : memref<8x128xf32, #tpu.memory_space<vmem>>, vector<1x128xf32>
    %c7 = arith.constant 7 : index
    %c0_7 = arith.constant 0 : index
    %7 = vector.load %arg3[%c7, %c0_7] : memref<8x128xf32, #tpu.memory_space<vmem>>, vector<1x64xf32>
    %c0_8 = arith.constant 0 : index
    %c0_9 = arith.constant 0 : index
    %8 = vector.load %arg4[%c0_8, %c0_9] : memref<2x384xf32, #tpu.memory_space<vmem>>, vector<1x384xf32>
    %c1_10 = arith.constant 1 : index
    %c0_11 = arith.constant 0 : index
    %9 = vector.load %arg4[%c1_10, %c0_11] : memref<2x384xf32, #tpu.memory_space<vmem>>, vector<1x384xf32>
    %c0_12 = arith.constant 0 : index
    %c0_13 = arith.constant 0 : index
    %10 = vector.load %arg1[%c0_12, %c0_13] : memref<32x64xf32, #tpu.memory_space<vmem>>, vector<32x64xf32>
    %cst = arith.constant dense<0.000000e+00> : vector<32xf32>
    %11 = vector.multi_reduction <add>, %10, %cst [1] : vector<32x64xf32> to vector<32xf32>
    %12 = vector.shape_cast %11 : vector<32xf32> to vector<32x1xf32>
    %cst_14 = arith.constant 6.400000e+01 : f32
    %13 = vector.broadcast %cst_14 : f32 to vector<32x1xf32>
    %14 = arith.divf %12, %13 : vector<32x1xf32>
    %15 = vector.broadcast %14 : vector<32x1xf32> to vector<32x64xf32>
    %16 = arith.subf %10, %15 : vector<32x64xf32>
    %17 = arith.mulf %16, %16 : vector<32x64xf32>
    %cst_15 = arith.constant dense<0.000000e+00> : vector<32xf32>
    %18 = vector.multi_reduction <add>, %17, %cst_15 [1] : vector<32x64xf32> to vector<32xf32>
    %19 = vector.shape_cast %18 : vector<32xf32> to vector<32x1xf32>
    %cst_16 = arith.constant 6.400000e+01 : f32
    %20 = vector.broadcast %cst_16 : f32 to vector<32x1xf32>
    %21 = arith.divf %19, %20 : vector<32x1xf32>
    %22 = vector.broadcast %14 : vector<32x1xf32> to vector<32x64xf32>
    %23 = arith.subf %10, %22 : vector<32x64xf32>
    %cst_17 = arith.constant 9.99999974E-6 : f32
    %24 = vector.broadcast %cst_17 : f32 to vector<32x1xf32>
    %25 = arith.addf %21, %24 : vector<32x1xf32>
    %26 = math.rsqrt %25 : vector<32x1xf32>
    %27 = vector.broadcast %26 : vector<32x1xf32> to vector<32x64xf32>
    %28 = arith.mulf %23, %27 : vector<32x64xf32>
    %29 = vector.broadcast %0 : vector<1x64xf32> to vector<32x64xf32>
    %30 = arith.mulf %28, %29 : vector<32x64xf32>
    %31 = vector.broadcast %1 : vector<1x64xf32> to vector<32x64xf32>
    %32 = arith.addf %30, %31 : vector<32x64xf32>
    %33 = arith.truncf %32 : vector<32x64xf32> to vector<32x64xbf16>
    %c0_18 = arith.constant 0 : index
    %c0_19 = arith.constant 0 : index
    %34 = vector.load %arg5[%c0_18, %c0_19] : memref<64x128xbf16, #tpu.memory_space<vmem>>, vector<64x128xbf16>
    %cst_20 = arith.constant dense<0.000000e+00> : vector<32x128xf32>
    %35 = tpu.matmul %33, %34, %cst_20 {dimension_numbers = #tpu.dot_dimension_numbers<[1], [0], [0], [1], [0, 0, 1, 1], [], []>} : vector<32x64xbf16>, vector<64x128xbf16>, vector<32x128xf32> -> vector<32x128xf32>
    %36 = arith.truncf %35 : vector<32x128xf32> to vector<32x128xbf16>
    %37 = tpu.iota {dimensions = array<i32: 0>} : vector<16x16xi32>
    %c11_i32 = arith.constant 11 : i32
    %38 = vector.broadcast %c11_i32 : i32 to vector<16x16xi32>
    %39 = arith.cmpi slt, %37, %38 : vector<16x16xi32>
    %c0_21 = arith.constant 0 : index
    %c0_22 = arith.constant 0 : index
    %40 = vector.load %arg2[%c0_21, %c0_22] : memref<32x64xf32, #tpu.memory_space<vmem>>, vector<32x64xf32>
    %cst_23 = arith.constant dense<0.000000e+00> : vector<32xf32>
    %41 = vector.multi_reduction <add>, %40, %cst_23 [1] : vector<32x64xf32> to vector<32xf32>
    %42 = vector.shape_cast %41 : vector<32xf32> to vector<32x1xf32>
    %cst_24 = arith.constant 6.400000e+01 : f32
    %43 = vector.broadcast %cst_24 : f32 to vector<32x1xf32>
    %44 = arith.divf %42, %43 : vector<32x1xf32>
    %45 = vector.broadcast %44 : vector<32x1xf32> to vector<32x64xf32>
    %46 = arith.subf %40, %45 : vector<32x64xf32>
    %47 = arith.mulf %46, %46 : vector<32x64xf32>
    %cst_25 = arith.constant dense<0.000000e+00> : vector<32xf32>
    %48 = vector.multi_reduction <add>, %47, %cst_25 [1] : vector<32x64xf32> to vector<32xf32>
    %49 = vector.shape_cast %48 : vector<32xf32> to vector<32x1xf32>
    %cst_26 = arith.constant 6.400000e+01 : f32
    %50 = vector.broadcast %cst_26 : f32 to vector<32x1xf32>
    %51 = arith.divf %49, %50 : vector<32x1xf32>
    %52 = vector.broadcast %44 : vector<32x1xf32> to vector<32x64xf32>
    %53 = arith.subf %40, %52 : vector<32x64xf32>
    %cst_27 = arith.constant 9.99999974E-6 : f32
    %54 = vector.broadcast %cst_27 : f32 to vector<32x1xf32>
    %55 = arith.addf %51, %54 : vector<32x1xf32>
    %56 = math.rsqrt %55 : vector<32x1xf32>
    %57 = vector.broadcast %56 : vector<32x1xf32> to vector<32x64xf32>
    %58 = arith.mulf %53, %57 : vector<32x64xf32>
    %59 = vector.broadcast %2 : vector<1x64xf32> to vector<32x64xf32>
    %60 = arith.mulf %58, %59 : vector<32x64xf32>
    %61 = vector.broadcast %3 : vector<1x64xf32> to vector<32x64xf32>
    %62 = arith.addf %60, %61 : vector<32x64xf32>
    %63 = arith.truncf %62 : vector<32x64xf32> to vector<32x64xbf16>
    %c0_28 = arith.constant 0 : index
    %c0_29 = arith.constant 0 : index
    %64 = vector.load %arg6[%c0_28, %c0_29] : memref<64x128xbf16, #tpu.memory_space<vmem>>, vector<64x128xbf16>
    %cst_30 = arith.constant dense<0.000000e+00> : vector<32x128xf32>
    %65 = tpu.matmul %63, %64, %cst_30 {dimension_numbers = #tpu.dot_dimension_numbers<[1], [0], [0], [1], [0, 0, 1, 1], [], []>} : vector<32x64xbf16>, vector<64x128xbf16>, vector<32x128xf32> -> vector<32x128xf32>
    %66 = arith.truncf %65 : vector<32x128xf32> to vector<32x128xbf16>
    %67 = vector.extract_strided_slice %66 {offsets = [0, 0], sizes = [16, 128], strides = [1, 1]} : vector<32x128xbf16> to vector<16x128xbf16>
    %68 = vector.extract_strided_slice %36 {offsets = [0, 0], sizes = [16, 128], strides = [1, 1]} : vector<32x128xbf16> to vector<16x128xbf16>
    %cst_31 = arith.constant dense<0.000000e+00> : vector<16x16xf32>
    %69 = tpu.matmul %67, %68, %cst_31 {dimension_numbers = #tpu.dot_dimension_numbers<[1], [1], [0], [0], [0, 0, 1, 0], [], []>} : vector<16x128xbf16>, vector<16x128xbf16>, vector<16x16xf32> -> vector<16x16xf32>
    %cst_32 = arith.constant -1.000000e+30 : f32
    %70 = vector.broadcast %cst_32 : f32 to vector<16x16xf32>
    %71 = arith.select %39, %69, %70 : vector<16x16xi1>, vector<16x16xf32>
    %cst_33 = arith.constant dense<0xFF800000> : vector<16xf32>
    %72 = vector.multi_reduction <maximumf>, %71, %cst_33 [0] : vector<16x16xf32> to vector<16xf32>
    %73 = vector.shape_cast %72 : vector<16xf32> to vector<1x16xf32>
    %74 = vector.broadcast %73 : vector<1x16xf32> to vector<16x16xf32>
    %75 = arith.subf %71, %74 : vector<16x16xf32>
    %76 = math.exp %75 : vector<16x16xf32>
    %cst_34 = arith.constant dense<0.000000e+00> : vector<16xf32>
    %77 = vector.multi_reduction <add>, %76, %cst_34 [0] : vector<16x16xf32> to vector<16xf32>
    %78 = vector.shape_cast %77 : vector<16xf32> to vector<1x16xf32>
    %79 = vector.broadcast %78 : vector<1x16xf32> to vector<16x16xf32>
    %80 = arith.divf %76, %79 : vector<16x16xf32>
    %cst_35 = arith.constant dense<0.000000e+00> : vector<16xf32>
    %81 = vector.multi_reduction <add>, %80, %cst_35 [1] : vector<16x16xf32> to vector<16xf32>
    %82 = vector.shape_cast %81 : vector<16xf32> to vector<16x1xf32>
    %cst_36 = arith.constant 9.99999997E-7 : f32
    %83 = vector.broadcast %cst_36 : f32 to vector<16x1xf32>
    %84 = arith.addf %82, %83 : vector<16x1xf32>
    %85 = vector.broadcast %84 : vector<16x1xf32> to vector<16x16xf32>
    %86 = arith.divf %80, %85 : vector<16x16xf32>
    %87 = arith.truncf %86 : vector<16x16xf32> to vector<16x16xbf16>
    %88 = vector.extract_strided_slice %68 {offsets = [0, 0], sizes = [16, 64], strides = [1, 1]} : vector<16x128xbf16> to vector<16x64xbf16>
    %cst_37 = arith.constant dense<0.000000e+00> : vector<16x64xf32>
    %89 = tpu.matmul %87, %88, %cst_37 {dimension_numbers = #tpu.dot_dimension_numbers<[1], [0], [0], [1], [0, 0, 1, 1], [], []>} : vector<16x16xbf16>, vector<16x64xbf16>, vector<16x64xf32> -> vector<16x64xf32>
    %90 = vector.extract_strided_slice %66 {offsets = [16, 0], sizes = [16, 128], strides = [1, 1]} : vector<32x128xbf16> to vector<16x128xbf16>
    %91 = vector.extract_strided_slice %36 {offsets = [16, 0], sizes = [16, 128], strides = [1, 1]} : vector<32x128xbf16> to vector<16x128xbf16>
    %cst_38 = arith.constant dense<0.000000e+00> : vector<16x16xf32>
    %92 = tpu.matmul %90, %91, %cst_38 {dimension_numbers = #tpu.dot_dimension_numbers<[1], [1], [0], [0], [0, 0, 1, 0], [], []>} : vector<16x128xbf16>, vector<16x128xbf16>, vector<16x16xf32> -> vector<16x16xf32>
    %cst_39 = arith.constant -1.000000e+30 : f32
    %93 = vector.broadcast %cst_39 : f32 to vector<16x16xf32>
    %94 = arith.select %39, %92, %93 : vector<16x16xi1>, vector<16x16xf32>
    %cst_40 = arith.constant dense<0xFF800000> : vector<16xf32>
    %95 = vector.multi_reduction <maximumf>, %94, %cst_40 [0] : vector<16x16xf32> to vector<16xf32>
    %96 = vector.shape_cast %95 : vector<16xf32> to vector<1x16xf32>
    %97 = vector.broadcast %96 : vector<1x16xf32> to vector<16x16xf32>
    %98 = arith.subf %94, %97 : vector<16x16xf32>
    %99 = math.exp %98 : vector<16x16xf32>
    %cst_41 = arith.constant dense<0.000000e+00> : vector<16xf32>
    %100 = vector.multi_reduction <add>, %99, %cst_41 [0] : vector<16x16xf32> to vector<16xf32>
    %101 = vector.shape_cast %100 : vector<16xf32> to vector<1x16xf32>
    %102 = vector.broadcast %101 : vector<1x16xf32> to vector<16x16xf32>
    %103 = arith.divf %99, %102 : vector<16x16xf32>
    %cst_42 = arith.constant dense<0.000000e+00> : vector<16xf32>
    %104 = vector.multi_reduction <add>, %103, %cst_42 [1] : vector<16x16xf32> to vector<16xf32>
    %105 = vector.shape_cast %104 : vector<16xf32> to vector<16x1xf32>
    %cst_43 = arith.constant 9.99999997E-7 : f32
    %106 = vector.broadcast %cst_43 : f32 to vector<16x1xf32>
    %107 = arith.addf %105, %106 : vector<16x1xf32>
    %108 = vector.broadcast %107 : vector<16x1xf32> to vector<16x16xf32>
    %109 = arith.divf %103, %108 : vector<16x16xf32>
    %110 = arith.truncf %109 : vector<16x16xf32> to vector<16x16xbf16>
    %111 = vector.extract_strided_slice %91 {offsets = [0, 0], sizes = [16, 64], strides = [1, 1]} : vector<16x128xbf16> to vector<16x64xbf16>
    %cst_44 = arith.constant dense<0.000000e+00> : vector<16x64xf32>
    %112 = tpu.matmul %110, %111, %cst_44 {dimension_numbers = #tpu.dot_dimension_numbers<[1], [0], [0], [1], [0, 0, 1, 1], [], []>} : vector<16x16xbf16>, vector<16x64xbf16>, vector<16x64xf32> -> vector<16x64xf32>
    %113 = tpu.concatenate %89, %112 in 0 : vector<16x64xf32>, vector<16x64xf32> -> vector<32x64xf32>
    %114 = arith.truncf %113 : vector<32x64xf32> to vector<32x64xbf16>
    %c0_45 = arith.constant 0 : index
    %c0_46 = arith.constant 0 : index
    %115 = vector.load %arg7[%c0_45, %c0_46] : memref<64x384xbf16, #tpu.memory_space<vmem>>, vector<64x384xbf16>
    %cst_47 = arith.constant dense<0.000000e+00> : vector<32x384xf32>
    %116 = tpu.matmul %114, %115, %cst_47 {dimension_numbers = #tpu.dot_dimension_numbers<[1], [0], [0], [1], [0, 0, 1, 1], [], []>} : vector<32x64xbf16>, vector<64x384xbf16>, vector<32x384xf32> -> vector<32x384xf32>
    %117 = vector.broadcast %8 : vector<1x384xf32> to vector<32x384xf32>
    %118 = arith.addf %116, %117 : vector<32x384xf32>
    %119 = arith.truncf %40 : vector<32x64xf32> to vector<32x64xbf16>
    %c0_48 = arith.constant 0 : index
    %c0_49 = arith.constant 0 : index
    %120 = vector.load %arg8[%c0_48, %c0_49] : memref<64x384xbf16, #tpu.memory_space<vmem>>, vector<64x384xbf16>
    %cst_50 = arith.constant dense<0.000000e+00> : vector<32x384xf32>
    %121 = tpu.matmul %119, %120, %cst_50 {dimension_numbers = #tpu.dot_dimension_numbers<[1], [0], [0], [1], [0, 0, 1, 1], [], []>} : vector<32x64xbf16>, vector<64x384xbf16>, vector<32x384xf32> -> vector<32x384xf32>
    %122 = vector.broadcast %9 : vector<1x384xf32> to vector<32x384xf32>
    %123 = arith.addf %121, %122 : vector<32x384xf32>
    %124 = vector.extract_strided_slice %118 {offsets = [0, 0], sizes = [32, 64], strides = [1, 1]} : vector<32x384xf32> to vector<32x64xf32>
    %125 = vector.extract_strided_slice %123 {offsets = [0, 0], sizes = [32, 64], strides = [1, 1]} : vector<32x384xf32> to vector<32x64xf32>
    %126 = arith.addf %124, %125 : vector<32x64xf32>
    %127 = arith.negf %126 : vector<32x64xf32>
    %128 = math.exp %127 : vector<32x64xf32>
    %cst_51 = arith.constant 1.000000e+00 : f32
    %129 = vector.broadcast %cst_51 : f32 to vector<32x64xf32>
    %130 = arith.addf %129, %128 : vector<32x64xf32>
    %131 = arith.divf %129, %130 : vector<32x64xf32>
    %132 = vector.extract_strided_slice %118 {offsets = [0, 128], sizes = [32, 64], strides = [1, 1]} : vector<32x384xf32> to vector<32x64xf32>
    %133 = vector.extract_strided_slice %123 {offsets = [0, 128], sizes = [32, 64], strides = [1, 1]} : vector<32x384xf32> to vector<32x64xf32>
    %134 = arith.addf %132, %133 : vector<32x64xf32>
    %135 = arith.negf %134 : vector<32x64xf32>
    %136 = math.exp %135 : vector<32x64xf32>
    %cst_52 = arith.constant 1.000000e+00 : f32
    %137 = vector.broadcast %cst_52 : f32 to vector<32x64xf32>
    %138 = arith.addf %137, %136 : vector<32x64xf32>
    %139 = arith.divf %137, %138 : vector<32x64xf32>
    %140 = vector.extract_strided_slice %118 {offsets = [0, 256], sizes = [32, 64], strides = [1, 1]} : vector<32x384xf32> to vector<32x64xf32>
    %141 = vector.extract_strided_slice %123 {offsets = [0, 256], sizes = [32, 64], strides = [1, 1]} : vector<32x384xf32> to vector<32x64xf32>
    %142 = arith.mulf %131, %141 : vector<32x64xf32>
    %143 = arith.addf %140, %142 : vector<32x64xf32>
    %144 = math.tanh %143 : vector<32x64xf32>
    %145 = arith.subf %40, %144 : vector<32x64xf32>
    %146 = arith.mulf %139, %145 : vector<32x64xf32>
    %147 = arith.addf %144, %146 : vector<32x64xf32>
    %cst_53 = arith.constant dense<0.000000e+00> : vector<32xf32>
    %148 = vector.multi_reduction <add>, %147, %cst_53 [1] : vector<32x64xf32> to vector<32xf32>
    %149 = vector.shape_cast %148 : vector<32xf32> to vector<32x1xf32>
    %cst_54 = arith.constant 6.400000e+01 : f32
    %150 = vector.broadcast %cst_54 : f32 to vector<32x1xf32>
    %151 = arith.divf %149, %150 : vector<32x1xf32>
    %152 = vector.broadcast %151 : vector<32x1xf32> to vector<32x64xf32>
    %153 = arith.subf %147, %152 : vector<32x64xf32>
    %154 = arith.mulf %153, %153 : vector<32x64xf32>
    %cst_55 = arith.constant dense<0.000000e+00> : vector<32xf32>
    %155 = vector.multi_reduction <add>, %154, %cst_55 [1] : vector<32x64xf32> to vector<32xf32>
    %156 = vector.shape_cast %155 : vector<32xf32> to vector<32x1xf32>
    %cst_56 = arith.constant 6.400000e+01 : f32
    %157 = vector.broadcast %cst_56 : f32 to vector<32x1xf32>
    %158 = arith.divf %156, %157 : vector<32x1xf32>
    %159 = vector.broadcast %151 : vector<32x1xf32> to vector<32x64xf32>
    %160 = arith.subf %147, %159 : vector<32x64xf32>
    %cst_57 = arith.constant 9.99999974E-6 : f32
    %161 = vector.broadcast %cst_57 : f32 to vector<32x1xf32>
    %162 = arith.addf %158, %161 : vector<32x1xf32>
    %163 = math.rsqrt %162 : vector<32x1xf32>
    %164 = vector.broadcast %163 : vector<32x1xf32> to vector<32x64xf32>
    %165 = arith.mulf %160, %164 : vector<32x64xf32>
    %166 = vector.broadcast %4 : vector<1x64xf32> to vector<32x64xf32>
    %167 = arith.mulf %165, %166 : vector<32x64xf32>
    %168 = vector.broadcast %5 : vector<1x64xf32> to vector<32x64xf32>
    %169 = arith.addf %167, %168 : vector<32x64xf32>
    %170 = arith.truncf %169 : vector<32x64xf32> to vector<32x64xbf16>
    %c0_58 = arith.constant 0 : index
    %c0_59 = arith.constant 0 : index
    %171 = vector.load %arg9[%c0_58, %c0_59] : memref<64x128xbf16, #tpu.memory_space<vmem>>, vector<64x128xbf16>
    %cst_60 = arith.constant dense<0.000000e+00> : vector<32x128xf32>
    %172 = tpu.matmul %170, %171, %cst_60 {dimension_numbers = #tpu.dot_dimension_numbers<[1], [0], [0], [1], [0, 0, 1, 1], [], []>} : vector<32x64xbf16>, vector<64x128xbf16>, vector<32x128xf32> -> vector<32x128xf32>
    %173 = vector.broadcast %6 : vector<1x128xf32> to vector<32x128xf32>
    %174 = arith.addf %172, %173 : vector<32x128xf32>
    %cst_61 = arith.constant 0.000000e+00 : f32
    %175 = vector.broadcast %cst_61 : f32 to vector<32x128xf32>
    %176 = arith.maximumf %174, %175 : vector<32x128xf32>
    %177 = arith.truncf %176 : vector<32x128xf32> to vector<32x128xbf16>
    %c0_62 = arith.constant 0 : index
    %c0_63 = arith.constant 0 : index
    %178 = vector.load %arg10[%c0_62, %c0_63] : memref<128x64xbf16, #tpu.memory_space<vmem>>, vector<128x64xbf16>
    %cst_64 = arith.constant dense<0.000000e+00> : vector<32x64xf32>
    %179 = tpu.matmul %177, %178, %cst_64 {dimension_numbers = #tpu.dot_dimension_numbers<[1], [0], [0], [1], [0, 0, 1, 1], [], []>} : vector<32x128xbf16>, vector<128x64xbf16>, vector<32x64xf32> -> vector<32x64xf32>
    %180 = vector.broadcast %7 : vector<1x64xf32> to vector<32x64xf32>
    %181 = arith.addf %179, %180 : vector<32x64xf32>
    %182 = arith.addf %147, %181 : vector<32x64xf32>
    %cst_65 = arith.constant dense<0.000000e+00> : vector<32xf32>
    %183 = vector.multi_reduction <add>, %182, %cst_65 [1] : vector<32x64xf32> to vector<32xf32>
    %184 = vector.shape_cast %183 : vector<32xf32> to vector<32x1xf32>
    %cst_66 = arith.constant 6.400000e+01 : f32
    %185 = vector.broadcast %cst_66 : f32 to vector<32x1xf32>
    %186 = arith.divf %184, %185 : vector<32x1xf32>
    %187 = vector.broadcast %186 : vector<32x1xf32> to vector<32x64xf32>
    %188 = arith.subf %182, %187 : vector<32x64xf32>
    %189 = arith.mulf %188, %188 : vector<32x64xf32>
    %cst_67 = arith.constant dense<0.000000e+00> : vector<32xf32>
    %190 = vector.multi_reduction <add>, %189, %cst_67 [1] : vector<32x64xf32> to vector<32xf32>
    %191 = vector.shape_cast %190 : vector<32xf32> to vector<32x1xf32>
    %cst_68 = arith.constant 6.400000e+01 : f32
    %192 = vector.broadcast %cst_68 : f32 to vector<32x1xf32>
    %193 = arith.divf %191, %192 : vector<32x1xf32>
    %194 = vector.broadcast %186 : vector<32x1xf32> to vector<32x64xf32>
    %195 = arith.subf %182, %194 : vector<32x64xf32>
    %cst_69 = arith.constant 9.99999974E-6 : f32
    %196 = vector.broadcast %cst_69 : f32 to vector<32x1xf32>
    %197 = arith.addf %193, %196 : vector<32x1xf32>
    %198 = math.rsqrt %197 : vector<32x1xf32>
    %199 = vector.broadcast %198 : vector<32x1xf32> to vector<32x64xf32>
    %200 = arith.mulf %195, %199 : vector<32x64xf32>
    %201 = vector.broadcast %2 : vector<1x64xf32> to vector<32x64xf32>
    %202 = arith.mulf %200, %201 : vector<32x64xf32>
    %203 = vector.broadcast %3 : vector<1x64xf32> to vector<32x64xf32>
    %204 = arith.addf %202, %203 : vector<32x64xf32>
    %205 = arith.truncf %204 : vector<32x64xf32> to vector<32x64xbf16>
    %c0_70 = arith.constant 0 : index
    %c0_71 = arith.constant 0 : index
    %206 = vector.load %arg6[%c0_70, %c0_71] : memref<64x128xbf16, #tpu.memory_space<vmem>>, vector<64x128xbf16>
    %cst_72 = arith.constant dense<0.000000e+00> : vector<32x128xf32>
    %207 = tpu.matmul %205, %206, %cst_72 {dimension_numbers = #tpu.dot_dimension_numbers<[1], [0], [0], [1], [0, 0, 1, 1], [], []>} : vector<32x64xbf16>, vector<64x128xbf16>, vector<32x128xf32> -> vector<32x128xf32>
    %208 = arith.truncf %207 : vector<32x128xf32> to vector<32x128xbf16>
    %209 = vector.extract_strided_slice %208 {offsets = [0, 0], sizes = [16, 128], strides = [1, 1]} : vector<32x128xbf16> to vector<16x128xbf16>
    %210 = vector.extract_strided_slice %36 {offsets = [0, 0], sizes = [16, 128], strides = [1, 1]} : vector<32x128xbf16> to vector<16x128xbf16>
    %cst_73 = arith.constant dense<0.000000e+00> : vector<16x16xf32>
    %211 = tpu.matmul %209, %210, %cst_73 {dimension_numbers = #tpu.dot_dimension_numbers<[1], [1], [0], [0], [0, 0, 1, 0], [], []>} : vector<16x128xbf16>, vector<16x128xbf16>, vector<16x16xf32> -> vector<16x16xf32>
    %cst_74 = arith.constant -1.000000e+30 : f32
    %212 = vector.broadcast %cst_74 : f32 to vector<16x16xf32>
    %213 = arith.select %39, %211, %212 : vector<16x16xi1>, vector<16x16xf32>
    %cst_75 = arith.constant dense<0xFF800000> : vector<16xf32>
    %214 = vector.multi_reduction <maximumf>, %213, %cst_75 [0] : vector<16x16xf32> to vector<16xf32>
    %215 = vector.shape_cast %214 : vector<16xf32> to vector<1x16xf32>
    %216 = vector.broadcast %215 : vector<1x16xf32> to vector<16x16xf32>
    %217 = arith.subf %213, %216 : vector<16x16xf32>
    %218 = math.exp %217 : vector<16x16xf32>
    %cst_76 = arith.constant dense<0.000000e+00> : vector<16xf32>
    %219 = vector.multi_reduction <add>, %218, %cst_76 [0] : vector<16x16xf32> to vector<16xf32>
    %220 = vector.shape_cast %219 : vector<16xf32> to vector<1x16xf32>
    %221 = vector.broadcast %220 : vector<1x16xf32> to vector<16x16xf32>
    %222 = arith.divf %218, %221 : vector<16x16xf32>
    %cst_77 = arith.constant dense<0.000000e+00> : vector<16xf32>
    %223 = vector.multi_reduction <add>, %222, %cst_77 [1] : vector<16x16xf32> to vector<16xf32>
    %224 = vector.shape_cast %223 : vector<16xf32> to vector<16x1xf32>
    %cst_78 = arith.constant 9.99999997E-7 : f32
    %225 = vector.broadcast %cst_78 : f32 to vector<16x1xf32>
    %226 = arith.addf %224, %225 : vector<16x1xf32>
    %227 = vector.broadcast %226 : vector<16x1xf32> to vector<16x16xf32>
    %228 = arith.divf %222, %227 : vector<16x16xf32>
    %229 = arith.truncf %228 : vector<16x16xf32> to vector<16x16xbf16>
    %230 = vector.extract_strided_slice %210 {offsets = [0, 0], sizes = [16, 64], strides = [1, 1]} : vector<16x128xbf16> to vector<16x64xbf16>
    %cst_79 = arith.constant dense<0.000000e+00> : vector<16x64xf32>
    %231 = tpu.matmul %229, %230, %cst_79 {dimension_numbers = #tpu.dot_dimension_numbers<[1], [0], [0], [1], [0, 0, 1, 1], [], []>} : vector<16x16xbf16>, vector<16x64xbf16>, vector<16x64xf32> -> vector<16x64xf32>
    %232 = vector.extract_strided_slice %208 {offsets = [16, 0], sizes = [16, 128], strides = [1, 1]} : vector<32x128xbf16> to vector<16x128xbf16>
    %233 = vector.extract_strided_slice %36 {offsets = [16, 0], sizes = [16, 128], strides = [1, 1]} : vector<32x128xbf16> to vector<16x128xbf16>
    %cst_80 = arith.constant dense<0.000000e+00> : vector<16x16xf32>
    %234 = tpu.matmul %232, %233, %cst_80 {dimension_numbers = #tpu.dot_dimension_numbers<[1], [1], [0], [0], [0, 0, 1, 0], [], []>} : vector<16x128xbf16>, vector<16x128xbf16>, vector<16x16xf32> -> vector<16x16xf32>
    %cst_81 = arith.constant -1.000000e+30 : f32
    %235 = vector.broadcast %cst_81 : f32 to vector<16x16xf32>
    %236 = arith.select %39, %234, %235 : vector<16x16xi1>, vector<16x16xf32>
    %cst_82 = arith.constant dense<0xFF800000> : vector<16xf32>
    %237 = vector.multi_reduction <maximumf>, %236, %cst_82 [0] : vector<16x16xf32> to vector<16xf32>
    %238 = vector.shape_cast %237 : vector<16xf32> to vector<1x16xf32>
    %239 = vector.broadcast %238 : vector<1x16xf32> to vector<16x16xf32>
    %240 = arith.subf %236, %239 : vector<16x16xf32>
    %241 = math.exp %240 : vector<16x16xf32>
    %cst_83 = arith.constant dense<0.000000e+00> : vector<16xf32>
    %242 = vector.multi_reduction <add>, %241, %cst_83 [0] : vector<16x16xf32> to vector<16xf32>
    %243 = vector.shape_cast %242 : vector<16xf32> to vector<1x16xf32>
    %244 = vector.broadcast %243 : vector<1x16xf32> to vector<16x16xf32>
    %245 = arith.divf %241, %244 : vector<16x16xf32>
    %cst_84 = arith.constant dense<0.000000e+00> : vector<16xf32>
    %246 = vector.multi_reduction <add>, %245, %cst_84 [1] : vector<16x16xf32> to vector<16xf32>
    %247 = vector.shape_cast %246 : vector<16xf32> to vector<16x1xf32>
    %cst_85 = arith.constant 9.99999997E-7 : f32
    %248 = vector.broadcast %cst_85 : f32 to vector<16x1xf32>
    %249 = arith.addf %247, %248 : vector<16x1xf32>
    %250 = vector.broadcast %249 : vector<16x1xf32> to vector<16x16xf32>
    %251 = arith.divf %245, %250 : vector<16x16xf32>
    %252 = arith.truncf %251 : vector<16x16xf32> to vector<16x16xbf16>
    %253 = vector.extract_strided_slice %233 {offsets = [0, 0], sizes = [16, 64], strides = [1, 1]} : vector<16x128xbf16> to vector<16x64xbf16>
    %cst_86 = arith.constant dense<0.000000e+00> : vector<16x64xf32>
    %254 = tpu.matmul %252, %253, %cst_86 {dimension_numbers = #tpu.dot_dimension_numbers<[1], [0], [0], [1], [0, 0, 1, 1], [], []>} : vector<16x16xbf16>, vector<16x64xbf16>, vector<16x64xf32> -> vector<16x64xf32>
    %255 = tpu.concatenate %231, %254 in 0 : vector<16x64xf32>, vector<16x64xf32> -> vector<32x64xf32>
    %256 = arith.truncf %255 : vector<32x64xf32> to vector<32x64xbf16>
    %c0_87 = arith.constant 0 : index
    %c0_88 = arith.constant 0 : index
    %257 = vector.load %arg7[%c0_87, %c0_88] : memref<64x384xbf16, #tpu.memory_space<vmem>>, vector<64x384xbf16>
    %cst_89 = arith.constant dense<0.000000e+00> : vector<32x384xf32>
    %258 = tpu.matmul %256, %257, %cst_89 {dimension_numbers = #tpu.dot_dimension_numbers<[1], [0], [0], [1], [0, 0, 1, 1], [], []>} : vector<32x64xbf16>, vector<64x384xbf16>, vector<32x384xf32> -> vector<32x384xf32>
    %259 = vector.broadcast %8 : vector<1x384xf32> to vector<32x384xf32>
    %260 = arith.addf %258, %259 : vector<32x384xf32>
    %261 = arith.truncf %182 : vector<32x64xf32> to vector<32x64xbf16>
    %c0_90 = arith.constant 0 : index
    %c0_91 = arith.constant 0 : index
    %262 = vector.load %arg8[%c0_90, %c0_91] : memref<64x384xbf16, #tpu.memory_space<vmem>>, vector<64x384xbf16>
    %cst_92 = arith.constant dense<0.000000e+00> : vector<32x384xf32>
    %263 = tpu.matmul %261, %262, %cst_92 {dimension_numbers = #tpu.dot_dimension_numbers<[1], [0], [0], [1], [0, 0, 1, 1], [], []>} : vector<32x64xbf16>, vector<64x384xbf16>, vector<32x384xf32> -> vector<32x384xf32>
    %264 = vector.broadcast %9 : vector<1x384xf32> to vector<32x384xf32>
    %265 = arith.addf %263, %264 : vector<32x384xf32>
    %266 = vector.extract_strided_slice %260 {offsets = [0, 0], sizes = [32, 64], strides = [1, 1]} : vector<32x384xf32> to vector<32x64xf32>
    %267 = vector.extract_strided_slice %265 {offsets = [0, 0], sizes = [32, 64], strides = [1, 1]} : vector<32x384xf32> to vector<32x64xf32>
    %268 = arith.addf %266, %267 : vector<32x64xf32>
    %269 = arith.negf %268 : vector<32x64xf32>
    %270 = math.exp %269 : vector<32x64xf32>
    %cst_93 = arith.constant 1.000000e+00 : f32
    %271 = vector.broadcast %cst_93 : f32 to vector<32x64xf32>
    %272 = arith.addf %271, %270 : vector<32x64xf32>
    %273 = arith.divf %271, %272 : vector<32x64xf32>
    %274 = vector.extract_strided_slice %260 {offsets = [0, 128], sizes = [32, 64], strides = [1, 1]} : vector<32x384xf32> to vector<32x64xf32>
    %275 = vector.extract_strided_slice %265 {offsets = [0, 128], sizes = [32, 64], strides = [1, 1]} : vector<32x384xf32> to vector<32x64xf32>
    %276 = arith.addf %274, %275 : vector<32x64xf32>
    %277 = arith.negf %276 : vector<32x64xf32>
    %278 = math.exp %277 : vector<32x64xf32>
    %cst_94 = arith.constant 1.000000e+00 : f32
    %279 = vector.broadcast %cst_94 : f32 to vector<32x64xf32>
    %280 = arith.addf %279, %278 : vector<32x64xf32>
    %281 = arith.divf %279, %280 : vector<32x64xf32>
    %282 = vector.extract_strided_slice %260 {offsets = [0, 256], sizes = [32, 64], strides = [1, 1]} : vector<32x384xf32> to vector<32x64xf32>
    %283 = vector.extract_strided_slice %265 {offsets = [0, 256], sizes = [32, 64], strides = [1, 1]} : vector<32x384xf32> to vector<32x64xf32>
    %284 = arith.mulf %273, %283 : vector<32x64xf32>
    %285 = arith.addf %282, %284 : vector<32x64xf32>
    %286 = math.tanh %285 : vector<32x64xf32>
    %287 = arith.subf %182, %286 : vector<32x64xf32>
    %288 = arith.mulf %281, %287 : vector<32x64xf32>
    %289 = arith.addf %286, %288 : vector<32x64xf32>
    %cst_95 = arith.constant dense<0.000000e+00> : vector<32xf32>
    %290 = vector.multi_reduction <add>, %289, %cst_95 [1] : vector<32x64xf32> to vector<32xf32>
    %291 = vector.shape_cast %290 : vector<32xf32> to vector<32x1xf32>
    %cst_96 = arith.constant 6.400000e+01 : f32
    %292 = vector.broadcast %cst_96 : f32 to vector<32x1xf32>
    %293 = arith.divf %291, %292 : vector<32x1xf32>
    %294 = vector.broadcast %293 : vector<32x1xf32> to vector<32x64xf32>
    %295 = arith.subf %289, %294 : vector<32x64xf32>
    %296 = arith.mulf %295, %295 : vector<32x64xf32>
    %cst_97 = arith.constant dense<0.000000e+00> : vector<32xf32>
    %297 = vector.multi_reduction <add>, %296, %cst_97 [1] : vector<32x64xf32> to vector<32xf32>
    %298 = vector.shape_cast %297 : vector<32xf32> to vector<32x1xf32>
    %cst_98 = arith.constant 6.400000e+01 : f32
    %299 = vector.broadcast %cst_98 : f32 to vector<32x1xf32>
    %300 = arith.divf %298, %299 : vector<32x1xf32>
    %301 = vector.broadcast %293 : vector<32x1xf32> to vector<32x64xf32>
    %302 = arith.subf %289, %301 : vector<32x64xf32>
    %cst_99 = arith.constant 9.99999974E-6 : f32
    %303 = vector.broadcast %cst_99 : f32 to vector<32x1xf32>
    %304 = arith.addf %300, %303 : vector<32x1xf32>
    %305 = math.rsqrt %304 : vector<32x1xf32>
    %306 = vector.broadcast %305 : vector<32x1xf32> to vector<32x64xf32>
    %307 = arith.mulf %302, %306 : vector<32x64xf32>
    %308 = vector.broadcast %4 : vector<1x64xf32> to vector<32x64xf32>
    %309 = arith.mulf %307, %308 : vector<32x64xf32>
    %310 = vector.broadcast %5 : vector<1x64xf32> to vector<32x64xf32>
    %311 = arith.addf %309, %310 : vector<32x64xf32>
    %312 = arith.truncf %311 : vector<32x64xf32> to vector<32x64xbf16>
    %c0_100 = arith.constant 0 : index
    %c0_101 = arith.constant 0 : index
    %313 = vector.load %arg9[%c0_100, %c0_101] : memref<64x128xbf16, #tpu.memory_space<vmem>>, vector<64x128xbf16>
    %cst_102 = arith.constant dense<0.000000e+00> : vector<32x128xf32>
    %314 = tpu.matmul %312, %313, %cst_102 {dimension_numbers = #tpu.dot_dimension_numbers<[1], [0], [0], [1], [0, 0, 1, 1], [], []>} : vector<32x64xbf16>, vector<64x128xbf16>, vector<32x128xf32> -> vector<32x128xf32>
    %315 = vector.broadcast %6 : vector<1x128xf32> to vector<32x128xf32>
    %316 = arith.addf %314, %315 : vector<32x128xf32>
    %cst_103 = arith.constant 0.000000e+00 : f32
    %317 = vector.broadcast %cst_103 : f32 to vector<32x128xf32>
    %318 = arith.maximumf %316, %317 : vector<32x128xf32>
    %319 = arith.truncf %318 : vector<32x128xf32> to vector<32x128xbf16>
    %c0_104 = arith.constant 0 : index
    %c0_105 = arith.constant 0 : index
    %320 = vector.load %arg10[%c0_104, %c0_105] : memref<128x64xbf16, #tpu.memory_space<vmem>>, vector<128x64xbf16>
    %cst_106 = arith.constant dense<0.000000e+00> : vector<32x64xf32>
    %321 = tpu.matmul %319, %320, %cst_106 {dimension_numbers = #tpu.dot_dimension_numbers<[1], [0], [0], [1], [0, 0, 1, 1], [], []>} : vector<32x128xbf16>, vector<128x64xbf16>, vector<32x64xf32> -> vector<32x64xf32>
    %322 = vector.broadcast %7 : vector<1x64xf32> to vector<32x64xf32>
    %323 = arith.addf %321, %322 : vector<32x64xf32>
    %324 = arith.addf %289, %323 : vector<32x64xf32>
    %cst_107 = arith.constant dense<0.000000e+00> : vector<32xf32>
    %325 = vector.multi_reduction <add>, %324, %cst_107 [1] : vector<32x64xf32> to vector<32xf32>
    %326 = vector.shape_cast %325 : vector<32xf32> to vector<32x1xf32>
    %cst_108 = arith.constant 6.400000e+01 : f32
    %327 = vector.broadcast %cst_108 : f32 to vector<32x1xf32>
    %328 = arith.divf %326, %327 : vector<32x1xf32>
    %329 = vector.broadcast %328 : vector<32x1xf32> to vector<32x64xf32>
    %330 = arith.subf %324, %329 : vector<32x64xf32>
    %331 = arith.mulf %330, %330 : vector<32x64xf32>
    %cst_109 = arith.constant dense<0.000000e+00> : vector<32xf32>
    %332 = vector.multi_reduction <add>, %331, %cst_109 [1] : vector<32x64xf32> to vector<32xf32>
    %333 = vector.shape_cast %332 : vector<32xf32> to vector<32x1xf32>
    %cst_110 = arith.constant 6.400000e+01 : f32
    %334 = vector.broadcast %cst_110 : f32 to vector<32x1xf32>
    %335 = arith.divf %333, %334 : vector<32x1xf32>
    %336 = vector.broadcast %328 : vector<32x1xf32> to vector<32x64xf32>
    %337 = arith.subf %324, %336 : vector<32x64xf32>
    %cst_111 = arith.constant 9.99999974E-6 : f32
    %338 = vector.broadcast %cst_111 : f32 to vector<32x1xf32>
    %339 = arith.addf %335, %338 : vector<32x1xf32>
    %340 = math.rsqrt %339 : vector<32x1xf32>
    %341 = vector.broadcast %340 : vector<32x1xf32> to vector<32x64xf32>
    %342 = arith.mulf %337, %341 : vector<32x64xf32>
    %343 = vector.broadcast %2 : vector<1x64xf32> to vector<32x64xf32>
    %344 = arith.mulf %342, %343 : vector<32x64xf32>
    %345 = vector.broadcast %3 : vector<1x64xf32> to vector<32x64xf32>
    %346 = arith.addf %344, %345 : vector<32x64xf32>
    %347 = arith.truncf %346 : vector<32x64xf32> to vector<32x64xbf16>
    %c0_112 = arith.constant 0 : index
    %c0_113 = arith.constant 0 : index
    %348 = vector.load %arg6[%c0_112, %c0_113] : memref<64x128xbf16, #tpu.memory_space<vmem>>, vector<64x128xbf16>
    %cst_114 = arith.constant dense<0.000000e+00> : vector<32x128xf32>
    %349 = tpu.matmul %347, %348, %cst_114 {dimension_numbers = #tpu.dot_dimension_numbers<[1], [0], [0], [1], [0, 0, 1, 1], [], []>} : vector<32x64xbf16>, vector<64x128xbf16>, vector<32x128xf32> -> vector<32x128xf32>
    %350 = arith.truncf %349 : vector<32x128xf32> to vector<32x128xbf16>
    %351 = vector.extract_strided_slice %350 {offsets = [0, 0], sizes = [16, 128], strides = [1, 1]} : vector<32x128xbf16> to vector<16x128xbf16>
    %352 = vector.extract_strided_slice %36 {offsets = [0, 0], sizes = [16, 128], strides = [1, 1]} : vector<32x128xbf16> to vector<16x128xbf16>
    %cst_115 = arith.constant dense<0.000000e+00> : vector<16x16xf32>
    %353 = tpu.matmul %351, %352, %cst_115 {dimension_numbers = #tpu.dot_dimension_numbers<[1], [1], [0], [0], [0, 0, 1, 0], [], []>} : vector<16x128xbf16>, vector<16x128xbf16>, vector<16x16xf32> -> vector<16x16xf32>
    %cst_116 = arith.constant -1.000000e+30 : f32
    %354 = vector.broadcast %cst_116 : f32 to vector<16x16xf32>
    %355 = arith.select %39, %353, %354 : vector<16x16xi1>, vector<16x16xf32>
    %cst_117 = arith.constant dense<0xFF800000> : vector<16xf32>
    %356 = vector.multi_reduction <maximumf>, %355, %cst_117 [0] : vector<16x16xf32> to vector<16xf32>
    %357 = vector.shape_cast %356 : vector<16xf32> to vector<1x16xf32>
    %358 = vector.broadcast %357 : vector<1x16xf32> to vector<16x16xf32>
    %359 = arith.subf %355, %358 : vector<16x16xf32>
    %360 = math.exp %359 : vector<16x16xf32>
    %cst_118 = arith.constant dense<0.000000e+00> : vector<16xf32>
    %361 = vector.multi_reduction <add>, %360, %cst_118 [0] : vector<16x16xf32> to vector<16xf32>
    %362 = vector.shape_cast %361 : vector<16xf32> to vector<1x16xf32>
    %363 = vector.broadcast %362 : vector<1x16xf32> to vector<16x16xf32>
    %364 = arith.divf %360, %363 : vector<16x16xf32>
    %c0_119 = arith.constant 0 : index
    %c0_120 = arith.constant 0 : index
    %365 = vector.load %arg12[%c0_119, %c0_120] : memref<32x16xf32, #tpu.memory_space<vmem>>, vector<16x16xf32>
    tpu.vector_store %arg12[%c0_119, %c0_120], %364 {strides = array<i32>} : memref<32x16xf32, #tpu.memory_space<vmem>>, vector<16x16xf32>,
    %cst_121 = arith.constant dense<0.000000e+00> : vector<16xf32>
    %366 = vector.multi_reduction <add>, %364, %cst_121 [1] : vector<16x16xf32> to vector<16xf32>
    %367 = vector.shape_cast %366 : vector<16xf32> to vector<16x1xf32>
    %cst_122 = arith.constant 9.99999997E-7 : f32
    %368 = vector.broadcast %cst_122 : f32 to vector<16x1xf32>
    %369 = arith.addf %367, %368 : vector<16x1xf32>
    %370 = vector.broadcast %369 : vector<16x1xf32> to vector<16x16xf32>
    %371 = arith.divf %364, %370 : vector<16x16xf32>
    %372 = arith.truncf %371 : vector<16x16xf32> to vector<16x16xbf16>
    %373 = vector.extract_strided_slice %352 {offsets = [0, 0], sizes = [16, 64], strides = [1, 1]} : vector<16x128xbf16> to vector<16x64xbf16>
    %cst_123 = arith.constant dense<0.000000e+00> : vector<16x64xf32>
    %374 = tpu.matmul %372, %373, %cst_123 {dimension_numbers = #tpu.dot_dimension_numbers<[1], [0], [0], [1], [0, 0, 1, 1], [], []>} : vector<16x16xbf16>, vector<16x64xbf16>, vector<16x64xf32> -> vector<16x64xf32>
    %375 = vector.extract_strided_slice %350 {offsets = [16, 0], sizes = [16, 128], strides = [1, 1]} : vector<32x128xbf16> to vector<16x128xbf16>
    %376 = vector.extract_strided_slice %36 {offsets = [16, 0], sizes = [16, 128], strides = [1, 1]} : vector<32x128xbf16> to vector<16x128xbf16>
    %cst_124 = arith.constant dense<0.000000e+00> : vector<16x16xf32>
    %377 = tpu.matmul %375, %376, %cst_124 {dimension_numbers = #tpu.dot_dimension_numbers<[1], [1], [0], [0], [0, 0, 1, 0], [], []>} : vector<16x128xbf16>, vector<16x128xbf16>, vector<16x16xf32> -> vector<16x16xf32>
    %cst_125 = arith.constant -1.000000e+30 : f32
    %378 = vector.broadcast %cst_125 : f32 to vector<16x16xf32>
    %379 = arith.select %39, %377, %378 : vector<16x16xi1>, vector<16x16xf32>
    %cst_126 = arith.constant dense<0xFF800000> : vector<16xf32>
    %380 = vector.multi_reduction <maximumf>, %379, %cst_126 [0] : vector<16x16xf32> to vector<16xf32>
    %381 = vector.shape_cast %380 : vector<16xf32> to vector<1x16xf32>
    %382 = vector.broadcast %381 : vector<1x16xf32> to vector<16x16xf32>
    %383 = arith.subf %379, %382 : vector<16x16xf32>
    %384 = math.exp %383 : vector<16x16xf32>
    %cst_127 = arith.constant dense<0.000000e+00> : vector<16xf32>
    %385 = vector.multi_reduction <add>, %384, %cst_127 [0] : vector<16x16xf32> to vector<16xf32>
    %386 = vector.shape_cast %385 : vector<16xf32> to vector<1x16xf32>
    %387 = vector.broadcast %386 : vector<1x16xf32> to vector<16x16xf32>
    %388 = arith.divf %384, %387 : vector<16x16xf32>
    %c16 = arith.constant 16 : index
    %c0_128 = arith.constant 0 : index
    %389 = vector.load %arg12[%c16, %c0_128] : memref<32x16xf32, #tpu.memory_space<vmem>>, vector<16x16xf32>
    tpu.vector_store %arg12[%c16, %c0_128], %388 {strides = array<i32>} : memref<32x16xf32, #tpu.memory_space<vmem>>, vector<16x16xf32>,
    %cst_129 = arith.constant dense<0.000000e+00> : vector<16xf32>
    %390 = vector.multi_reduction <add>, %388, %cst_129 [1] : vector<16x16xf32> to vector<16xf32>
    %391 = vector.shape_cast %390 : vector<16xf32> to vector<16x1xf32>
    %cst_130 = arith.constant 9.99999997E-7 : f32
    %392 = vector.broadcast %cst_130 : f32 to vector<16x1xf32>
    %393 = arith.addf %391, %392 : vector<16x1xf32>
    %394 = vector.broadcast %393 : vector<16x1xf32> to vector<16x16xf32>
    %395 = arith.divf %388, %394 : vector<16x16xf32>
    %396 = arith.truncf %395 : vector<16x16xf32> to vector<16x16xbf16>
    %397 = vector.extract_strided_slice %376 {offsets = [0, 0], sizes = [16, 64], strides = [1, 1]} : vector<16x128xbf16> to vector<16x64xbf16>
    %cst_131 = arith.constant dense<0.000000e+00> : vector<16x64xf32>
    %398 = tpu.matmul %396, %397, %cst_131 {dimension_numbers = #tpu.dot_dimension_numbers<[1], [0], [0], [1], [0, 0, 1, 1], [], []>} : vector<16x16xbf16>, vector<16x64xbf16>, vector<16x64xf32> -> vector<16x64xf32>
    %399 = tpu.concatenate %374, %398 in 0 : vector<16x64xf32>, vector<16x64xf32> -> vector<32x64xf32>
    %400 = arith.truncf %399 : vector<32x64xf32> to vector<32x64xbf16>
    %c0_132 = arith.constant 0 : index
    %c0_133 = arith.constant 0 : index
    %401 = vector.load %arg7[%c0_132, %c0_133] : memref<64x384xbf16, #tpu.memory_space<vmem>>, vector<64x384xbf16>
    %cst_134 = arith.constant dense<0.000000e+00> : vector<32x384xf32>
    %402 = tpu.matmul %400, %401, %cst_134 {dimension_numbers = #tpu.dot_dimension_numbers<[1], [0], [0], [1], [0, 0, 1, 1], [], []>} : vector<32x64xbf16>, vector<64x384xbf16>, vector<32x384xf32> -> vector<32x384xf32>
    %403 = vector.broadcast %8 : vector<1x384xf32> to vector<32x384xf32>
    %404 = arith.addf %402, %403 : vector<32x384xf32>
    %405 = arith.truncf %324 : vector<32x64xf32> to vector<32x64xbf16>
    %c0_135 = arith.constant 0 : index
    %c0_136 = arith.constant 0 : index
    %406 = vector.load %arg8[%c0_135, %c0_136] : memref<64x384xbf16, #tpu.memory_space<vmem>>, vector<64x384xbf16>
    %cst_137 = arith.constant dense<0.000000e+00> : vector<32x384xf32>
    %407 = tpu.matmul %405, %406, %cst_137 {dimension_numbers = #tpu.dot_dimension_numbers<[1], [0], [0], [1], [0, 0, 1, 1], [], []>} : vector<32x64xbf16>, vector<64x384xbf16>, vector<32x384xf32> -> vector<32x384xf32>
    %408 = vector.broadcast %9 : vector<1x384xf32> to vector<32x384xf32>
    %409 = arith.addf %407, %408 : vector<32x384xf32>
    %410 = vector.extract_strided_slice %404 {offsets = [0, 0], sizes = [32, 64], strides = [1, 1]} : vector<32x384xf32> to vector<32x64xf32>
    %411 = vector.extract_strided_slice %409 {offsets = [0, 0], sizes = [32, 64], strides = [1, 1]} : vector<32x384xf32> to vector<32x64xf32>
    %412 = arith.addf %410, %411 : vector<32x64xf32>
    %413 = arith.negf %412 : vector<32x64xf32>
    %414 = math.exp %413 : vector<32x64xf32>
    %cst_138 = arith.constant 1.000000e+00 : f32
    %415 = vector.broadcast %cst_138 : f32 to vector<32x64xf32>
    %416 = arith.addf %415, %414 : vector<32x64xf32>
    %417 = arith.divf %415, %416 : vector<32x64xf32>
    %418 = vector.extract_strided_slice %404 {offsets = [0, 128], sizes = [32, 64], strides = [1, 1]} : vector<32x384xf32> to vector<32x64xf32>
    %419 = vector.extract_strided_slice %409 {offsets = [0, 128], sizes = [32, 64], strides = [1, 1]} : vector<32x384xf32> to vector<32x64xf32>
    %420 = arith.addf %418, %419 : vector<32x64xf32>
    %421 = arith.negf %420 : vector<32x64xf32>
    %422 = math.exp %421 : vector<32x64xf32>
    %cst_139 = arith.constant 1.000000e+00 : f32
    %423 = vector.broadcast %cst_139 : f32 to vector<32x64xf32>
    %424 = arith.addf %423, %422 : vector<32x64xf32>
    %425 = arith.divf %423, %424 : vector<32x64xf32>
    %426 = vector.extract_strided_slice %404 {offsets = [0, 256], sizes = [32, 64], strides = [1, 1]} : vector<32x384xf32> to vector<32x64xf32>
    %427 = vector.extract_strided_slice %409 {offsets = [0, 256], sizes = [32, 64], strides = [1, 1]} : vector<32x384xf32> to vector<32x64xf32>
    %428 = arith.mulf %417, %427 : vector<32x64xf32>
    %429 = arith.addf %426, %428 : vector<32x64xf32>
    %430 = math.tanh %429 : vector<32x64xf32>
    %431 = arith.subf %324, %430 : vector<32x64xf32>
    %432 = arith.mulf %425, %431 : vector<32x64xf32>
    %433 = arith.addf %430, %432 : vector<32x64xf32>
    %cst_140 = arith.constant dense<0.000000e+00> : vector<32xf32>
    %434 = vector.multi_reduction <add>, %433, %cst_140 [1] : vector<32x64xf32> to vector<32xf32>
    %435 = vector.shape_cast %434 : vector<32xf32> to vector<32x1xf32>
    %cst_141 = arith.constant 6.400000e+01 : f32
    %436 = vector.broadcast %cst_141 : f32 to vector<32x1xf32>
    %437 = arith.divf %435, %436 : vector<32x1xf32>
    %438 = vector.broadcast %437 : vector<32x1xf32> to vector<32x64xf32>
    %439 = arith.subf %433, %438 : vector<32x64xf32>
    %440 = arith.mulf %439, %439 : vector<32x64xf32>
    %cst_142 = arith.constant dense<0.000000e+00> : vector<32xf32>
    %441 = vector.multi_reduction <add>, %440, %cst_142 [1] : vector<32x64xf32> to vector<32xf32>
    %442 = vector.shape_cast %441 : vector<32xf32> to vector<32x1xf32>
    %cst_143 = arith.constant 6.400000e+01 : f32
    %443 = vector.broadcast %cst_143 : f32 to vector<32x1xf32>
    %444 = arith.divf %442, %443 : vector<32x1xf32>
    %445 = vector.broadcast %437 : vector<32x1xf32> to vector<32x64xf32>
    %446 = arith.subf %433, %445 : vector<32x64xf32>
    %cst_144 = arith.constant 9.99999974E-6 : f32
    %447 = vector.broadcast %cst_144 : f32 to vector<32x1xf32>
    %448 = arith.addf %444, %447 : vector<32x1xf32>
    %449 = math.rsqrt %448 : vector<32x1xf32>
    %450 = vector.broadcast %449 : vector<32x1xf32> to vector<32x64xf32>
    %451 = arith.mulf %446, %450 : vector<32x64xf32>
    %452 = vector.broadcast %4 : vector<1x64xf32> to vector<32x64xf32>
    %453 = arith.mulf %451, %452 : vector<32x64xf32>
    %454 = vector.broadcast %5 : vector<1x64xf32> to vector<32x64xf32>
    %455 = arith.addf %453, %454 : vector<32x64xf32>
    %456 = arith.truncf %455 : vector<32x64xf32> to vector<32x64xbf16>
    %c0_145 = arith.constant 0 : index
    %c0_146 = arith.constant 0 : index
    %457 = vector.load %arg9[%c0_145, %c0_146] : memref<64x128xbf16, #tpu.memory_space<vmem>>, vector<64x128xbf16>
    %cst_147 = arith.constant dense<0.000000e+00> : vector<32x128xf32>
    %458 = tpu.matmul %456, %457, %cst_147 {dimension_numbers = #tpu.dot_dimension_numbers<[1], [0], [0], [1], [0, 0, 1, 1], [], []>} : vector<32x64xbf16>, vector<64x128xbf16>, vector<32x128xf32> -> vector<32x128xf32>
    %459 = vector.broadcast %6 : vector<1x128xf32> to vector<32x128xf32>
    %460 = arith.addf %458, %459 : vector<32x128xf32>
    %cst_148 = arith.constant 0.000000e+00 : f32
    %461 = vector.broadcast %cst_148 : f32 to vector<32x128xf32>
    %462 = arith.maximumf %460, %461 : vector<32x128xf32>
    %463 = arith.truncf %462 : vector<32x128xf32> to vector<32x128xbf16>
    %c0_149 = arith.constant 0 : index
    %c0_150 = arith.constant 0 : index
    %464 = vector.load %arg10[%c0_149, %c0_150] : memref<128x64xbf16, #tpu.memory_space<vmem>>, vector<128x64xbf16>
    %cst_151 = arith.constant dense<0.000000e+00> : vector<32x64xf32>
    %465 = tpu.matmul %463, %464, %cst_151 {dimension_numbers = #tpu.dot_dimension_numbers<[1], [0], [0], [1], [0, 0, 1, 1], [], []>} : vector<32x128xbf16>, vector<128x64xbf16>, vector<32x64xf32> -> vector<32x64xf32>
    %466 = vector.broadcast %7 : vector<1x64xf32> to vector<32x64xf32>
    %467 = arith.addf %465, %466 : vector<32x64xf32>
    %468 = arith.addf %433, %467 : vector<32x64xf32>
    %c0_152 = arith.constant 0 : index
    %c0_153 = arith.constant 0 : index
    %469 = vector.load %arg11[%c0_152, %c0_153] : memref<32x64xf32, #tpu.memory_space<vmem>>, vector<32x64xf32>
    tpu.vector_store %arg11[%c0_152, %c0_153], %468 {strides = array<i32>} : memref<32x64xf32, #tpu.memory_space<vmem>>, vector<32x64xf32>,
    return
  }
  func.func @transform_0(%arg0: i32) -> (i32, i32) {
    %c0_i32 = arith.constant 0 : i32
    %c0_i32_0 = arith.constant 0 : i32
    return %arg0, %c0_i32 : i32, i32
  }
  func.func @transform_1(%arg0: i32) -> (i32, i32) {
    %c0_i32 = arith.constant 0 : i32
    %c0_i32_0 = arith.constant 0 : i32
    return %arg0, %c0_i32 : i32, i32
  }
  func.func @transform_2(%arg0: i32) -> (i32, i32) {
    %c0_i32 = arith.constant 0 : i32
    %c0_i32_0 = arith.constant 0 : i32
    %c0_i32_1 = arith.constant 0 : i32
    return %c0_i32, %c0_i32_0 : i32, i32
  }
  func.func @transform_3(%arg0: i32) -> (i32, i32) {
    %c0_i32 = arith.constant 0 : i32
    %c0_i32_0 = arith.constant 0 : i32
    %c0_i32_1 = arith.constant 0 : i32
    return %c0_i32, %c0_i32_0 : i32, i32
  }
  func.func @transform_4(%arg0: i32) -> (i32, i32) {
    %c0_i32 = arith.constant 0 : i32
    %c0_i32_0 = arith.constant 0 : i32
    %c0_i32_1 = arith.constant 0 : i32
    return %c0_i32, %c0_i32_0 : i32, i32
  }
  func.func @transform_5(%arg0: i32) -> (i32, i32) {
    %c0_i32 = arith.constant 0 : i32
    %c0_i32_0 = arith.constant 0 : i32
    %c0_i32_1 = arith.constant 0 : i32
    return %c0_i32, %c0_i32_0 : i32, i32
  }
  func.func @transform_6(%arg0: i32) -> (i32, i32) {
    %c0_i32 = arith.constant 0 : i32
    %c0_i32_0 = arith.constant 0 : i32
    %c0_i32_1 = arith.constant 0 : i32
    return %c0_i32, %c0_i32_0 : i32, i32
  }
  func.func @transform_7(%arg0: i32) -> (i32, i32) {
    %c0_i32 = arith.constant 0 : i32
    %c0_i32_0 = arith.constant 0 : i32
    %c0_i32_1 = arith.constant 0 : i32
    return %c0_i32, %c0_i32_0 : i32, i32
  }
  func.func @transform_8(%arg0: i32) -> (i32, i32) {
    %c0_i32 = arith.constant 0 : i32
    %c0_i32_0 = arith.constant 0 : i32
    %c0_i32_1 = arith.constant 0 : i32
    return %c0_i32, %c0_i32_0 : i32, i32
  }
  func.func @transform_9(%arg0: i32) -> (i32, i32) {
    %c0_i32 = arith.constant 0 : i32
    %c0_i32_0 = arith.constant 0 : i32
    %c0_i32_1 = arith.constant 0 : i32
    return %c0_i32, %c0_i32_0 : i32, i32
  }
  func.func @transform_10(%arg0: i32) -> (i32, i32) {
    %c0_i32 = arith.constant 0 : i32
    %c0_i32_0 = arith.constant 0 : i32
    return %arg0, %c0_i32 : i32, i32
  }
  func.func @transform_11(%arg0: i32) -> (i32, i32) {
    %c0_i32 = arith.constant 0 : i32
    %c0_i32_0 = arith.constant 0 : i32
    return %arg0, %c0_i32 : i32, i32
  }
}

</mosaic_0001>

<bundles_post_ra>
// kernel: slot_attention_forward.1
= control target key start
LH: loop header
LB: loop body
LE: loop exit
PB: predicated region body
PF: predicated region fallthrough
CT: control target
= control target key end

     0   :  { %s4650_s17 = smov 0   ;;  %s6253_s0 = inlined_call_operand.vmem [shape: f32[64,64], index: 0, kind: input, shape index: {}]   ;;  %s6254_s1 = inlined_call_operand.vmem [shape: f32[64,64], index: 1, kind: input, shape index: {}]   ;;  %s6255_s2 = inlined_call_operand.vmem [shape: f32[8,128], index: 2, kind: input, shape index: {}]   ;;  %s6256_s3 = inlined_call_operand.vmem [shape: f32[2,384], index: 3, kind: input, shape index: {}]   ;;  %s6257_s4 = inlined_call_operand.vmem [shape: bf16[64,128], index: 4, kind: input, shape index: {}]   ;;  %s6258_s5 = inlined_call_operand.vmem [shape: bf16[64,128], index: 5, kind: input, shape index: {}]   ;;  %s6259_s6 = inlined_call_operand.vmem [shape: bf16[64,384], index: 6, kind: input, shape index: {}]   ;;  %s6260_s7 = inlined_call_operand.vmem [shape: bf16[64,384], index: 7, kind: input, shape index: {}]   ;;  %s6261_s8 = inlined_call_operand.vmem [shape: bf16[64,128], index: 8, kind: input, shape index: {}]   ;;  %s6262_s9 = inlined_call_operand.vmem [shape: bf16[128,64], index: 9, kind: input, shape index: {}]   ;;  %s6263_s10 = inlined_call_operand.vmem [shape: f32[64,64], index: 10, kind: output, shape index: {0}]   ;;  %s6264_s11 = inlined_call_operand.vmem [shape: f32[64,16], index: 11, kind: output, shape index: {1}]  }
   0x1 LB: > { %s3794_s18 = sadd.s32 4294967295, %s4587_s17   ;;  %p3798_p0 = scmp.ge.s32.totalorder %s4587_s17, 1  ;;  %s4587_s17 = sphi %s4650_s17, %s22_s17  }
   0x2   : > { %p352_p1 = scmp.lt.s32.totalorder %s4587_s17, 3 }
   0x4   : > { %p353_p2 = pnand %p3798_p0, %p352_p1 }
   0x5   : > { %s3799_s19 = sshll.u32 (!%p353_p2), %s3794_s18, 2 }
   0x6   : > { %356 = sbr.rel (%p353_p2) target bundleno = 5345 (0x14e1), region = 60  ;;  %p403_p3 = scmp.lt.s32.totalorder (!%p353_p2), %s3799_s19, 7 }
   0xb   : > { %s6290_s19 = smov (!%p403_p3, %s3799_s19), 7  ;;  %vm442_vm0 = vcmask 523264   ;;  %v4589_v8 = vmov 64.0   ;;  %v4213_v43 = vld [vmem:[%s6257_s4 + $0x18] sm:$0xff]  ;;  %v4212_v45 = vld [vmem:[%s6257_s4 + $0x10] sm:$0xff]  ;;  %v4211_v47 = vld [vmem:[%s6257_s4 + $0x8] sm:$0xff] }
   0xc   : > { %s4658_s20 = sshll.u32 %s6290_s19, 3  ;;  %4307 = vrcp.f32 %v4589_v8  ;;  %v4217_v44 = vld [vmem:[%s6258_s5 + $0x18] sm:$0xff]  ;;  %592 = vmatpush.bf16.msra.mxu0 %v4213_v43  ;;  %v4216_v46 = vld [vmem:[%s6258_s5 + $0x10] sm:$0xff]  ;;  %v4215_v48 = vld [vmem:[%s6258_s5 + $0x8] sm:$0xff] }
   0xd   : > { %s4664_s23 = scalar_lea.vmem %s6254_s1, %s4658_s20  ;;  %s4670_s26 = scalar_lea.vmem %s6253_s0, %s4658_s20  ;;  %762 = vmatpush.bf16.msra.mxu1 %v4217_v44  ;;  %v4210_v53 = vld [vmem:[%s6257_s4] sm:$0xff] }
   0xe   : > { %v4673_v0 = vld [vmem:[%s4664_s23] sm:$0xff]  ;;  %v4680_v4 = vld [vmem:[%s4664_s23 + $0x8] sm:$0xff]  ;;  %v441_v31 = vld [vmem:[%s4670_s26 + $0x18] sm:$0xff]  ;;  %s5809_s29 = scalar_lea.vmem %s6264_s11, %s4658_s20  ;;  %s418_s24 = scalar_lea.vmem %s6263_s10, %s4658_s20 }
   0xf   : > { %v438_v1 = vld [vmem:[%s4670_s26] sm:$0xff]  ;;  %v620_v2 = vsel %vm442_vm0, %v4673_v0, 0.0  ;;  %v439_v5 = vld [vmem:[%s4670_s26 + $0x8] sm:$0xff]  ;;  %v623_v6 = vsel %vm442_vm0, %v4680_v4, 0.0  ;;  %v452_v34 = vsel %vm442_vm0, %v441_v31, 0.0  ;;  %v440_v37 = vld [vmem:[%s4670_s26 + $0x10] sm:$0xff] }
  0x10   : > { %v443_v3 = vsel %vm442_vm0, %v438_v1, 0.0  ;;  %621 = vadd.xlane.f32.xlu1 %v620_v2  ;;  %v446_v7 = vsel %vm442_vm0, %v439_v5, 0.0  ;;  %v618_v38 = vld [vmem:[%s4664_s23 + $0x10] sm:$0xff]  ;;  %v449_v39 = vsel %vm442_vm0, %v440_v37, 0.0  ;;  %v4721_v41 = vld [vmem:[%s4664_s23 + $0x18] sm:$0xff]  ;;  %593 = vmatpush.bf16.msra.mxu0 %v4212_v45  ;;  %v4214_v54 = vld [vmem:[%s6258_s5] sm:$0xff] }
  0x11   : > { %444 = vadd.xlane.f32.xlu0 %v443_v3  ;;  %v626_v40 = vsel %vm442_vm0, %v618_v38, 0.0  ;;  %v629_v42 = vsel %vm442_vm0, %v4721_v41, 0.0  ;;  %763 = vmatpush.bf16.msra.mxu1 %v4216_v46 }
  0x12   : > { %v4308_v9 = vpop.eup %4307 }
  0x13   : > { %v456_v10 = vmul.f32 64.0, %v4308_v9  ;;  %vm460_vm1 = vweird.f32 %v4308_v9 }
  0x14   : > { %594 = vmatpush.bf16.msra.mxu0 %v4211_v47 }
  0x15   : > { %v457_v11 = vsub.f32 1.0, %v456_v10  ;;  %764 = vmatpush.bf16.msra.mxu1 %v4215_v48 }
  0x17   : > { %v458_v12 = vmul.f32 %v4308_v9, %v457_v11 }
  0x18   : > { %624 = vadd.xlane.f32.xlu1 %v623_v6  ;;  %595 = vmatpush.bf16.msra.mxu0 %v4210_v53 }
  0x19   : > { %447 = vadd.xlane.f32.xlu0 %v446_v7  ;;  %v459_v13 = vadd.f32 %v4308_v9, %v458_v12  ;;  %765 = vmatpush.bf16.msra.mxu1 %v4214_v54 }
  0x1b   : > { %v4686_v14 = vsel %vm460_vm1, %v4308_v9, %v459_v13 }
  0x83   : > { %v622_v15 = vpop.xlane.xlu1 %621 }
  0x84   : > { %v445_v16 = vpop.xlane.xlu0 %444  ;;  %v632_v17 = vmul.f32 %v622_v15, %v4686_v14 }
  0x85   : > { %v462_v18 = vmul.f32 %v4686_v14, %v445_v16 }
  0x86   : > { %v4691_v19 = vsub.f32 %v4673_v0, %v632_v17 }
  0x87   : > { %v4693_v20 = vsub.f32 %v438_v1, %v462_v18 }
  0x88   : > { %v640_v21 = vmul.f32 %v4691_v19, %v4691_v19 }
  0x89   : > { %v470_v22 = vmul.f32 %v4693_v20, %v4693_v20 }
  0x8a   : > { %v644_v23 = vsel %vm442_vm0, %v640_v21, 0.0 }
  0x8b   : > { %v474_v24 = vsel %vm442_vm0, %v470_v22, 0.0  ;;  %v625_v25 = vpop.xlane.xlu1 %624  ;;  %645 = vadd.xlane.f32.xlu0 %v644_v23 }
  0x8c   : > { %475 = vadd.xlane.f32.xlu2 %v474_v24  ;;  %v448_v26 = vpop.xlane.xlu0 %447  ;;  %v633_v27 = vmul.f32 %v625_v25, %v4686_v14 }
  0x8d   : > { %v463_v28 = vmul.f32 %v4686_v14, %v448_v26 }
  0x8e   : > { %v4704_v29 = vsub.f32 %v4680_v4, %v633_v27 }
  0x8f   : > { %v4706_v30 = vsub.f32 %v439_v5, %v463_v28 }
  0x90   : > { %v641_v32 = vmul.f32 %v4704_v29, %v4704_v29 }
  0x91   : > { %v471_v33 = vmul.f32 %v4706_v30, %v4706_v30 }
  0x92   : > { %v647_v35 = vsel %vm442_vm0, %v641_v32, 0.0 }
  0x93   : > { %v477_v36 = vsel %vm442_vm0, %v471_v33, 0.0  ;;  %648 = vadd.xlane.f32.xlu1 %v647_v35  ;;  %453 = vadd.xlane.f32.xlu0 %v452_v34 }
  0x94   : > { %478 = vadd.xlane.f32.xlu2 %v477_v36 }
  0x9b   : > { %627 = vadd.xlane.f32.xlu1 %v626_v40 }
  0x9c   : > { %450 = vadd.xlane.f32.xlu2 %v449_v39 }
  0xa4   : > { %630 = vadd.xlane.f32.xlu2 %v629_v42 }
  0xfe   : > { %v646_v50 = vpop.xlane.xlu0 %645 }
  0xff   : > { %v476_v49 = vpop.xlane.xlu2 %475  ;;  %v656_v52 = vmul.f32 %v646_v50, %v4686_v14 }
 0x100   : > { %v486_v51 = vmul.f32 %v476_v49, %v4686_v14 }
 0x101   : > { %v660_v56 = vadd.f32 1e-05, %v656_v52 }
 0x102   : > { %v490_v55 = vadd.f32 1e-05, %v486_v51  ;;  %v4792_v51 = vld [vmem:[%s6255_s2 + $0x2] ss:$0 sm:$0xff] }
 0x103   : > { %vm670_vm3 = vweird.f32 %v660_v56 }
 0x104   : > { %4309 = vrsqrt.f32 %v490_v55  ;;  %vm500_vm5 = vweird.f32 %v490_v55 }
 0x105   : > { %4311 = vrsqrt.f32 %v660_v56 }
 0x106   : > { %v649_v57 = vpop.xlane.xlu1 %648  ;;  %v454_v61 = vpop.xlane.xlu0 %453 }
 0x107   : > { %v479_v58 = vpop.xlane.xlu2 %478  ;;  %v657_v59 = vmul.f32 %v649_v57, %v4686_v14  ;;  %v465_v62 = vmul.f32 %v4686_v14, %v454_v61 }
 0x108   : > { %v487_v60 = vmul.f32 %v479_v58, %v4686_v14 }
 0x109   : > { %v661_v1 = vadd.f32 1e-05, %v657_v59  ;;  %v4756_v6 = vsub.f32 %v441_v31, %v465_v62  ;;  %v4811_v59 = vld [vmem:[%s6255_s2 + $0x3] ss:$0 sm:$0xff] }
 0x10a   : > { %v4310_v63 = vpop.eup %4309  ;;  %v4754_v2 = vadd.f32 1e-05, %v487_v60 }
 0x10b   : > { %v4312_v3 = vpop.eup %4311  ;;  %v495_v5 = vmul.f32 %v4310_v63, %v490_v55  ;;  %4313 = vrsqrt.f32 %v661_v1  ;;  %v473_v9 = vmul.f32 %v4756_v6, %v4756_v6  ;;  %vm501_vm2 = vweird.f32 %v4310_v63  ;;  %v4801_v55 = vld [vmem:[%s6255_s2] ss:$0 sm:$0xff] }
 0x10c   : > { %v665_v7 = vmul.f32 %v4312_v3, %v660_v56  ;;  %4315 = vrsqrt.f32 %v4754_v2  ;;  %vm671_vm4 = vweird.f32 %v4312_v3  ;;  %vm4778_vm7 = vmor %vm500_vm5, %vm501_vm2  ;;  %vm680_vm8 = vweird.f32 %v661_v1 }
 0x10d   : > { %v496_v8 = vmul.f32 %v4310_v63, %v495_v5  ;;  %v483_v13 = vsel %vm442_vm0, %v473_v9, 0.0  ;;  %vm4773_vm6 = vmor %vm670_vm3, %vm671_vm4  ;;  %vm510_vm12 = vweird.f32 %v4754_v2 }
 0x10e   : > { %v666_v10 = vmul.f32 %v4312_v3, %v665_v7  ;;  %v628_v15 = vpop.xlane.xlu1 %627  ;;  %484 = vadd.xlane.f32.xlu1 %v483_v13 }
 0x10f   : > { %v497_v11 = vmul.f32 0.5, %v496_v8  ;;  %v451_v12 = vpop.xlane.xlu2 %450  ;;  %v634_v18 = vmul.f32 %v628_v15, %v4686_v14 }
 0x110   : > { %v667_v16 = vmul.f32 0.5, %v666_v10  ;;  %v464_v17 = vmul.f32 %v4686_v14, %v451_v12 }
 0x111   : > { %v498_v21 = vsub.f32 1.5, %v497_v11  ;;  %v4314_v22 = vpop.eup %4313  ;;  %v4766_v25 = vsub.f32 %v618_v38, %v634_v18 }
 0x112   : > { %v668_v23 = vsub.f32 1.5, %v667_v16  ;;  %v4764_v24 = vsub.f32 %v440_v37, %v464_v17  ;;  %v4316_v26 = vpop.eup %4315  ;;  %v675_v27 = vmul.f32 %v4314_v22, %v661_v1  ;;  %vm681_vm9 = vweird.f32 %v4314_v22 }
 0x113   : > { %v499_v28 = vmul.f32 %v4310_v63, %v498_v21  ;;  %v505_v32 = vmul.f32 %v4316_v26, %v4754_v2  ;;  %v642_v35 = vmul.f32 %v4766_v25, %v4766_v25  ;;  %vm511_vm10 = vweird.f32 %v4316_v26  ;;  %vm682_vm11 = vmor %vm680_vm8, %vm681_vm9 }
 0x114   : > { %v669_v31 = vmul.f32 %v4312_v3, %v668_v23  ;;  %v472_v33 = vmul.f32 %v4764_v24, %v4764_v24  ;;  %v676_v34 = vmul.f32 %v4314_v22, %v675_v27  ;;  %vm512_vm13 = vmor %vm510_vm12, %vm511_vm10  ;;  %vm809_vm12 = vcmask 130048  }
 0x115   : > { %v506_v37 = vmul.f32 %v4316_v26, %v505_v32  ;;  %v650_v44 = vsel %vm442_vm0, %v642_v35, 0.0  ;;  %v503_v45 = vsel %vm4778_vm7, %v4310_v63, %v499_v28  ;;  %v4819_v63 = vld [vmem:[%s6255_s2 + $0x1] ss:$0 sm:$0xff] }
 0x116   : > { %v480_v38 = vsel %vm442_vm0, %v472_v33, 0.0  ;;  %v673_v40 = vsel %vm4773_vm6, %v4312_v3, %v669_v31  ;;  %v677_v42 = vmul.f32 0.5, %v676_v34  ;;  %651 = vadd.xlane.f32.xlu2 %v650_v44  ;;  %v534_v53 = vmul.f32 %v503_v45, %v4693_v20 }
 0x117   : > { %481 = vadd.xlane.f32.xlu0 %v480_v38  ;;  %v631_v43 = vpop.xlane.xlu2 %630  ;;  %v507_v46 = vmul.f32 0.5, %v506_v37  ;;  %v704_v49 = vmul.f32 %v673_v40, %v4691_v19 }
 0x118   : > { %v635_v47 = vmul.f32 %v631_v43, %v4686_v14  ;;  %v678_v48 = vsub.f32 1.5, %v677_v42  ;;  %v539_v62 = vmul.f32 %v4801_v55, %v534_v53 }
 0x119   : > { %v508_v50 = vsub.f32 1.5, %v507_v46  ;;  %v709_v20 = vmul.f32 %v4792_v51, %v704_v49 }
 0x11a   : > { %v4795_v52 = vsub.f32 %v4721_v41, %v635_v47  ;;  %v679_v54 = vmul.f32 %v4314_v22, %v678_v48  ;;  %v544_v5 = vadd.f32 %v4819_v63, %v539_v62 }
 0x11b   : > { %v509_v19 = vmul.f32 %v4316_v26, %v508_v50  ;;  %v714_v2 = vadd.f32 %v4811_v59, %v709_v20 }
 0x11c   : > { %v643_v56 = vmul.f32 %v4795_v52, %v4795_v52  ;;  %v683_v57 = vsel %vm682_vm11, %v4314_v22, %v679_v54 }
 0x11d   : > { %v705_v41 = vmul.f32 %v683_v57, %v4704_v29  ;;  %v513_v58 = vsel %vm512_vm13, %v4316_v26, %v509_v19 }
 0x11e   : > { %v653_v60 = vsel %vm442_vm0, %v643_v56, 0.0  ;;  %v535_v61 = vmul.f32 %v513_v58, %v4706_v30 }
 0x11f   : > { %654 = vadd.xlane.f32.xlu0 %v653_v60  ;;  %v710_v29 = vmul.f32 %v4792_v51, %v705_v41 }
 0x120   : > { %v540_v1 = vmul.f32 %v4801_v55, %v535_v61 }
 0x121   : > { %v715_v3 = vadd.f32 %v4811_v59, %v710_v29 }
 0x122   : > { %v545_v30 = vadd.f32 %v4819_v63, %v540_v1 }
 0x123   : > { %v718_v7 = vpack.c.bf16 %v715_v3, %v714_v2 }
 0x124   : > { %v548_v8 = vpack.c.bf16 %v545_v30, %v544_v5 }
 0x125   : > { %3842 = vmatmul.msk.bf16.vlgmr.msra.gmra.mxu1 %vm442_vm0, %v718_v7 }
 0x126   : > { %3824 = vmatmul.msk.bf16.vlgmr.msra.gmra.mxu0 %vm442_vm0, %v548_v8 }
 0x181   : > { %v485_v9 = vpop.xlane.xlu1 %484 }
 0x182   : > { %v489_v11 = vmul.f32 %v485_v9, %v4686_v14 }
 0x184   : > { %v493_v16 = vadd.f32 1e-05, %v489_v11 }
 0x186   : > { %4317 = vrsqrt.f32 %v493_v16  ;;  %vm530_vm14 = vweird.f32 %v493_v16 }
 0x189   : > { %v652_v13 = vpop.xlane.xlu2 %651 }
 0x18a   : > { %v482_v10 = vpop.xlane.xlu0 %481  ;;  %v658_v15 = vmul.f32 %v652_v13, %v4686_v14 }
 0x18b   : > { %v488_v12 = vmul.f32 %v482_v10, %v4686_v14 }
 0x18c   : > { %v662_v18 = vadd.f32 1e-05, %v658_v15  ;;  %v4318_v27 = vpop.eup %4317 }
 0x18d   : > { %v492_v17 = vadd.f32 1e-05, %v488_v12  ;;  %v525_v32 = vmul.f32 %v4318_v27, %v493_v16  ;;  %vm531_vm15 = vweird.f32 %v4318_v27 }
 0x18e   : > { %vm690_vm3 = vweird.f32 %v662_v18  ;;  %vm4834_vm5 = vmor %vm530_vm14, %vm531_vm15 }
 0x18f   : > { %4319 = vrsqrt.f32 %v492_v17  ;;  %v526_v35 = vmul.f32 %v4318_v27, %v525_v32  ;;  %vm520_vm1 = vweird.f32 %v492_v17 }
 0x190   : > { %4321 = vrsqrt.f32 %v662_v18 }
 0x191   : > { %v527_v38 = vmul.f32 0.5, %v526_v35  ;;  %v4234_v35 = vld [vmem:[%s6260_s7 + $0x20] sm:$0xf0] }
 0x192   : > { %v655_v21 = vpop.xlane.xlu0 %654 }
 0x193   : > { %v659_v23 = vmul.f32 %v655_v21, %v4686_v14  ;;  %v528_v44 = vsub.f32 1.5, %v527_v38  ;;  %v3902_v38 = vld [vmem:[%s6260_s7] sm:$0xf] }
 0x195   : > { %v663_v28 = vadd.f32 1e-05, %v659_v23  ;;  %v4320_v31 = vpop.eup %4319  ;;  %v529_v53 = vmul.f32 %v4318_v27, %v528_v44 }
 0x196   : > { %v4322_v33 = vpop.eup %4321  ;;  %v515_v34 = vmul.f32 %v4320_v31, %v492_v17  ;;  %vm521_vm2 = vweird.f32 %v4320_v31 }
 0x197   : > { %4323 = vrsqrt.f32 %v663_v28  ;;  %v685_v36 = vmul.f32 %v4322_v33, %v662_v18  ;;  %vm691_vm4 = vweird.f32 %v4322_v33  ;;  %vm4838_vm6 = vmor %vm520_vm1, %vm521_vm2  ;;  %v533_v61 = vsel %vm4834_vm5, %v4318_v27, %v529_v53  ;;  %v4251_v53 = vld [vmem:[%s6262_s9 + $0x28] sm:$0xff] }
 0x198   : > { %v516_v37 = vmul.f32 %v4320_v31, %v515_v34  ;;  %vm692_vm7 = vmor %vm690_vm3, %vm691_vm4  ;;  %v537_v2 = vmul.f32 %v533_v61, %v4756_v6  ;;  %vm700_vm8 = vweird.f32 %v663_v28  ;;  %v611_v27 = vlaneseq  ;;  %v3914_v34 = vld [vmem:[%s6260_s7 + $0x18] sm:$0xf] }
 0x199   : > { %v686_v39 = vmul.f32 %v4322_v33, %v685_v36 }
 0x19a   : > { %v517_v42 = vmul.f32 0.5, %v516_v37  ;;  %v542_v9 = vmul.f32 %v4801_v55, %v537_v2  ;;  %v4891_v37 = vor.u32 %v4234_v35, %v3914_v34  ;;  %v4248_v2 = vld [vmem:[%s6262_s9 + $0x10] sm:$0xff] }
 0x19b   : > { %v687_v45 = vmul.f32 0.5, %v686_v39  ;;  %v4231_v39 = vld [vmem:[%s6260_s7 + $0x8] sm:$0xf0] }
 0x19c   : > { %v518_v50 = vsub.f32 1.5, %v517_v42  ;;  %v547_v12 = vadd.f32 %v4819_v63, %v542_v9  ;;  %v4253_v42 = vld [vmem:[%s6262_s9 + $0x38] sm:$0xff] }
 0x19d   : > { %v4324_v46 = vpop.eup %4323  ;;  %v688_v19 = vsub.f32 1.5, %v687_v45 }
 0x19e   : > { %v695_v56 = vmul.f32 %v4324_v46, %v663_v28  ;;  %v519_v20 = vmul.f32 %v4320_v31, %v518_v50  ;;  %vm701_vm9 = vweird.f32 %v4324_v46 }
 0x19f   : > { %v689_v62 = vmul.f32 %v4322_v33, %v688_v19  ;;  %vm702_vm10 = vmor %vm700_vm8, %vm701_vm9 }
 0x1a0   : > { %v696_v29 = vmul.f32 %v4324_v46, %v695_v56  ;;  %v523_v3 = vsel %vm4838_vm6, %v4320_v31, %v519_v20  ;;  %v612_v31 = vshrl.u32 %v611_v27, 7  ;;  %v4250_v56 = vld [vmem:[%s6262_s9 + $0x20] sm:$0xff]  ;;  %v4249_v20 = vld [vmem:[%s6262_s9 + $0x18] sm:$0xff] }
 0x1a1   : > { %v536_v5 = vmul.f32 %v523_v3, %v4764_v24  ;;  %v693_v30 = vsel %vm692_vm7, %v4322_v33, %v689_v62 }
 0x1a2   : > { %v767_v22 = vpop.f32.mrf.mxu1  ;;  %v697_v7 = vmul.f32 0.5, %v696_v29  ;;  %v706_v8 = vmul.f32 %v693_v30, %v4766_v25  ;;  %v4889_v36 = vadd.s32 8, %v612_v31 }
 0x1a3   : > { %v597_v26 = vpop.f32.mrf.mxu0  ;;  %v777_v41 = vpack.c.bf16 %v767_v22, %v767_v22  ;;  %v541_v6 = vmul.f32 %v4801_v55, %v536_v5 }
 0x1a4   : > { %v607_v40 = vpack.c.bf16 %v597_v26, %v597_v26  ;;  %v698_v11 = vsub.f32 1.5, %v697_v7  ;;  %v711_v16 = vmul.f32 %v4792_v51, %v706_v8  ;;  %vm615_vm11 = vcmp.lt.s32.totalorder %v4889_v36, 11  ;;  %v4247_v7 = vld [vmem:[%s6262_s9 + $0x8] sm:$0xff] }
 0x1a5   : > { %v783_v13 = vunpack.c.l.b16 %v777_v41  ;;  %v546_v15 = vadd.f32 %v4819_v63, %v541_v6  ;;  %v3938_v63 = vld [vmem:[%s6260_s7 + $0x48] sm:$0xf]  ;;  %v4922_v41 = vpack.c.bf16 %v4680_v4, %v4673_v0 }
 0x1a6   : > { %v789_v57 = vunpack.c.l.b16 %v607_v40  ;;  %v699_v24 = vmul.f32 %v4324_v46, %v698_v11  ;;  %v716_v55 = vadd.f32 %v4811_v59, %v711_v16  ;;  %v4901_v40 = vor.u32 %v4231_v39, %v3902_v38 }
 0x1a7   : > { %v549_v21 = vpack.c.bf16 %v547_v12, %v546_v15 }
 0x1a8   : > { %v703_v18 = vsel %vm702_vm10, %v4324_v46, %v699_v24 }
 0x1a9   : > { %v707_v25 = vmul.f32 %v703_v18, %v4795_v52  ;;  %3825 = vmatmul.msk.bf16.gmra.mxu0 %vm442_vm0, %v549_v21  ;;  %v4240_v52 = vld [vmem:[%s6260_s7 + $0x50] sm:$0xf0] }
 0x1aa   : > { %v769_v48 = vpop.f32.mrf.mxu1  ;;  %v4871_v28 = vor.u32 %v4240_v52, %v3938_v63 }
 0x1ab   : > { %v599_v43 = vpop.f32.mrf.mxu0  ;;  %v778_v60 = vpack.c.bf16 %v769_v48, %v769_v48  ;;  %v712_v22 = vmul.f32 %v4792_v51, %v707_v25  ;;  %v3926_v51 = vld [vmem:[%s6260_s7 + $0x30] sm:$0xf] }
 0x1ac   : > { %v608_v47 = vpack.c.bf16 %v599_v43, %v599_v43  ;;  %1281 = vmatpush.bf16.msrb.mxu1 %v4871_v28  ;;  %v4252_v48 = vld [vmem:[%s6262_s9 + $0x30] sm:$0xff] }
 0x1ad   : > { %v784_v10 = vunpack.c.l.b16 %v778_v60  ;;  %v717_v23 = vadd.f32 %v4811_v59, %v712_v22  ;;  %v4237_v59 = vld [vmem:[%s6260_s7 + $0x38] sm:$0xf0] }
 0x1ae   : > { %v790_v58 = vunpack.c.l.b16 %v608_v47  ;;  %v4880_v32 = vor.u32 %v4237_v59, %v3926_v51 }
 0x1af   : > { %v785_v17 = vpack.c.b16 %v784_v10, %v783_v13  ;;  %v719_v26 = vpack.c.bf16 %v717_v23, %v716_v55  ;;  %v4246_v10 = vld [vmem:[%s6262_s9] sm:$0xff] }
 0x1b0   : > { %v4845_v1 = vpack.c.b16 %v790_v58, %v789_v57  ;;  %1282 = vmatpush.bf16.msrb.mxu1 %v4880_v32 }
 0x1b1   : > { %3843 = vmatmul.msk.bf16.gmra.mxu1 %vm442_vm0, %v719_v26 }
 0x1b2   : > { %800 = vmatpush.bf16.xpose.msra.mxu2 %v4845_v1  ;;  %899 = vmatpush.bf16.msra.mxu3 %v4845_v1 }
 0x1b4   : > { %1283 = vmatpush.bf16.msrb.mxu1 %v4891_v37 }
 0x1b8   : > { %1284 = vmatpush.bf16.msrb.mxu1 %v4901_v40 }
 0x1b9   : > { %801 = vmatmul.bf16.vlgmr.msra.gmra.mxu2 %v785_v17 }
 0x1bc   : > { %1747 = vmatpush.bf16.msra.mxu1 %v4253_v42 }
 0x1c0   : > { %1748 = vmatpush.bf16.msra.mxu1 %v4252_v48  ;;  %v3880_v48 = vld [vmem:[%s6259_s6 + $0x38] sm:$0xf] }
 0x1c1   : > { %3948 = vmatmul.msk.bf16.vlgmr.msrb.gmra.mxu1 %vm442_vm0, %v4922_v41 }
 0x1c4   : > { %1749 = vmatpush.bf16.msra.mxu1 %v4251_v53 }
 0x1c8   : > { %1750 = vmatpush.bf16.msra.mxu1 %v4250_v56 }
 0x1cc   : > { %1751 = vmatpush.bf16.msra.mxu1 %v4249_v20 }
 0x1d0   : > { %1752 = vmatpush.bf16.msra.mxu1 %v4248_v2 }
 0x1d4   : > { %1753 = vmatpush.bf16.msra.mxu1 %v4247_v7 }
 0x1d8   : > { %1754 = vmatpush.bf16.msra.mxu1 %v4246_v10  ;;  %v4220_v10 = vld [vmem:[%s6259_s6 + $0x10] sm:$0xf0] }
 0x226   : > { %v602_v57 = vpop.f32.mrf.mxu0 }
 0x227   : > { %v609_v29 = vpack.c.bf16 %v602_v57, %v602_v57 }
 0x229   : > { %v914_v5 = vunpack.c.l.b16 %v609_v29 }
 0x22e   : > { %v604_v3 = vpop.f32.mrf.mxu0 }
 0x22f   : > { %v610_v30 = vpack.c.bf16 %v604_v3, %v604_v3 }
 0x231   : > { %v915_v8 = vunpack.c.l.b16 %v610_v30 }
 0x233   : > { %v4935_v9 = vpack.c.b16 %v915_v8, %v914_v5  ;;  %v3856_v8 = vld [vmem:[%s6259_s6 + $0x8] sm:$0xf] }
 0x235   : > { %925 = vmatpush.bf16.xpose.msrb.mxu3 %v4935_v9  ;;  %1023 = vmatpush.bf16.msrb.mxu2 %v4935_v9 }
 0x236   : > { %2028 = vmatpush.bf16.xpose.msrb.mxu1 %v4935_v9 }
 0x23c   : > { %v802_v33 = vpop.f32.mrf.mxu2 }
 0x23d   : > { %v810_v45 = vsel %vm809_vm12, %v802_v33, -inf }
 0x244   : > { %v804_v43 = vpop.f32.mrf.mxu2 }
 0x245   : > { %v808_v44 = vsel %vm615_vm11, %v804_v43, -1e+30 }
 0x246   : > { %v811_v46 = vsel %vm809_vm12, %v808_v44, -inf }
 0x247   : > { %v812_v47 = vmax.f32 %v810_v45, %v811_v46  ;;  %v3892_v46 = vld [vmem:[%s6259_s6 + $0x50] sm:$0xf] }
 0x249   : > { %v813_v49 = vrot.slane %v812_v47, 4 }
 0x24b   : > { %v814_v50 = vmax.f32 %v812_v47, %v813_v49  ;;  %v4229_v47 = vld [vmem:[%s6259_s6 + $0x58] sm:$0xf0] }
 0x24c   : > { %v4956_v53 = vor.u32 %v4229_v47, %v3892_v46  ;;  %v4242_v47 = vld [vmem:[%s6261_s8] sm:$0xff] }
 0x24d   : > { %v815_v54 = vrot.slane %v814_v50, 2 }
 0x24e   : > { %1167 = vmatpush.bf16.msrb.mxu0 %v4956_v53 }
 0x24f   : > { %v816_v19 = vmax.f32 %v814_v50, %v815_v54  ;;  %v4226_v54 = vld [vmem:[%s6259_s6 + $0x40] sm:$0xf0] }
 0x250   : > { %v4962_v57 = vor.u32 %v4226_v54, %v3880_v48 }
 0x251   : > { %v817_v58 = vrot.slane %v816_v19, 1 }
 0x252   : > { %1168 = vmatpush.bf16.msrb.mxu0 %v4962_v57 }
 0x253   : > { %v818_v60 = vmax.f32 %v816_v19, %v817_v58 }
 0x255   : > { %v819_v61 = vsub.f32 %v802_v33, %v818_v60  ;;  %v820_v62 = vsub.f32 %v808_v44, %v818_v60  ;;  %v3868_v60 = vld [vmem:[%s6259_s6 + $0x20] sm:$0xf] }
 0x257   : > { %v821_v0 = vmul.f32 1.442695, %v819_v61  ;;  %v823_v4 = vmul.f32 1.442695, %v820_v62  ;;  %v4223_v61 = vld [vmem:[%s6259_s6 + $0x28] sm:$0xf0] }
 0x258   : > { %v4971_v5 = vor.u32 %v4223_v61, %v3868_v60 }
 0x259   : > { %4325 = vpow2.f32 %v821_v0 }
 0x25a   : > { %4327 = vpow2.f32 %v823_v4  ;;  %1169 = vmatpush.bf16.msrb.mxu0 %v4971_v5 }
 0x25f   : > { %v4326_v11 = vpop.eup %4325 }
 0x260   : > { %v4328_v6 = vpop.eup %4327  ;;  %v825_v12 = vsel %vm809_vm12, %v4326_v11, 0.0 }
 0x261   : > { %v826_v13 = vsel %vm809_vm12, %v4328_v6, 0.0 }
 0x262   : > { %v827_v24 = vadd.f32 %v826_v13, %v825_v12 }
 0x264   : > { %v828_v15 = vrot.slane %v827_v24, 4 }
 0x266   : > { %v829_v16 = vadd.f32 %v828_v15, %v827_v24  ;;  %v3884_v15 = vld [vmem:[%s6259_s6 + $0x48] sm:$0xf] }
 0x268   : > { %v830_v17 = vrot.slane %v829_v16, 2 }
 0x26a   : > { %v831_v18 = vadd.f32 %v830_v17, %v829_v16  ;;  %v4228_v16 = vld [vmem:[%s6259_s6 + $0x50] sm:$0xf0] }
 0x26c   : > { %v832_v21 = vrot.slane %v831_v18, 1 }
 0x26e   : > { %v833_v25 = vadd.f32 %v832_v21, %v831_v18  ;;  %v4986_v21 = vor.u32 %v4220_v10, %v3856_v8 }
 0x270   : > { %4329 = vrcp.f32 %v833_v25  ;;  %v845_v26 = vand.u32 2147483648, %v833_v25  ;;  %v843_v52 = vand.u32 2147483647, %v833_v25  ;;  %vm839_vm14 = vweird.f32 %v833_v25  ;;  %1170 = vmatpush.bf16.msrb.mxu0 %v4986_v21 }
 0x272   : > { %v846_v51 = vor.u32 1.1754944e-38, %v845_v26  ;;  %vm844_vm1 = vcmp.eq.f32.partialorder %v843_v52, 8.507059e+37 }
 0x276   : > { %v4330_v22 = vpop.eup %4329 }
 0x277   : > { %v835_v55 = vmul.f32 %v4330_v22, %v833_v25  ;;  %vm840_vm13 = vweird.f32 %v4330_v22 }
 0x278   : > { %vm841_vm15 = vmor %vm839_vm14, %vm840_vm13 }
 0x279   : > { %v836_v23 = vsub.f32 1.0, %v835_v55  ;;  %v4991_v55 = vor.u32 %v4228_v16, %v3884_v15 }
 0x27b   : > { %v837_v63 = vmul.f32 %v4330_v22, %v836_v23 }
 0x27d   : > { %v838_v27 = vadd.f32 %v4330_v22, %v837_v63 }
 0x27f   : > { %v842_v59 = vsel %vm841_vm15, %v4330_v22, %v838_v27  ;;  %v4245_v22 = vld [vmem:[%s6261_s8 + $0x18] sm:$0xff] }
 0x280   : > { %v847_v31 = vsel %vm844_vm1, %v846_v51, %v842_v59  ;;  %1661 = vmatpush.bf16.msra.mxu0 %v4245_v22 }
 0x281   : > { %v849_v33 = vmul.f32 %v4328_v6, %v847_v31  ;;  %v848_v34 = vmul.f32 %v4326_v11, %v847_v31  ;;  %v772_v11 = vpop.f32.mrf.mxu1  ;;  %v3872_v31 = vld [vmem:[%s6259_s6 + $0x30] sm:$0xf] }
 0x282   : > { %v779_v63 = vpack.c.bf16 %v772_v11, %v772_v11 }
 0x283   : > { %v853_v35 = vsel %vm809_vm12, %v849_v33, 0.0  ;;  %v850_v38 = vsel %vm809_vm12, %v848_v34, 0.0 }
 0x284   : > { %854 = vadd.xlane.f32.xlu2 %v853_v35  ;;  %851 = vadd.xlane.f32.xlu1 %v850_v38  ;;  %v908_v27 = vunpack.c.l.b16 %v779_v63  ;;  %v4244_v35 = vld [vmem:[%s6261_s8 + $0x10] sm:$0xff]  ;;  %v3860_v38 = vld [vmem:[%s6259_s6 + $0x18] sm:$0xf] }
 0x285   : > { %1662 = vmatpush.bf16.msra.mxu0 %v4244_v35 }
 0x289   : > { %v774_v26 = vpop.f32.mrf.mxu1 }
 0x28a   : > { %v780_v52 = vpack.c.bf16 %v774_v26, %v774_v26 }
 0x28c   : > { %v909_v51 = vunpack.c.l.b16 %v780_v52 }
 0x28e   : > { %v910_v59 = vpack.c.b16 %v909_v51, %v908_v27 }
 0x2f7   : > { %v855_v39 = vpop.xlane.xlu2 %854  ;;  %v852_v42 = vpop.xlane.xlu1 %851 }
 0x2f8   : > { %v857_v43 = vadd.f32 1e-06, %v855_v39  ;;  %v856_v44 = vadd.f32 1e-06, %v852_v42  ;;  %v4222_v39 = vld [vmem:[%s6259_s6 + $0x20] sm:$0xf0] }
 0x2f9   : > { %v5014_v42 = vor.u32 %v4222_v39, %v3860_v38 }
 0x2fa   : > { %4331 = vrcp.f32 %v857_v43  ;;  %v884_v20 = vand.u32 2147483648, %v857_v43  ;;  %v869_v29 = vand.u32 2147483648, %v856_v44  ;;  %v882_v2 = vand.u32 2147483647, %v857_v43 }
 0x2fb   : > { %4333 = vrcp.f32 %v856_v44  ;;  %v867_v4 = vand.u32 2147483647, %v856_v44  ;;  %vm878_vm4 = vweird.f32 %v857_v43  ;;  %vm863_vm5 = vweird.f32 %v856_v44 }
 0x2fc   : > { %v885_v7 = vor.u32 1.1754944e-38, %v884_v20  ;;  %v870_v6 = vor.u32 1.1754944e-38, %v869_v29  ;;  %vm883_vm8 = vcmp.eq.f32.partialorder %v882_v2, 8.507059e+37 }
 0x2fd   : > { %vm868_vm9 = vcmp.eq.f32.partialorder %v867_v4, 8.507059e+37 }
 0x300   : > { %v4332_v45 = vpop.eup %4331 }
 0x301   : > { %v4334_v49 = vpop.eup %4333  ;;  %v874_v50 = vmul.f32 %v4332_v45, %v857_v43  ;;  %vm879_vm2 = vweird.f32 %v4332_v45  ;;  %v4243_v43 = vld [vmem:[%s6261_s8 + $0x8] sm:$0xff] }
 0x302   : > { %v859_v19 = vmul.f32 %v4334_v49, %v856_v44  ;;  %vm864_vm3 = vweird.f32 %v4334_v49  ;;  %vm880_vm6 = vmor %vm878_vm4, %vm879_vm2  ;;  %v3848_v44 = vld [vmem:[%s6259_s6] sm:$0xf]  ;;  %1663 = vmatpush.bf16.msra.mxu0 %v4243_v43 }
 0x303   : > { %v875_v56 = vsub.f32 1.0, %v874_v50  ;;  %vm865_vm7 = vmor %vm863_vm5, %vm864_vm3 }
 0x304   : > { %v860_v58 = vsub.f32 1.0, %v859_v19 }
 0x305   : > { %v876_v62 = vmul.f32 %v4332_v45, %v875_v56 }
 0x306   : > { %v861_v0 = vmul.f32 %v4334_v49, %v860_v58  ;;  %1664 = vmatpush.bf16.msra.mxu0 %v4242_v47 }
 0x307   : > { %v877_v3 = vadd.f32 %v4332_v45, %v876_v62 }
 0x308   : > { %v862_v30 = vadd.f32 %v4334_v49, %v861_v0 }
 0x309   : > { %v881_v12 = vsel %vm880_vm6, %v4332_v45, %v877_v3  ;;  %v4219_v45 = vld [vmem:[%s6259_s6 + $0x8] sm:$0xf0] }
 0x30a   : > { %v866_v13 = vsel %vm865_vm7, %v4334_v49, %v862_v30  ;;  %v886_v24 = vsel %vm883_vm8, %v885_v7, %v881_v12  ;;  %v5026_v46 = vor.u32 %v4219_v45, %v3848_v44  ;;  %v4227_v44 = vld [vmem:[%s6259_s6 + $0x4c] sm:$0xf]  ;;  %v3886_v45 = vld [vmem:[%s6259_s6 + $0x54] sm:$0xf0] }
 0x30b   : > { %v871_v17 = vsel %vm868_vm9, %v870_v6, %v866_v13  ;;  %v887_v18 = vmul.f32 %v886_v24, %v849_v33  ;;  %v4225_v33 = vld [vmem:[%s6259_s6 + $0x38] sm:$0xf0]  ;;  %v5056_v47 = vor.u32 %v4227_v44, %v3886_v45  ;;  %v3934_v45 = vld [vmem:[%s6260_s7 + $0x38] sm:$0xf] }
 0x30c   : > { %v872_v25 = vmul.f32 %v871_v17, %v848_v34  ;;  %v5002_v34 = vor.u32 %v4225_v33, %v3872_v31 }
 0x30d   : > { %1148 = vmatpush.bf16.msra.mxu2 %v5056_v47 }
 0x30e   : > { %v888_v23 = vpack.c.bf16 %v887_v18, %v872_v25 }
 0x310   : > { %3844 = vmatmul.msk.bf16.vlgmr.msra.gmra.mxu3 %vm809_vm12, %v888_v23 }
 0x311   : > { %1129 = vmatpush.bf16.msra.mxu3 %v4991_v55 }
 0x315   : > { %1130 = vmatpush.bf16.msra.mxu3 %v5002_v34 }
 0x319   : > { %1131 = vmatpush.bf16.msra.mxu3 %v5014_v42 }
 0x31d   : > { %1132 = vmatpush.bf16.msra.mxu3 %v5026_v46 }
 0x320   : > { %926 = vmatmul.bf16.vlgmr.msrb.gmra.mxu3 %v910_v59 }
 0x393   : > { %v901_v48 = vpop.f32.mrf.mxu3 }
 0x39b   : > { %v903_v49 = vpop.f32.mrf.mxu3 }
 0x39c   : > { %v5032_v50 = vpack.c.bf16 %v903_v49, %v901_v48  ;;  %v4224_v48 = vld [vmem:[%s6259_s6 + $0x34] sm:$0xf]  ;;  %v3874_v49 = vld [vmem:[%s6259_s6 + $0x3c] sm:$0xf0] }
 0x39e   : > { %3894 = vmatmul.msk.bf16.vlgmr.msra.gmra.mxu3 %vm442_vm0, %v5032_v50  ;;  %3898 = vmatmul.msk.bf16.vlgmr.msrb.gmra.mxu0 %vm442_vm0, %v5032_v50 }
 0x39f   : > { %2008 = vmatpush.bf16.msrb.mxu0 %v4845_v1 }
 0x3a3   : > { %v927_v54 = vpop.f32.mrf.mxu3 }
 0x3a4   : > { %v934_v58 = vsel %vm809_vm12, %v927_v54, -inf }
 0x3ab   : > { %v929_v19 = vpop.f32.mrf.mxu3 }
 0x3ac   : > { %v933_v56 = vsel %vm615_vm11, %v929_v19, -1e+30  ;;  %v4221_v19 = vld [vmem:[%s6259_s6 + $0x1c] sm:$0xf] }
 0x3ad   : > { %v935_v20 = vsel %vm809_vm12, %v933_v56, -inf }
 0x3ae   : > { %v936_v60 = vmax.f32 %v934_v58, %v935_v20  ;;  %v4218_v20 = vld [vmem:[%s6259_s6 + $0x4] sm:$0xf] }
 0x3b0   : > { %v937_v61 = vrot.slane %v936_v60, 4 }
 0x3b2   : > { %v938_v62 = vmax.f32 %v936_v60, %v937_v61  ;;  %v3850_v60 = vld [vmem:[%s6259_s6 + $0xc] sm:$0xf0] }
 0x3b3   : > { %v5083_v61 = vor.u32 %v4218_v20, %v3850_v60  ;;  %v4232_v20 = vld [vmem:[%s6260_s7 + $0x10] sm:$0xf0] }
 0x3b4   : > { %v939_v29 = vrot.slane %v938_v62, 2 }
 0x3b6   : > { %v940_v2 = vmax.f32 %v938_v62, %v939_v29 }
 0x3b8   : > { %v941_v0 = vrot.slane %v940_v2, 1 }
 0x3ba   : > { %v942_v4 = vmax.f32 %v940_v2, %v941_v0 }
 0x3bc   : > { %v943_v3 = vsub.f32 %v927_v54, %v942_v4  ;;  %v944_v30 = vsub.f32 %v933_v56, %v942_v4  ;;  %v5065_v54 = vor.u32 %v4224_v48, %v3874_v49  ;;  %v3862_v56 = vld [vmem:[%s6259_s6 + $0x24] sm:$0xf0]  ;;  %v4238_v48 = vld [vmem:[%s6260_s7 + $0x40] sm:$0xf0] }
 0x3bd   : > { %v5074_v58 = vor.u32 %v4221_v19, %v3862_v56  ;;  %v5112_v49 = vor.u32 %v4238_v48, %v3934_v45  ;;  %v3910_v56 = vld [vmem:[%s6260_s7 + $0x8] sm:$0xf] }
 0x3be   : > { %v945_v7 = vmul.f32 1.442695, %v943_v3  ;;  %v947_v8 = vmul.f32 1.442695, %v944_v30  ;;  %1149 = vmatpush.bf16.msra.mxu2 %v5065_v54  ;;  %v5130_v60 = vor.u32 %v4232_v20, %v3910_v56 }
 0x3c0   : > { %4335 = vpow2.f32 %v945_v7  ;;  %v4239_v7 = vld [vmem:[%s6260_s7 + $0x4c] sm:$0xf] }
 0x3c1   : > { %4337 = vpow2.f32 %v947_v8  ;;  %v3940_v8 = vld [vmem:[%s6260_s7 + $0x54] sm:$0xf0] }
 0x3c2   : > { %1150 = vmatpush.bf16.msra.mxu2 %v5074_v58 }
 0x3c6   : > { %v4336_v10 = vpop.eup %4335  ;;  %1151 = vmatpush.bf16.msra.mxu2 %v5083_v61 }
 0x3c7   : > { %v4338_v11 = vpop.eup %4337  ;;  %v949_v6 = vsel %vm809_vm12, %v4336_v10, 0.0 }
 0x3c8   : > { %v950_v12 = vsel %vm809_vm12, %v4338_v11, 0.0 }
 0x3c9   : > { %v951_v13 = vadd.f32 %v950_v12, %v949_v6 }
 0x3cb   : > { %v952_v24 = vrot.slane %v951_v13, 4 }
 0x3cd   : > { %v953_v15 = vadd.f32 %v952_v24, %v951_v13 }
 0x3cf   : > { %v954_v16 = vrot.slane %v953_v15, 2 }
 0x3d1   : > { %v955_v17 = vadd.f32 %v954_v16, %v953_v15 }
 0x3d3   : > { %v956_v18 = vrot.slane %v955_v17, 1 }
 0x3d5   : > { %v957_v25 = vadd.f32 %v956_v18, %v955_v17 }
 0x3d7   : > { %4339 = vrcp.f32 %v957_v25  ;;  %v969_v63 = vand.u32 2147483648, %v957_v25  ;;  %v967_v27 = vand.u32 2147483647, %v957_v25  ;;  %vm963_vm13 = vweird.f32 %v957_v25 }
 0x3d9   : > { %v970_v59 = vor.u32 1.1754944e-38, %v969_v63  ;;  %vm968_vm15 = vcmp.eq.f32.partialorder %v967_v27, 8.507059e+37 }
 0x3dd   : > { %v4340_v22 = vpop.eup %4339 }
 0x3de   : > { %v959_v23 = vmul.f32 %v4340_v22, %v957_v25  ;;  %vm964_vm10 = vweird.f32 %v4340_v22 }
 0x3df   : > { %vm965_vm14 = vmor %vm963_vm13, %vm964_vm10 }
 0x3e0   : > { %v960_v26 = vsub.f32 1.0, %v959_v23 }
 0x3e2   : > { %v961_v52 = vmul.f32 %v4340_v22, %v960_v26 }
 0x3e4   : > { %v962_v51 = vadd.f32 %v4340_v22, %v961_v52 }
 0x3e6   : > { %v966_v31 = vsel %vm965_vm14, %v4340_v22, %v962_v51  ;;  %v3946_v51 = vld [vmem:[%s6260_s7 + $0x50] sm:$0xf] }
 0x3e7   : > { %v971_v33 = vsel %vm968_vm15, %v970_v59, %v966_v31  ;;  %v4241_v59 = vld [vmem:[%s6260_s7 + $0x58] sm:$0xf0] }
 0x3e8   : > { %v5045_v35 = vmul.f32 %v4338_v11, %v971_v33  ;;  %v972_v38 = vmul.f32 %v4336_v10, %v971_v33  ;;  %v5092_v11 = vor.u32 %v4239_v7, %v3940_v8  ;;  %v4230_v8 = vld [vmem:[%s6260_s7 + $0x4] sm:$0xf] }
 0x3ea   : > { %v977_v39 = vsel %vm809_vm12, %v5045_v35, 0.0  ;;  %v974_v43 = vsel %vm809_vm12, %v972_v38, 0.0  ;;  %1300 = vmatpush.bf16.msrb.mxu3 %v5092_v11 }
 0x3eb   : > { %978 = vadd.xlane.f32.xlu1 %v977_v39  ;;  %975 = vadd.xlane.f32.xlu0 %v974_v43  ;;  %v5102_v43 = vor.u32 %v4241_v59, %v3946_v51 }
 0x45e   : > { %v979_v62 = vpop.xlane.xlu1 %978  ;;  %v976_v29 = vpop.xlane.xlu0 %975 }
 0x45f   : > { %v981_v2 = vadd.f32 1e-06, %v979_v62  ;;  %v980_v0 = vadd.f32 1e-06, %v976_v29  ;;  %v4236_v62 = vld [vmem:[%s6260_s7 + $0x34] sm:$0xf] }
 0x460   : > { %v3928_v29 = vld [vmem:[%s6260_s7 + $0x3c] sm:$0xf0] }
 0x461   : > { %4341 = vrcp.f32 %v981_v2  ;;  %v1008_v12 = vand.u32 2147483648, %v981_v2  ;;  %v1006_v15 = vand.u32 2147483647, %v981_v2  ;;  %v993_v16 = vand.u32 2147483648, %v980_v0 }
 0x462   : > { %4343 = vrcp.f32 %v980_v0  ;;  %v991_v18 = vand.u32 2147483647, %v980_v0  ;;  %vm1002_vm3 = vweird.f32 %v981_v2  ;;  %vm987_vm5 = vweird.f32 %v980_v0 }
 0x463   : > { %v1009_v22 = vor.u32 1.1754944e-38, %v1008_v12  ;;  %v994_v26 = vor.u32 1.1754944e-38, %v993_v16  ;;  %vm1007_vm7 = vcmp.eq.f32.partialorder %v1006_v15, 8.507059e+37  ;;  %v4547_v12 = vld [vmem:[%s6258_s5 + $0x18] sm:$0xff]  ;;  %v4550_v16 = vld [vmem:[%s6258_s5] sm:$0xff] }
 0x464   : > { %vm992_vm8 = vcmp.eq.f32.partialorder %v991_v18, 8.507059e+37 }
 0x467   : > { %v4342_v4 = vpop.eup %4341 }
 0x468   : > { %v4344_v3 = vpop.eup %4343  ;;  %v998_v30 = vmul.f32 %v4342_v4, %v981_v2  ;;  %vm1003_vm1 = vweird.f32 %v4342_v4  ;;  %v5142_v2 = vor.u32 %v4236_v62, %v3928_v29 }
 0x469   : > { %v983_v10 = vmul.f32 %v4344_v3, %v980_v0  ;;  %vm988_vm2 = vweird.f32 %v4344_v3  ;;  %vm1004_vm4 = vmor %vm1002_vm3, %vm1003_vm1  ;;  %v4233_v0 = vld [vmem:[%s6260_s7 + $0x1c] sm:$0xf] }
 0x46a   : > { %v999_v6 = vsub.f32 1.0, %v998_v30  ;;  %vm989_vm6 = vmor %vm987_vm5, %vm988_vm2  ;;  %1301 = vmatpush.bf16.msrb.mxu3 %v5142_v2  ;;  %v5158_v30 = vld [vmem:[%s4664_s23 + $0x18] sm:$0xff] }
 0x46b   : > { %v984_v13 = vsub.f32 1.0, %v983_v10  ;;  %v3904_v10 = vld [vmem:[%s6260_s7 + $0xc] sm:$0xf0] }
 0x46c   : > { %v1000_v24 = vmul.f32 %v4342_v4, %v999_v6  ;;  %v5169_v6 = vor.u32 %v4230_v8, %v3904_v10 }
 0x46d   : > { %v985_v17 = vmul.f32 %v4344_v3, %v984_v13  ;;  %v4548_v13 = vld [vmem:[%s6258_s5 + $0x10] sm:$0xff] }
 0x46e   : > { %v1001_v25 = vadd.f32 %v4342_v4, %v1000_v24  ;;  %v4549_v24 = vld [vmem:[%s6258_s5 + $0x8] sm:$0xff] }
 0x46f   : > { %v986_v23 = vadd.f32 %v4344_v3, %v985_v17 }
 0x470   : > { %v1005_v63 = vsel %vm1004_vm4, %v4342_v4, %v1001_v25  ;;  %v1134_v25 = vpop.f32.mrf.mxu3 }
 0x471   : > { %v990_v52 = vsel %vm989_vm6, %v4344_v3, %v986_v23  ;;  %v1010_v27 = vsel %vm1007_vm7, %v1009_v22, %v1005_v63  ;;  %v5155_v3 = vld [vmem:[%s4664_s23 + $0x10] sm:$0xff]  ;;  %v1286_v22 = vpop.f32.mrf.mxu1 }
 0x472   : > { %v995_v31 = vsel %vm992_vm8, %v994_v26, %v990_v52  ;;  %v1011_v33 = vmul.f32 %v1010_v27, %v5045_v35  ;;  %v3922_v35 = vld [vmem:[%s6260_s7 + $0x20] sm:$0xf]  ;;  %v1183_v7 = vpack.c.bf16 %v5158_v30, %v5155_v3 }
 0x473   : > { %v996_v39 = vmul.f32 %v995_v31, %v972_v38  ;;  %v4235_v38 = vld [vmem:[%s6260_s7 + $0x28] sm:$0xf0] }
 0x474   : > { %v5121_v19 = vor.u32 %v4235_v38, %v3922_v35  ;;  %3949 = vmatmul.msk.bf16.gmra.mxu1 %vm442_vm0, %v1183_v7 }
 0x475   : > { %v1012_v44 = vpack.c.bf16 %v1011_v33, %v996_v39 }
 0x477   : > { %3845 = vmatmul.msk.bf16.vlgmr.msrb.gmra.mxu2 %vm809_vm12, %v1012_v44 }
 0x478   : > { %1319 = vmatpush.bf16.msrb.mxu2 %v5102_v43  ;;  %v1136_v26 = vpop.f32.mrf.mxu3 }
 0x479   : > { %v1288_v63 = vpop.f32.mrf.mxu1 }
 0x47c   : > { %1320 = vmatpush.bf16.msrb.mxu2 %v5112_v49 }
 0x480   : > { %1321 = vmatpush.bf16.msrb.mxu2 %v5121_v19 }
 0x484   : > { %1322 = vmatpush.bf16.msrb.mxu2 %v5130_v60 }
 0x487   : > { %3896 = vmatmul.msk.bf16.vlgmr.msra.gmra.mxu2 %vm442_vm0, %v5032_v50  ;;  %v3916_v50 = vld [vmem:[%s6260_s7 + $0x24] sm:$0xf0] }
 0x488   : > { %1910 = vmatpush.bf16.xpose.msra.mxu2 %v4845_v1  ;;  %v5151_v4 = vor.u32 %v4233_v0, %v3916_v50 }
 0x48a   : > { %1302 = vmatpush.bf16.msrb.mxu3 %v5151_v4 }
 0x48e   : > { %1303 = vmatpush.bf16.msrb.mxu3 %v5169_v6 }
 0x492   : > { %1878 = vmatpush.bf16.msra.mxu3 %v4547_v12 }
 0x496   : > { %1879 = vmatpush.bf16.msra.mxu3 %v4548_v13 }
 0x49a   : > { %1880 = vmatpush.bf16.msra.mxu3 %v4549_v24 }
 0x49e   : > { %1881 = vmatpush.bf16.msra.mxu3 %v4550_v16 }
 0x4f1   : > { %v1291_v48 = vpop.f32.mrf.mxu1 }
 0x4fa   : > { %v1025_v15 = vpop.f32.mrf.mxu2 }
 0x502   : > { %v1027_v17 = vpop.f32.mrf.mxu2 }
 0x503   : > { %v1031_v18 = vpack.c.bf16 %v1027_v17, %v1025_v15 }
 0x505   : > { %3895 = vmatmul.msk.bf16.gmra.mxu3 %vm442_vm0, %v1031_v18  ;;  %3897 = vmatmul.msk.bf16.gmra.mxu2 %vm442_vm0, %v1031_v18 }
 0x506   : > { %3899 = vmatmul.msk.bf16.gmra.mxu0 %vm442_vm0, %v1031_v18 }
 0x50a   : > { %v1153_v59 = vpop.f32.mrf.mxu2 }
 0x512   : > { %v1155_v44 = vpop.f32.mrf.mxu2 }
 0x515   : > { %3950 = vmatmul.msk.bf16.vlgmr.msrb.gmra.mxu3 %vm442_vm0, %v4922_v41  ;;  %3952 = vmatmul.msk.bf16.vlgmr.msrb.gmra.mxu2 %vm442_vm0, %v4922_v41  ;;  %v3807_v41 = vld [vmem:[%s6256_s3 + $0x1] ss:$2 sm:$0x7] }
 0x516   : > { %2126 = vmatpush.bf16.msrb.mxu2 %v4935_v9  ;;  %2183 = vmatpush.bf16.msrb.mxu3 %v4956_v53  ;;  %v5204_v53 = vld [vmem:[%s6256_s3] ss:$2 sm:$0x7] }
 0x51a   : > { %2184 = vmatpush.bf16.msrb.mxu3 %v4962_v57  ;;  %v5207_v57 = vperm.slane %v5204_v53, 0 }
 0x51c   : > { %v1137_v27 = vadd.f32 %v1136_v26, %v5207_v57 }
 0x51e   : > { %2185 = vmatpush.bf16.msrb.mxu3 %v4971_v5  ;;  %v5209_v5 = vperm.slane %v3807_v41, 0 }
 0x520   : > { %v1287_v23 = vadd.f32 %v1286_v22, %v5209_v5  ;;  %v1289_v51 = vadd.f32 %v1288_v63, %v5209_v5  ;;  %v1292_v56 = vadd.f32 %v1291_v48, %v5209_v5  ;;  %v5229_v22 = vperm.slane %v5204_v53, 1 }
 0x522   : > { %2186 = vmatpush.bf16.msrb.mxu3 %v4986_v21  ;;  %v1135_v21 = vadd.f32 %v1134_v25, %v5207_v57  ;;  %v1335_v33 = vadd.f32 %v1289_v51, %v1137_v27  ;;  %v1154_v51 = vadd.f32 %v1153_v59, %v5229_v22 }
 0x524   : > { %v1334_v52 = vadd.f32 %v1287_v23, %v1135_v21  ;;  %v3955_v39 = vmul.f32 -1.442695, %v1335_v33  ;;  %v5231_v23 = vperm.slane %v3807_v41, 1 }
 0x525   : > { %3951 = vmatmul.msk.bf16.gmra.mxu3 %vm442_vm0, %v1183_v7  ;;  %3953 = vmatmul.msk.bf16.gmra.mxu2 %vm442_vm0, %v1183_v7  ;;  %v1293_v7 = vpop.f32.mrf.mxu1 }
 0x526   : > { %v3954_v31 = vmul.f32 -1.442695, %v1334_v52  ;;  %v1294_v12 = vadd.f32 %v1293_v7, %v5209_v5  ;;  %v5244_v7 = vperm.slane %v3807_v41, 2 }
 0x528   : > { %4345 = vpow2.f32 %v3954_v31 }
 0x529   : > { %4347 = vpow2.f32 %v3955_v39 }
 0x52e   : > { %v4346_v45 = vpop.eup %4345 }
 0x52f   : > { %v1350_v35 = vadd.f32 1.0, %v4346_v45  ;;  %v4348_v38 = vpop.eup %4347  ;;  %v1172_v45 = vpop.f32.mrf.mxu0 }
 0x530   : > { %v5219_v0 = vadd.f32 1.0, %v4348_v38 }
 0x531   : > { %4349 = vrcp.f32 %v1350_v35  ;;  %vm1359_vm10 = vweird.f32 %v1350_v35  ;;  %v1363_v59 = vand.u32 2147483647, %v1350_v35 }
 0x532   : > { %4351 = vrcp.f32 %v5219_v0  ;;  %vm1374_vm1 = vweird.f32 %v5219_v0 }
 0x533   : > { %vm1364_vm14 = vcmp.eq.f32.partialorder %v1363_v59, 8.507059e+37 }
 0x537   : > { %v4350_v10 = vpop.eup %4349 }
 0x538   : > { %v1355_v16 = vmul.f32 %v4350_v10, %v1350_v35  ;;  %v5226_v18 = vpop.eup %4351  ;;  %vm1360_vm9 = vweird.f32 %v4350_v10 }
 0x539   : > { %v1370_v27 = vmul.f32 %v5226_v18, %v5219_v0  ;;  %vm1361_vm13 = vmor %vm1359_vm10, %vm1360_vm9  ;;  %vm1375_vm15 = vweird.f32 %v5226_v18 }
 0x53a   : > { %v1356_v63 = vsub.f32 1.0, %v1355_v16  ;;  %v1156_v16 = vadd.f32 %v1155_v44, %v5229_v22  ;;  %vm1376_vm2 = vmor %vm1374_vm1, %vm1375_vm15 }
 0x53b   : > { %v1371_v38 = vsub.f32 1.0, %v1370_v27 }
 0x53c   : > { %v1357_v39 = vmul.f32 %v4350_v10, %v1356_v63 }
 0x588   : > { %v1139_v20 = vpop.f32.mrf.mxu3  ;;  %v5216_v62 = vpop.f32.mrf.mxu2 }
 0x589   : > { %v1140_v29 = vadd.f32 %v1139_v20, %v5207_v57 }
 0x58b   : > { %v1336_v50 = vadd.f32 %v1292_v56, %v1140_v29 }
 0x58d   : > { %v3956_v8 = vmul.f32 -1.442695, %v1336_v50 }
 0x58f   : > { %4353 = vpow2.f32 %v3956_v8  ;;  %v1358_v8 = vadd.f32 %v4350_v10, %v1357_v39 }
 0x590   : > { %v1141_v13 = vpop.f32.mrf.mxu3  ;;  %v5223_v24 = vpop.f32.mrf.mxu2 }
 0x591   : > { %v1142_v15 = vadd.f32 %v1141_v13, %v5207_v57 }
 0x593   : > { %v1337_v17 = vadd.f32 %v1294_v12, %v1142_v15  ;;  %v1365_v12 = vand.u32 2147483648, %v1350_v35  ;;  %v1372_v15 = vmul.f32 %v5226_v18, %v1371_v38  ;;  %v5254_v35 = vperm.slane %v5204_v53, 2 }
 0x594   : > { %v1380_v38 = vand.u32 2147483648, %v5219_v0  ;;  %v1378_v53 = vand.u32 2147483647, %v5219_v0 }
 0x595   : > { %v4354_v25 = vpop.eup %4353  ;;  %v3957_v21 = vmul.f32 -1.442695, %v1337_v17  ;;  %v1366_v63 = vor.u32 1.1754944e-38, %v1365_v12  ;;  %v1373_v44 = vadd.f32 %v5226_v18, %v1372_v15  ;;  %v1159_v15 = vadd.f32 %v5216_v62, %v5229_v22 }
 0x596   : > { %v5233_v26 = vadd.f32 1.0, %v4354_v25  ;;  %vm1379_vm3 = vcmp.eq.f32.partialorder %v1378_v53, 8.507059e+37 }
 0x597   : > { %4355 = vpow2.f32 %v3957_v21  ;;  %v1362_v21 = vsel %vm1361_vm13, %v4350_v10, %v1358_v8  ;;  %v1173_v8 = vadd.f32 %v1172_v45, %v5254_v35  ;;  %v1377_v59 = vsel %vm1376_vm2, %v5226_v18, %v1373_v44 }
 0x598   : > { %4357 = vrcp.f32 %v5233_v26  ;;  %v1305_v52 = vpop.f32.mrf.mxu3  ;;  %v1324_v33 = vpop.f32.mrf.mxu2  ;;  %v1367_v39 = vsel %vm1364_vm14, %v1366_v63, %v1362_v21  ;;  %vm1389_vm5 = vweird.f32 %v5233_v26 }
 0x599   : > { %v1306_v31 = vadd.f32 %v1305_v52, %v5231_v23  ;;  %v1325_v25 = vadd.f32 %v1324_v33, %v5244_v7 }
 0x59b   : > { %v1414_v48 = vadd.f32 %v1306_v31, %v1154_v51  ;;  %v1174_v31 = vpop.f32.mrf.mxu0  ;;  %v1494_v10 = vmul.f32 %v1367_v39, %v1325_v25 }
 0x59c   : > { %v1175_v18 = vadd.f32 %v1174_v31, %v5254_v35  ;;  %v1393_v31 = vand.u32 2147483647, %v5233_v26 }
 0x59d   : > { %v4356_v56 = vpop.eup %4355  ;;  %v3958_v20 = vmul.f32 -1.442695, %v1414_v48 }
 0x59e   : > { %v5240_v29 = vpop.eup %4357  ;;  %v5242_v50 = vadd.f32 1.0, %v4356_v56  ;;  %vm1394_vm7 = vcmp.eq.f32.partialorder %v1393_v31, 8.507059e+37 }
 0x59f   : > { %4359 = vpow2.f32 %v3958_v20  ;;  %v1385_v41 = vmul.f32 %v5240_v29, %v5233_v26  ;;  %vm1390_vm4 = vweird.f32 %v5240_v29 }
 0x5a0   : > { %v1307_v13 = vpop.f32.mrf.mxu3  ;;  %4361 = vrcp.f32 %v5242_v50  ;;  %v1326_v27 = vpop.f32.mrf.mxu2  ;;  %vm5288_vm6 = vmor %vm1389_vm5, %vm1390_vm4  ;;  %vm1404_vm15 = vweird.f32 %v5242_v50 }
 0x5a1   : > { %v1308_v17 = vadd.f32 %v1307_v13, %v5231_v23  ;;  %v1386_v56 = vsub.f32 1.0, %v1385_v41  ;;  %v1327_v12 = vadd.f32 %v1326_v27, %v5244_v7  ;;  %v1498_v41 = vadd.f32 %v1494_v10, %v1173_v8 }
 0x5a2   : > { %v1161_v8 = vadd.f32 %v5223_v24, %v5229_v22 }
 0x5a3   : > { %v1415_v52 = vadd.f32 %v1308_v17, %v1156_v16  ;;  %v1381_v16 = vor.u32 1.1754944e-38, %v1380_v38  ;;  %v1387_v0 = vmul.f32 %v5240_v29, %v1386_v56  ;;  %v1177_v27 = vpop.f32.mrf.mxu0  ;;  %v1395_v38 = vand.u32 2147483648, %v5233_v26 }
 0x5a4   : > { %v1178_v53 = vadd.f32 %v1177_v27, %v5254_v35 }
 0x5a5   : > { %v4360_v51 = vpop.eup %4359  ;;  %v3959_v48 = vmul.f32 -1.442695, %v1415_v52  ;;  %v1382_v25 = vsel %vm1379_vm3, %v1381_v16, %v1377_v59  ;;  %v1388_v62 = vadd.f32 %v5240_v29, %v1387_v0  ;;  %v1396_v24 = vor.u32 1.1754944e-38, %v1395_v38  ;;  %v4551_v59 = vld [vmem:[%s4664_s23] sm:$0xff] }
 0x5a6   : > { %v5259_v33 = vadd.f32 1.0, %v4360_v51  ;;  %v5263_v20 = vpop.eup %4361  ;;  %v1495_v63 = vmul.f32 %v1382_v25, %v1327_v12 }
 0x5a7   : > { %4363 = vpow2.f32 %v3959_v48  ;;  %v1400_v45 = vmul.f32 %v5263_v20, %v5242_v50  ;;  %v1392_v16 = vsel %vm5288_vm6, %v5240_v29, %v1388_v62  ;;  %vm1405_vm9 = vweird.f32 %v5263_v20 }
 0x5a8   : > { %4365 = vrcp.f32 %v5259_v33  ;;  %v1310_v13 = vpop.f32.mrf.mxu3  ;;  %v1329_v51 = vpop.f32.mrf.mxu2  ;;  %v1499_v12 = vadd.f32 %v1495_v63, %v1175_v18  ;;  %v1410_v29 = vand.u32 2147483648, %v5242_v50  ;;  %vm1439_vm10 = vweird.f32 %v5259_v33  ;;  %vm5320_vm1 = vmor %vm1404_vm15, %vm1405_vm9 }
 0x5a9   : > { %v1311_v17 = vadd.f32 %v1310_v13, %v5231_v23  ;;  %4367 = vtanh.f32 %v1498_v41  ;;  %v1401_v56 = vsub.f32 1.0, %v1400_v45  ;;  %v1330_v0 = vadd.f32 %v1329_v51, %v5244_v7 }
 0x5aa   : > { %v1445_v45 = vand.u32 2147483648, %v5259_v33 }
 0x5ab   : > { %v1416_v21 = vadd.f32 %v1311_v17, %v1159_v15  ;;  %v1443_v17 = vand.u32 2147483647, %v5259_v33  ;;  %v1402_v41 = vmul.f32 %v5263_v20, %v1401_v56 }
 0x5ac   : > { %v1446_v31 = vor.u32 1.1754944e-38, %v1445_v45 }
 0x5ad   : > { %v4364_v52 = vpop.eup %4363  ;;  %v3960_v44 = vmul.f32 -1.442695, %v1416_v21  ;;  %vm5303_vm13 = vcmp.eq.f32.partialorder %v1443_v17, 8.507059e+37  ;;  %v1411_v17 = vor.u32 1.1754944e-38, %v1410_v29 }
 0x5ae   : > { %v4366_v39 = vpop.eup %4365  ;;  %v5278_v48 = vadd.f32 1.0, %v4364_v52  ;;  %v1397_v52 = vsel %vm1394_vm7, %v1396_v24, %v1392_v16 }
 0x5af   : > { %v1435_v10 = vmul.f32 %v4366_v39, %v5259_v33  ;;  %4369 = vpow2.f32 %v3960_v44  ;;  %vm1440_vm8 = vweird.f32 %v4366_v39  ;;  %v4368_v63 = vpop.eup %4367  ;;  %v1496_v56 = vmul.f32 %v1397_v52, %v1330_v0 }
 0x5b0   : > { %4371 = vrcp.f32 %v5278_v48  ;;  %v1312_v13 = vpop.f32.mrf.mxu3  ;;  %vm1441_vm14 = vmor %vm1439_vm10, %vm1440_vm8  ;;  %vm1454_vm4 = vweird.f32 %v5278_v48 }
 0x5b1   : > { %v1436_v15 = vsub.f32 1.0, %v1435_v10  ;;  %v1313_v26 = vadd.f32 %v1312_v13, %v5231_v23  ;;  %4373 = vtanh.f32 %v1499_v12  ;;  %v1403_v10 = vadd.f32 %v5263_v20, %v1402_v41 }
 0x5b2   : > { %v1506_v13 = vsub.f32 %v4551_v59, %v4368_v63  ;;  %v1500_v24 = vadd.f32 %v1496_v56, %v1178_v53 }
 0x5b3   : > { %v1417_v25 = vadd.f32 %v1313_v26, %v1161_v8  ;;  %v1437_v21 = vmul.f32 %v4366_v39, %v1436_v15  ;;  %v1331_v8 = vpop.f32.mrf.mxu2  ;;  %v1408_v15 = vand.u32 2147483647, %v5242_v50  ;;  %v1407_v45 = vsel %vm5320_vm1, %v5263_v20, %v1403_v10 }
 0x5b4   : > { %v1332_v41 = vadd.f32 %v1331_v8, %v5244_v7  ;;  %v1460_v50 = vand.u32 2147483648, %v5278_v48  ;;  %v4552_v8 = vld [vmem:[%s4664_s23 + $0x8] sm:$0xff] }
 0x5b5   : > { %v4370_v18 = vpop.eup %4369  ;;  %v3961_v27 = vmul.f32 -1.442695, %v1417_v25  ;;  %v1438_v44 = vadd.f32 %v4366_v39, %v1437_v21  ;;  %vm1409_vm3 = vcmp.eq.f32.partialorder %v1408_v15, 8.507059e+37 }
 0x5b6   : > { %v4372_v62 = vpop.eup %4371  ;;  %v5307_v38 = vadd.f32 1.0, %v4370_v18  ;;  %v1458_v18 = vand.u32 2147483647, %v5278_v48  ;;  %v1412_v53 = vsel %vm1409_vm3, %v1411_v17, %v1407_v45  ;;  %v1461_v10 = vor.u32 1.1754944e-38, %v1460_v50 }
 0x5b7   : > { %v1450_v33 = vmul.f32 %v4372_v62, %v5278_v48  ;;  %4375 = vpow2.f32 %v3961_v27  ;;  %v1442_v12 = vsel %vm1441_vm14, %v4366_v39, %v1438_v44  ;;  %v4374_v25 = vpop.eup %4373  ;;  %vm1455_vm2 = vweird.f32 %v4372_v62  ;;  %v1179_v27 = vpop.f32.mrf.mxu0 }
 0x5b8   : > { %4377 = vrcp.f32 %v5307_v38  ;;  %v1447_v16 = vsel %vm5303_vm13, %v1446_v31, %v1442_v12  ;;  %vm1456_vm5 = vmor %vm1454_vm4, %vm1455_vm2  ;;  %vm1459_vm6 = vcmp.eq.f32.partialorder %v1458_v18, 8.507059e+37  ;;  %v1507_v12 = vsub.f32 %v4552_v8, %v4374_v25 }
 0x5b9   : > { %v1510_v0 = vmul.f32 %v1506_v13, %v1447_v16  ;;  %v1451_v39 = vsub.f32 1.0, %v1450_v33  ;;  %4379 = vtanh.f32 %v1500_v24  ;;  %v1180_v59 = vadd.f32 %v1179_v27, %v5254_v35 }
 0x5ba   : > { %v1475_v26 = vand.u32 2147483648, %v5307_v38  ;;  %vm1469_vm8 = vweird.f32 %v5307_v38 }
 0x5bb   : > { %v5329_v21 = vadd.f32 %v4368_v63, %v1510_v0  ;;  %v1452_v52 = vmul.f32 %v4372_v62, %v1451_v39  ;;  %v1497_v63 = vmul.f32 %v1412_v53, %v1332_v41  ;;  %v1473_v39 = vand.u32 2147483647, %v5307_v38 }
 0x5bc   : > { %v1476_v50 = vor.u32 1.1754944e-38, %v1475_v26 }
 0x5bd   : > { %v4376_v29 = vpop.eup %4375  ;;  %v1518_v44 = vsel %vm442_vm0, %v5329_v21, 0.0  ;;  %v1453_v51 = vadd.f32 %v4372_v62, %v1452_v52  ;;  %v1501_v48 = vadd.f32 %v1497_v63, %v1180_v59  ;;  %vm1474_vm10 = vcmp.eq.f32.partialorder %v1473_v39, 8.507059e+37 }
 0x5be   : > { %v4378_v20 = vpop.eup %4377  ;;  %v1433_v56 = vadd.f32 1.0, %v4376_v29  ;;  %1519 = vadd.xlane.f32.xlu2 %v1518_v44 }
 0x5bf   : > { %v1465_v31 = vmul.f32 %v4378_v20, %v5307_v38  ;;  %v1457_v33 = vsel %vm1456_vm5, %v4372_v62, %v1453_v51  ;;  %vm1470_vm7 = vweird.f32 %v4378_v20  ;;  %v4380_v24 = vpop.eup %4379 }
 0x5c0   : > { %4381 = vrcp.f32 %v1433_v56  ;;  %v1462_v13 = vsel %vm1459_vm6, %v1461_v10, %v1457_v33  ;;  %vm1471_vm9 = vmor %vm1469_vm8, %vm1470_vm7  ;;  %v1490_v44 = vand.u32 2147483648, %v1433_v56  ;;  %v1488_v10 = vand.u32 2147483647, %v1433_v56 }
 0x5c1   : > { %v1466_v15 = vsub.f32 1.0, %v1465_v31  ;;  %v1511_v16 = vmul.f32 %v1507_v12, %v1462_v13  ;;  %4383 = vtanh.f32 %v1501_v48  ;;  %vm1484_vm14 = vweird.f32 %v1433_v56 }
 0x5c2   : > { %vm1489_vm1 = vcmp.eq.f32.partialorder %v1488_v10, 8.507059e+37 }
 0x5c3   : > { %v5339_v17 = vadd.f32 %v4374_v25, %v1511_v16  ;;  %v1467_v0 = vmul.f32 %v4378_v20, %v1466_v15  ;;  %v1508_v25 = vsub.f32 %v5155_v3, %v4380_v24 }
 0x5c5   : > { %v1521_v62 = vsel %vm442_vm0, %v5339_v17, 0.0  ;;  %v1468_v41 = vadd.f32 %v4378_v20, %v1467_v0 }
 0x5c6   : > { %v4382_v45 = vpop.eup %4381  ;;  %1522 = vadd.xlane.f32.xlu0 %v1521_v62 }
 0x5c7   : > { %v1480_v52 = vmul.f32 %v4382_v45, %v1433_v56  ;;  %v1472_v18 = vsel %vm1471_vm9, %v4378_v20, %v1468_v41  ;;  %vm1485_vm13 = vweird.f32 %v4382_v45  ;;  %v4384_v38 = vpop.eup %4383  ;;  %v1491_v20 = vor.u32 1.1754944e-38, %v1490_v44 }
 0x5c8   : > { %v1477_v29 = vsel %vm1474_vm10, %v1476_v50, %v1472_v18  ;;  %vm1486_vm15 = vmor %vm1484_vm14, %vm1485_vm13  ;;  %v1509_v3 = vsub.f32 %v5158_v30, %v4384_v38 }
 0x5c9   : > { %v1481_v27 = vsub.f32 1.0, %v1480_v52  ;;  %v1512_v53 = vmul.f32 %v1508_v25, %v1477_v29 }
 0x5cb   : > { %v5346_v51 = vadd.f32 %v4380_v24, %v1512_v53  ;;  %v1482_v63 = vmul.f32 %v4382_v45, %v1481_v27 }
 0x5cd   : > { %v1524_v31 = vsel %vm442_vm0, %v5346_v51, 0.0  ;;  %v1483_v33 = vadd.f32 %v4382_v45, %v1482_v63 }
 0x5ce   : > { %1525 = vadd.xlane.f32.xlu1 %v1524_v31 }
 0x5cf   : > { %v1487_v8 = vsel %vm1486_vm15, %v4382_v45, %v1483_v33 }
 0x5d0   : > { %v1492_v12 = vsel %vm1489_vm1, %v1491_v20, %v1487_v8 }
 0x5d1   : > { %v1513_v59 = vmul.f32 %v1509_v3, %v1492_v12 }
 0x5d3   : > { %v5351_v13 = vadd.f32 %v4384_v38, %v1513_v59 }
 0x5d5   : > { %v1527_v15 = vsel %vm442_vm0, %v5351_v13, 0.0 }
 0x5d6   : > { %1528 = vadd.xlane.f32.xlu2 %v1527_v15 }
 0x631   : > { %v1520_v16 = vpop.xlane.xlu2 %1519 }
 0x632   : > { %v1530_v48 = vmul.f32 %v1520_v16, %v4686_v14 }
 0x634   : > { %v1534_v56 = vsub.f32 %v5329_v21, %v1530_v48 }
 0x636   : > { %v1538_v26 = vmul.f32 %v1534_v56, %v1534_v56 }
 0x638   : > { %v1542_v0 = vsel %vm442_vm0, %v1538_v26, 0.0 }
 0x639   : > { %v1523_v39 = vpop.xlane.xlu0 %1522  ;;  %1543 = vadd.xlane.f32.xlu0 %v1542_v0 }
 0x63a   : > { %v1531_v30 = vmul.f32 %v1523_v39, %v4686_v14 }
 0x63c   : > { %v1535_v24 = vsub.f32 %v5339_v17, %v1531_v30 }
 0x63e   : > { %v1539_v62 = vmul.f32 %v1535_v24, %v1535_v24 }
 0x640   : > { %v1545_v41 = vsel %vm442_vm0, %v1539_v62, 0.0 }
 0x641   : > { %1546 = vadd.xlane.f32.xlu1 %v1545_v41  ;;  %v1526_v45 = vpop.xlane.xlu1 %1525 }
 0x642   : > { %v1532_v50 = vmul.f32 %v1526_v45, %v4686_v14 }
 0x644   : > { %v5363_v52 = vsub.f32 %v5346_v51, %v1532_v50 }
 0x646   : > { %v1540_v18 = vmul.f32 %v5363_v52, %v5363_v52 }
 0x648   : > { %v1548_v25 = vsel %vm442_vm0, %v1540_v18, 0.0 }
 0x649   : > { %v1529_v29 = vpop.xlane.xlu2 %1528  ;;  %1549 = vadd.xlane.f32.xlu2 %v1548_v25 }
 0x64a   : > { %v1533_v27 = vmul.f32 %v1529_v29, %v4686_v14 }
 0x64c   : > { %v5370_v53 = vsub.f32 %v5351_v13, %v1533_v27 }
 0x64e   : > { %v1541_v44 = vmul.f32 %v5370_v53, %v5370_v53 }
 0x650   : > { %v1551_v63 = vsel %vm442_vm0, %v1541_v44, 0.0  ;;  %v4303_v44 = vld [vmem:[%s6255_s2 + $0x4] ss:$0 sm:$0xff] }
 0x651   : > { %1552 = vadd.xlane.f32.xlu0 %v1551_v63 }
 0x6ac   : > { %v1544_v10 = vpop.xlane.xlu0 %1543 }
 0x6ad   : > { %v1554_v38 = vmul.f32 %v1544_v10, %v4686_v14 }
 0x6af   : > { %v1558_v31 = vadd.f32 1e-05, %v1554_v38 }
 0x6b1   : > { %4385 = vrsqrt.f32 %v1558_v31  ;;  %vm1568_vm3 = vweird.f32 %v1558_v31 }
 0x6b4   : > { %v1547_v33 = vpop.xlane.xlu1 %1546 }
 0x6b5   : > { %v1555_v20 = vmul.f32 %v1547_v33, %v4686_v14 }
 0x6b7   : > { %v4386_v8 = vpop.eup %4385  ;;  %v1559_v3 = vadd.f32 1e-05, %v1555_v20 }
 0x6b8   : > { %v1563_v12 = vmul.f32 %v4386_v8, %v1558_v31  ;;  %vm1569_vm2 = vweird.f32 %v4386_v8 }
 0x6b9   : > { %4387 = vrsqrt.f32 %v1559_v3  ;;  %vm1570_vm4 = vmor %vm1568_vm3, %vm1569_vm2  ;;  %vm1578_vm6 = vweird.f32 %v1559_v3 }
 0x6ba   : > { %v1564_v59 = vmul.f32 %v4386_v8, %v1563_v12 }
 0x6bc   : > { %v1565_v15 = vmul.f32 0.5, %v1564_v59  ;;  %v1550_v16 = vpop.xlane.xlu2 %1549 }
 0x6bd   : > { %v1556_v48 = vmul.f32 %v1550_v16, %v4686_v14 }
 0x6be   : > { %v1566_v26 = vsub.f32 1.5, %v1565_v15 }
 0x6bf   : > { %v4388_v0 = vpop.eup %4387  ;;  %v1560_v39 = vadd.f32 1e-05, %v1556_v48 }
 0x6c0   : > { %v1567_v30 = vmul.f32 %v4386_v8, %v1566_v26  ;;  %v1573_v62 = vmul.f32 %v4388_v0, %v1559_v3  ;;  %vm1579_vm5 = vweird.f32 %v4388_v0 }
 0x6c1   : > { %4389 = vrsqrt.f32 %v1560_v39  ;;  %vm1580_vm7 = vmor %vm1578_vm6, %vm1579_vm5  ;;  %vm1588_vm9 = vweird.f32 %v1560_v39 }
 0x6c2   : > { %v1574_v41 = vmul.f32 %v4388_v0, %v1573_v62  ;;  %v1571_v45 = vsel %vm1570_vm4, %v4386_v8, %v1567_v30  ;;  %v4304_v8 = vld [vmem:[%s6255_s2 + $0x5] ss:$0 sm:$0xff] }
 0x6c3   : > { %v1602_v63 = vmul.f32 %v1571_v45, %v1534_v56 }
 0x6c4   : > { %v1575_v50 = vmul.f32 0.5, %v1574_v41  ;;  %v1553_v18 = vpop.xlane.xlu0 %1552 }
 0x6c5   : > { %v1557_v25 = vmul.f32 %v1553_v18, %v4686_v14  ;;  %v1607_v12 = vmul.f32 %v4303_v44, %v1602_v63 }
 0x6c6   : > { %v1576_v29 = vsub.f32 1.5, %v1575_v50 }
 0x6c7   : > { %v4390_v27 = vpop.eup %4389  ;;  %v1561_v10 = vadd.f32 1e-05, %v1557_v25  ;;  %v1612_v30 = vadd.f32 %v4304_v8, %v1607_v12 }
 0x6c8   : > { %v1577_v38 = vmul.f32 %v4388_v0, %v1576_v29  ;;  %v1583_v33 = vmul.f32 %v4390_v27, %v1560_v39  ;;  %vm1589_vm8 = vweird.f32 %v4390_v27 }
 0x6c9   : > { %4391 = vrsqrt.f32 %v1561_v10  ;;  %vm1590_vm10 = vmor %vm1588_vm9, %vm1589_vm8  ;;  %vm1598_vm14 = vweird.f32 %v1561_v10 }
 0x6ca   : > { %v1581_v31 = vsel %vm1580_vm7, %v4388_v0, %v1577_v38  ;;  %v1584_v20 = vmul.f32 %v4390_v27, %v1583_v33 }
 0x6cb   : > { %v1603_v59 = vmul.f32 %v1581_v31, %v1535_v24 }
 0x6cc   : > { %v1585_v15 = vmul.f32 0.5, %v1584_v20 }
 0x6cd   : > { %v1608_v16 = vmul.f32 %v4303_v44, %v1603_v59 }
 0x6ce   : > { %v1586_v48 = vsub.f32 1.5, %v1585_v15 }
 0x6cf   : > { %v4392_v26 = vpop.eup %4391  ;;  %v1613_v56 = vadd.f32 %v4304_v8, %v1608_v16 }
 0x6d0   : > { %v1587_v62 = vmul.f32 %v4390_v27, %v1586_v48  ;;  %v1593_v3 = vmul.f32 %v4392_v26, %v1561_v10  ;;  %vm1599_vm13 = vweird.f32 %v4392_v26 }
 0x6d1   : > { %v1616_v41 = vpack.c.bf16 %v1613_v56, %v1612_v30  ;;  %vm1600_vm15 = vmor %vm1598_vm14, %vm1599_vm13 }
 0x6d2   : > { %v1594_v45 = vmul.f32 %v4392_v26, %v1593_v3  ;;  %v1591_v0 = vsel %vm1590_vm10, %v4390_v27, %v1587_v62 }
 0x6d3   : > { %3978 = vmatmul.msk.bf16.vlgmr.msra.gmra.mxu0 %vm442_vm0, %v1616_v41  ;;  %v1604_v18 = vmul.f32 %v1591_v0, %v5363_v52 }
 0x6d4   : > { %v1595_v50 = vmul.f32 0.5, %v1594_v45  ;;  %2145 = vmatpush.bf16.msra.mxu0 %v4991_v55 }
 0x6d5   : > { %v1609_v63 = vmul.f32 %v4303_v44, %v1604_v18 }
 0x6d6   : > { %v1596_v24 = vsub.f32 1.5, %v1595_v50 }
 0x6d7   : > { %v1614_v27 = vadd.f32 %v4304_v8, %v1609_v63 }
 0x6d8   : > { %v1597_v25 = vmul.f32 %v4392_v26, %v1596_v24  ;;  %2146 = vmatpush.bf16.msra.mxu0 %v5002_v34  ;;  %v4305_v34 = vld [vmem:[%s6255_s2 + $0x6] ss:$0 sm:$0xff] }
 0x6da   : > { %v1601_v29 = vsel %vm1600_vm15, %v4392_v26, %v1597_v25  ;;  %v4306_v26 = vld [vmem:[%s6255_s2 + $0x7] ss:$0 sm:$0xff] }
 0x6db   : > { %v1605_v39 = vmul.f32 %v1601_v29, %v5370_v53 }
 0x6dc   : > { %2147 = vmatpush.bf16.msra.mxu0 %v5014_v42 }
 0x6dd   : > { %v1610_v38 = vmul.f32 %v4303_v44, %v1605_v39 }
 0x6df   : > { %v1615_v33 = vadd.f32 %v4304_v8, %v1610_v38 }
 0x6e0   : > { %2148 = vmatpush.bf16.msra.mxu0 %v5026_v46 }
 0x6e1   : > { %v1617_v55 = vpack.c.bf16 %v1615_v33, %v1614_v27 }
 0x6e3   : > { %3979 = vmatmul.msk.bf16.gmra.mxu0 %vm442_vm0, %v1617_v55 }
 0x750   : > { %v1666_v52 = vpop.f32.mrf.mxu0 }
 0x751   : > { %v1667_v10 = vadd.f32 %v4305_v34, %v1666_v52 }
 0x753   : > { %v1676_v53 = vmax.f32 %v1667_v10, 0.0 }
 0x758   : > { %v1668_v31 = vpop.f32.mrf.mxu0 }
 0x759   : > { %v1669_v20 = vadd.f32 %v4305_v34, %v1668_v31 }
 0x75b   : > { %v1677_v12 = vmax.f32 %v1669_v20, 0.0 }
 0x75d   : > { %v1680_v59 = vpack.c.bf16 %v1677_v12, %v1676_v53 }
 0x75f   : > { %1755 = vmatmul.bf16.vlgmr.msra.gmra.mxu1 %v1680_v59 }
 0x760   : > { %v1671_v42 = vpop.f32.mrf.mxu0  ;;  %2164 = vmatpush.bf16.msra.mxu1 %v5056_v47 }
 0x761   : > { %v1672_v46 = vadd.f32 %v4305_v34, %v1671_v42 }
 0x763   : > { %v1678_v15 = vmax.f32 %v1672_v46, 0.0 }
 0x764   : > { %2165 = vmatpush.bf16.msra.mxu1 %v5065_v54 }
 0x768   : > { %v1673_v44 = vpop.f32.mrf.mxu0  ;;  %2166 = vmatpush.bf16.msra.mxu1 %v5074_v58 }
 0x769   : > { %v1674_v8 = vadd.f32 %v4305_v34, %v1673_v44 }
 0x76b   : > { %v1679_v16 = vmax.f32 %v1674_v8, 0.0 }
 0x76c   : > { %2167 = vmatpush.bf16.msra.mxu1 %v5083_v61 }
 0x76d   : > { %v1681_v48 = vpack.c.bf16 %v1679_v16, %v1678_v15 }
 0x76f   : > { %1760 = vmatmul.bf16.gmra.mxu1 %v1681_v48 }
 0x7dc   : > { %v1756_v30 = vpop.f32.mrf.mxu1 }
 0x7dd   : > { %v1757_v56 = vadd.f32 %v4306_v26, %v1756_v30 }
 0x7df   : > { %v5404_v47 = vadd.f32 %v1757_v56, %v5329_v21 }
 0x7e1   : > { %v1770_v54 = vsel %vm442_vm0, %v5404_v47, 0.0 }
 0x7e2   : > { %1771 = vadd.xlane.f32.xlu1 %v1770_v54 }
 0x7e4   : > { %v1758_v58 = vpop.f32.mrf.mxu1 }
 0x7e5   : > { %v1759_v62 = vadd.f32 %v4306_v26, %v1758_v58 }
 0x7e7   : > { %v5409_v3 = vadd.f32 %v1759_v62, %v5339_v17 }
 0x7e9   : > { %v1773_v61 = vsel %vm442_vm0, %v5409_v3, 0.0 }
 0x7ea   : > { %1774 = vadd.xlane.f32.xlu2 %v1773_v61 }
 0x7ec   : > { %v1761_v41 = vpop.f32.mrf.mxu1 }
 0x7ed   : > { %v1762_v45 = vadd.f32 %v4306_v26, %v1761_v41 }
 0x7ef   : > { %v5414_v0 = vadd.f32 %v1762_v45, %v5346_v51 }
 0x7f1   : > { %v1776_v21 = vsel %vm442_vm0, %v5414_v0, 0.0 }
 0x7f2   : > { %1777 = vadd.xlane.f32.xlu0 %v1776_v21 }
 0x7f4   : > { %v1763_v50 = vpop.f32.mrf.mxu1 }
 0x7f5   : > { %v1764_v24 = vadd.f32 %v4306_v26, %v1763_v50 }
 0x7f7   : > { %v5419_v18 = vadd.f32 %v1764_v24, %v5351_v13 }
 0x7f9   : > { %v1779_v17 = vsel %vm442_vm0, %v5419_v18, 0.0 }
 0x7fa   : > { %1780 = vadd.xlane.f32.xlu1 %v1779_v17 }
 0x855   : > { %v1772_v25 = vpop.xlane.xlu1 %1771 }
 0x856   : > { %v1782_v29 = vmul.f32 %v1772_v25, %v4686_v14 }
 0x858   : > { %v1786_v39 = vsub.f32 %v5404_v47, %v1782_v29 }
 0x85a   : > { %v1790_v51 = vmul.f32 %v1786_v39, %v1786_v39 }
 0x85c   : > { %v1794_v63 = vsel %vm442_vm0, %v1790_v51, 0.0 }
 0x85d   : > { %v1775_v38 = vpop.xlane.xlu2 %1774  ;;  %1795 = vadd.xlane.f32.xlu2 %v1794_v63 }
 0x85e   : > { %v1783_v27 = vmul.f32 %v1775_v38, %v4686_v14 }
 0x860   : > { %v1787_v33 = vsub.f32 %v5409_v3, %v1783_v27 }
 0x862   : > { %v1791_v13 = vmul.f32 %v1787_v33, %v1787_v33 }
 0x864   : > { %v1797_v55 = vsel %vm442_vm0, %v1791_v13, 0.0 }
 0x865   : > { %v1778_v52 = vpop.xlane.xlu0 %1777  ;;  %1798 = vadd.xlane.f32.xlu0 %v1797_v55 }
 0x866   : > { %v1784_v34 = vmul.f32 %v1778_v52, %v4686_v14 }
 0x868   : > { %v5431_v10 = vsub.f32 %v5414_v0, %v1784_v34 }
 0x86a   : > { %v1792_v31 = vmul.f32 %v5431_v10, %v5431_v10 }
 0x86c   : > { %v1800_v20 = vsel %vm442_vm0, %v1792_v31, 0.0 }
 0x86d   : > { %1801 = vadd.xlane.f32.xlu1 %v1800_v20  ;;  %v1781_v53 = vpop.xlane.xlu1 %1780 }
 0x86e   : > { %v1785_v12 = vmul.f32 %v1781_v53, %v4686_v14  ;;  %v4553_v53 = vld [vmem:[%s6255_s2 + $0x2] ss:$0 sm:$0xff] }
 0x870   : > { %v5438_v59 = vsub.f32 %v5419_v18, %v1785_v12 }
 0x872   : > { %v1793_v42 = vmul.f32 %v5438_v59, %v5438_v59 }
 0x874   : > { %v1803_v46 = vsel %vm442_vm0, %v1793_v42, 0.0 }
 0x875   : > { %1804 = vadd.xlane.f32.xlu2 %v1803_v46 }
 0x8d0   : > { %v1796_v44 = vpop.xlane.xlu2 %1795 }
 0x8d1   : > { %v1806_v8 = vmul.f32 %v1796_v44, %v4686_v14 }
 0x8d3   : > { %v1810_v15 = vadd.f32 1e-05, %v1806_v8 }
 0x8d5   : > { %4393 = vrsqrt.f32 %v1810_v15  ;;  %vm1820_vm2 = vweird.f32 %v1810_v15 }
 0x8d8   : > { %v1799_v16 = vpop.xlane.xlu0 %1798 }
 0x8d9   : > { %v1807_v48 = vmul.f32 %v1799_v16, %v4686_v14 }
 0x8db   : > { %v4394_v26 = vpop.eup %4393  ;;  %v1811_v30 = vadd.f32 1e-05, %v1807_v48 }
 0x8dc   : > { %v1815_v56 = vmul.f32 %v4394_v26, %v1810_v15  ;;  %vm1821_vm1 = vweird.f32 %v4394_v26 }
 0x8dd   : > { %4395 = vrsqrt.f32 %v1811_v30  ;;  %vm1822_vm3 = vmor %vm1820_vm2, %vm1821_vm1  ;;  %vm1830_vm5 = vweird.f32 %v1811_v30 }
 0x8de   : > { %v1816_v54 = vmul.f32 %v4394_v26, %v1815_v56 }
 0x8e0   : > { %v1817_v58 = vmul.f32 0.5, %v1816_v54  ;;  %v1802_v62 = vpop.xlane.xlu1 %1801 }
 0x8e1   : > { %v1808_v61 = vmul.f32 %v1802_v62, %v4686_v14  ;;  %v4555_v62 = vld [vmem:[%s6261_s8 + $0x18] sm:$0xff] }
 0x8e2   : > { %v1818_v41 = vsub.f32 1.5, %v1817_v58 }
 0x8e3   : > { %v4396_v45 = vpop.eup %4395  ;;  %v1812_v21 = vadd.f32 1e-05, %v1808_v61 }
 0x8e4   : > { %v1819_v50 = vmul.f32 %v4394_v26, %v1818_v41  ;;  %v1825_v24 = vmul.f32 %v4396_v45, %v1811_v30  ;;  %vm1831_vm4 = vweird.f32 %v4396_v45 }
 0x8e5   : > { %4397 = vrsqrt.f32 %v1812_v21  ;;  %vm1832_vm6 = vmor %vm1830_vm5, %vm1831_vm4  ;;  %vm1840_vm8 = vweird.f32 %v1812_v21 }
 0x8e6   : > { %v1826_v17 = vmul.f32 %v4396_v45, %v1825_v24  ;;  %v1823_v25 = vsel %vm1822_vm3, %v4394_v26, %v1819_v50 }
 0x8e7   : > { %v1854_v13 = vmul.f32 %v1823_v25, %v1786_v39  ;;  %v4554_v39 = vld [vmem:[%s6255_s2 + $0x3] ss:$0 sm:$0xff]  ;;  %v4557_v25 = vld [vmem:[%s6261_s8 + $0x8] sm:$0xff] }
 0x8e8   : > { %v1827_v29 = vmul.f32 0.5, %v1826_v17  ;;  %v1805_v51 = vpop.xlane.xlu2 %1804 }
 0x8e9   : > { %v1809_v63 = vmul.f32 %v1805_v51, %v4686_v14  ;;  %v1858_v12 = vmul.f32 %v4553_v53, %v1854_v13 }
 0x8ea   : > { %v1828_v38 = vsub.f32 1.5, %v1827_v29 }
 0x8eb   : > { %v4398_v27 = vpop.eup %4397  ;;  %v1813_v55 = vadd.f32 1e-05, %v1809_v63  ;;  %v1862_v16 = vadd.f32 %v4554_v39, %v1858_v12  ;;  %v4558_v63 = vld [vmem:[%s6261_s8] sm:$0xff] }
 0x8ec   : > { %v1829_v52 = vmul.f32 %v4396_v45, %v1828_v38  ;;  %v1835_v34 = vmul.f32 %v4398_v27, %v1812_v21  ;;  %vm1841_vm7 = vweird.f32 %v4398_v27  ;;  %v4556_v21 = vld [vmem:[%s6261_s8 + $0x10] sm:$0xff] }
 0x8ed   : > { %4399 = vrsqrt.f32 %v1813_v55  ;;  %vm1842_vm9 = vmor %vm1840_vm8, %vm1841_vm7  ;;  %vm1850_vm13 = vweird.f32 %v1813_v55 }
 0x8ee   : > { %v1833_v31 = vsel %vm1832_vm6, %v4396_v45, %v1829_v52  ;;  %v1836_v20 = vmul.f32 %v4398_v27, %v1835_v34 }
 0x8ef   : > { %v1855_v42 = vmul.f32 %v1833_v31, %v1787_v33 }
 0x8f0   : > { %v1837_v46 = vmul.f32 0.5, %v1836_v20 }
 0x8f1   : > { %v1859_v44 = vmul.f32 %v4553_v53, %v1855_v42 }
 0x8f2   : > { %v1838_v8 = vsub.f32 1.5, %v1837_v46 }
 0x8f3   : > { %v4400_v15 = vpop.eup %4399  ;;  %v1863_v48 = vadd.f32 %v4554_v39, %v1859_v44 }
 0x8f4   : > { %v1839_v26 = vmul.f32 %v4398_v27, %v1838_v8  ;;  %v1845_v30 = vmul.f32 %v4400_v15, %v1813_v55  ;;  %vm1851_vm10 = vweird.f32 %v4400_v15 }
 0x8f5   : > { %v1866_v56 = vpack.c.bf16 %v1863_v48, %v1862_v16  ;;  %vm1852_vm14 = vmor %vm1850_vm13, %vm1851_vm10 }
 0x8f6   : > { %v1846_v54 = vmul.f32 %v4400_v15, %v1845_v30  ;;  %v1843_v33 = vsel %vm1842_vm9, %v4398_v27, %v1839_v26 }
 0x8f7   : > { %4012 = vmatmul.msk.bf16.vlgmr.msra.gmra.mxu3 %vm442_vm0, %v1866_v56  ;;  %v1856_v41 = vmul.f32 %v1843_v33, %v5431_v10 }
 0x8f8   : > { %v1847_v58 = vmul.f32 0.5, %v1846_v54  ;;  %2555 = vmatpush.bf16.msra.mxu3 %v4555_v62 }
 0x8f9   : > { %v1860_v17 = vmul.f32 %v4553_v53, %v1856_v41 }
 0x8fa   : > { %v1848_v61 = vsub.f32 1.5, %v1847_v58 }
 0x8fb   : > { %v1864_v51 = vadd.f32 %v4554_v39, %v1860_v17 }
 0x8fc   : > { %v1849_v45 = vmul.f32 %v4400_v15, %v1848_v61  ;;  %2556 = vmatpush.bf16.msra.mxu3 %v4556_v21 }
 0x8fe   : > { %v1853_v50 = vsel %vm1852_vm14, %v4400_v15, %v1849_v45 }
 0x8ff   : > { %v1857_v24 = vmul.f32 %v1853_v50, %v5438_v59 }
 0x900   : > { %2557 = vmatpush.bf16.msra.mxu3 %v4557_v25 }
 0x901   : > { %v1861_v29 = vmul.f32 %v4553_v53, %v1857_v24 }
 0x903   : > { %v1865_v10 = vadd.f32 %v4554_v39, %v1861_v29 }
 0x904   : > { %2558 = vmatpush.bf16.msra.mxu3 %v4558_v63 }
 0x905   : > { %v1867_v38 = vpack.c.bf16 %v1865_v10, %v1864_v51 }
 0x907   : > { %4013 = vmatmul.msk.bf16.gmra.mxu3 %vm442_vm0, %v1867_v38 }
 0x97a   : > { %v1883_v27 = vpop.f32.mrf.mxu3 }
 0x97b   : > { %v1893_v13 = vpack.c.bf16 %v1883_v27, %v1883_v27 }
 0x97d   : > { %v1899_v52 = vunpack.c.l.b16 %v1893_v13 }
 0x982   : > { %v1885_v59 = vpop.f32.mrf.mxu3 }
 0x983   : > { %v1894_v55 = vpack.c.bf16 %v1885_v59, %v1885_v59 }
 0x985   : > { %v1900_v34 = vunpack.c.l.b16 %v1894_v55 }
 0x987   : > { %v1901_v31 = vpack.c.b16 %v1900_v34, %v1899_v52 }
 0x989   : > { %1911 = vmatmul.bf16.vlgmr.msra.gmra.mxu2 %v1901_v31 }
 0x98a   : > { %v1888_v20 = vpop.f32.mrf.mxu3  ;;  %2210 = vmatpush.bf16.msra.mxu2 %v4871_v28 }
 0x98b   : > { %v1895_v53 = vpack.c.bf16 %v1888_v20, %v1888_v20 }
 0x98d   : > { %v2017_v46 = vunpack.c.l.b16 %v1895_v53 }
 0x98e   : > { %2211 = vmatpush.bf16.msra.mxu2 %v4880_v32 }
 0x992   : > { %v1890_v12 = vpop.f32.mrf.mxu3  ;;  %2212 = vmatpush.bf16.msra.mxu2 %v4891_v37 }
 0x993   : > { %v1896_v42 = vpack.c.bf16 %v1890_v12, %v1890_v12 }
 0x995   : > { %v2018_v44 = vunpack.c.l.b16 %v1896_v42 }
 0x996   : > { %2213 = vmatpush.bf16.msra.mxu2 %v4901_v40 }
 0x997   : > { %v2019_v8 = vpack.c.b16 %v2018_v44, %v2017_v46 }
 0x999   : > { %2029 = vmatmul.bf16.vlgmr.msrb.gmra.mxu1 %v2019_v8 }
 0x99a   : > { %2248 = vmatpush.bf16.msrb.mxu1 %v5102_v43 }
 0x99e   : > { %2249 = vmatpush.bf16.msrb.mxu1 %v5112_v49 }
 0x9a2   : > { %2250 = vmatpush.bf16.msrb.mxu1 %v5121_v19 }
 0x9a6   : > { %2251 = vmatpush.bf16.msrb.mxu1 %v5130_v60 }
 0xa0c   : > { %v1912_v28 = vpop.f32.mrf.mxu2 }
 0xa0d   : > { %v1919_v15 = vsel %vm809_vm12, %v1912_v28, -inf }
 0xa14   : > { %v1914_v32 = vpop.f32.mrf.mxu2 }
 0xa15   : > { %v1918_v37 = vsel %vm615_vm11, %v1914_v32, -1e+30 }
 0xa16   : > { %v1920_v39 = vsel %vm809_vm12, %v1918_v37, -inf  ;;  %v2030_v40 = vpop.f32.mrf.mxu1 }
 0xa17   : > { %v1921_v16 = vmax.f32 %v1919_v15, %v1920_v39  ;;  %v2037_v60 = vsel %vm809_vm12, %v2030_v40, -inf }
 0xa19   : > { %v1922_v48 = vrot.slane %v1921_v16, 4 }
 0xa1b   : > { %v1923_v26 = vmax.f32 %v1921_v16, %v1922_v48 }
 0xa1d   : > { %v1924_v43 = vrot.slane %v1923_v26, 2 }
 0xa1e   : > { %v2032_v30 = vpop.f32.mrf.mxu1 }
 0xa1f   : > { %v1925_v49 = vmax.f32 %v1923_v26, %v1924_v43  ;;  %v2036_v19 = vsel %vm615_vm11, %v2032_v30, -1e+30 }
 0xa20   : > { %v2038_v56 = vsel %vm809_vm12, %v2036_v19, -inf }
 0xa21   : > { %v1926_v54 = vrot.slane %v1925_v49, 1  ;;  %v2039_v33 = vmax.f32 %v2037_v60, %v2038_v56 }
 0xa23   : > { %v1927_v58 = vmax.f32 %v1925_v49, %v1926_v54  ;;  %v2040_v62 = vrot.slane %v2039_v33, 4 }
 0xa25   : > { %v1928_v61 = vsub.f32 %v1912_v28, %v1927_v58  ;;  %v1929_v41 = vsub.f32 %v1918_v37, %v1927_v58  ;;  %v2041_v45 = vmax.f32 %v2039_v33, %v2040_v62 }
 0xa27   : > { %v1930_v21 = vmul.f32 1.442695, %v1928_v61  ;;  %v1932_v50 = vmul.f32 1.442695, %v1929_v41  ;;  %v2042_v24 = vrot.slane %v2041_v45, 2 }
 0xa29   : > { %4401 = vpow2.f32 %v1930_v21  ;;  %v2043_v17 = vmax.f32 %v2041_v45, %v2042_v24 }
 0xa2a   : > { %4403 = vpow2.f32 %v1932_v50 }
 0xa2b   : > { %v2044_v25 = vrot.slane %v2043_v17, 1 }
 0xa2d   : > { %v2045_v29 = vmax.f32 %v2043_v17, %v2044_v25 }
 0xa2f   : > { %v4402_v51 = vpop.eup %4401  ;;  %v2046_v10 = vsub.f32 %v2030_v40, %v2045_v29  ;;  %v2047_v63 = vsub.f32 %v2036_v19, %v2045_v29 }
 0xa30   : > { %v4404_v38 = vpop.eup %4403  ;;  %v1934_v27 = vsel %vm809_vm12, %v4402_v51, 0.0 }
 0xa31   : > { %v1935_v13 = vsel %vm809_vm12, %v4404_v38, 0.0  ;;  %v2048_v59 = vmul.f32 1.442695, %v2046_v10  ;;  %v2050_v55 = vmul.f32 1.442695, %v2047_v63 }
 0xa32   : > { %v1936_v52 = vadd.f32 %v1935_v13, %v1934_v27 }
 0xa33   : > { %4405 = vpow2.f32 %v2048_v59 }
 0xa34   : > { %v1937_v34 = vrot.slane %v1936_v52, 4  ;;  %4407 = vpow2.f32 %v2050_v55 }
 0xa36   : > { %v1938_v31 = vadd.f32 %v1937_v34, %v1936_v52 }
 0xa38   : > { %v1939_v20 = vrot.slane %v1938_v31, 2 }
 0xa39   : > { %v4406_v53 = vpop.eup %4405 }
 0xa3a   : > { %v4408_v12 = vpop.eup %4407  ;;  %v1940_v42 = vadd.f32 %v1939_v20, %v1938_v31  ;;  %v2052_v46 = vsel %vm809_vm12, %v4406_v53, 0.0 }
 0xa3b   : > { %v2053_v44 = vsel %vm809_vm12, %v4408_v12, 0.0 }
 0xa3c   : > { %v1941_v8 = vrot.slane %v1940_v42, 1  ;;  %v2054_v28 = vadd.f32 %v2053_v44, %v2052_v46 }
 0xa3e   : > { %v1942_v32 = vadd.f32 %v1941_v8, %v1940_v42  ;;  %v2055_v37 = vrot.slane %v2054_v28, 4 }
 0xa40   : > { %4409 = vrcp.f32 %v1942_v32  ;;  %v2056_v15 = vadd.f32 %v2055_v37, %v2054_v28  ;;  %v1954_v49 = vand.u32 2147483648, %v1942_v32  ;;  %v1952_v60 = vand.u32 2147483647, %v1942_v32 }
 0xa41   : > { %vm1948_vm1 = vweird.f32 %v1942_v32 }
 0xa42   : > { %v2057_v39 = vrot.slane %v2056_v15, 2  ;;  %v1955_v54 = vor.u32 1.1754944e-38, %v1954_v49  ;;  %vm1953_vm3 = vcmp.eq.f32.partialorder %v1952_v60, 8.507059e+37 }
 0xa44   : > { %v2058_v40 = vadd.f32 %v2057_v39, %v2056_v15 }
 0xa46   : > { %v4410_v16 = vpop.eup %4409  ;;  %v2059_v48 = vrot.slane %v2058_v40, 1 }
 0xa47   : > { %v1944_v26 = vmul.f32 %v4410_v16, %v1942_v32  ;;  %vm1949_vm15 = vweird.f32 %v4410_v16 }
 0xa48   : > { %v2060_v43 = vadd.f32 %v2059_v48, %v2058_v40  ;;  %vm1950_vm2 = vmor %vm1948_vm1, %vm1949_vm15 }
 0xa49   : > { %v1945_v30 = vsub.f32 1.0, %v1944_v26 }
 0xa4a   : > { %4411 = vrcp.f32 %v2060_v43  ;;  %v2072_v17 = vand.u32 2147483648, %v2060_v43  ;;  %v2070_v29 = vand.u32 2147483647, %v2060_v43  ;;  %vm2066_vm5 = vweird.f32 %v2060_v43 }
 0xa4b   : > { %v1946_v19 = vmul.f32 %v4410_v16, %v1945_v30 }
 0xa4c   : > { %v2073_v63 = vor.u32 1.1754944e-38, %v2072_v17  ;;  %vm2071_vm7 = vcmp.eq.f32.partialorder %v2070_v29, 8.507059e+37 }
 0xa4d   : > { %v1947_v56 = vadd.f32 %v4410_v16, %v1946_v19 }
 0xa4f   : > { %v1951_v33 = vsel %vm1950_vm2, %v4410_v16, %v1947_v56 }
 0xa50   : > { %v4412_v58 = vpop.eup %4411  ;;  %v1956_v62 = vsel %vm1953_vm3, %v1955_v54, %v1951_v33 }
 0xa51   : > { %v5489_v61 = vmul.f32 %v4404_v38, %v1956_v62  ;;  %v5491_v41 = vmul.f32 %v4402_v51, %v1956_v62  ;;  %v2062_v45 = vmul.f32 %v4412_v58, %v2060_v43  ;;  %vm2067_vm4 = vweird.f32 %v4412_v58 }
 0xa52   : > { %vm2068_vm6 = vmor %vm2066_vm5, %vm2067_vm4 }
 0xa53   : > { %v1962_v21 = vsel %vm809_vm12, %v5489_v61, 0.0  ;;  %v1959_v50 = vsel %vm809_vm12, %v5491_v41, 0.0  ;;  %v2063_v24 = vsub.f32 1.0, %v2062_v45 }
 0xa54   : > { %1963 = vadd.xlane.f32.xlu1 %v1962_v21  ;;  %1960 = vadd.xlane.f32.xlu0 %v1959_v50 }
 0xa55   : > { %v2064_v25 = vmul.f32 %v4412_v58, %v2063_v24 }
 0xa57   : > { %v2065_v10 = vadd.f32 %v4412_v58, %v2064_v25 }
 0xa59   : > { %v2069_v51 = vsel %vm2068_vm6, %v4412_v58, %v2065_v10 }
 0xa5a   : > { %v2074_v38 = vsel %vm2071_vm7, %v2073_v63, %v2069_v51 }
 0xa5b   : > { %v5497_v27 = vmul.f32 %v4408_v12, %v2074_v38  ;;  %v5499_v13 = vmul.f32 %v4406_v53, %v2074_v38 }
 0xa5d   : > { %v2080_v59 = vsel %vm809_vm12, %v5497_v27, 0.0  ;;  %v2077_v55 = vsel %vm809_vm12, %v5499_v13, 0.0 }
 0xa5e   : > { %2081 = vadd.xlane.f32.xlu0 %v2080_v59  ;;  %2078 = vadd.xlane.f32.xlu2 %v2077_v55 }
 0xac7   : > { %v1961_v52 = vpop.xlane.xlu0 %1960  ;;  %v1964_v34 = vpop.xlane.xlu1 %1963 }
 0xac8   : > { %v1965_v31 = vadd.f32 1e-06, %v1961_v52  ;;  %v1966_v20 = vadd.f32 1e-06, %v1964_v34 }
 0xaca   : > { %4413 = vrcp.f32 %v1965_v31  ;;  %v1976_v15 = vand.u32 2147483647, %v1965_v31  ;;  %v1978_v39 = vand.u32 2147483648, %v1965_v31  ;;  %v1993_v48 = vand.u32 2147483648, %v1966_v20 }
 0xacb   : > { %4415 = vrcp.f32 %v1966_v20  ;;  %v1991_v43 = vand.u32 2147483647, %v1966_v20  ;;  %vm1972_vm10 = vweird.f32 %v1965_v31  ;;  %vm1987_vm14 = vweird.f32 %v1966_v20 }
 0xacc   : > { %v1979_v49 = vor.u32 1.1754944e-38, %v1978_v39  ;;  %vm1977_vm15 = vcmp.eq.f32.partialorder %v1976_v15, 8.507059e+37  ;;  %v1994_v56 = vor.u32 1.1754944e-38, %v1993_v48  ;;  %v2199_v15 = vpack.c.bf16 %v5419_v18, %v5414_v0  ;;  %v4567_v48 = vld [vmem:[%s6258_s5 + $0x18] sm:$0xff] }
 0xacd   : > { %vm1992_vm2 = vcmp.eq.f32.partialorder %v1991_v43, 8.507059e+37  ;;  %v4568_v43 = vld [vmem:[%s6258_s5 + $0x10] sm:$0xff] }
 0xad0   : > { %v4414_v42 = vpop.eup %4413 }
 0xad1   : > { %v4416_v46 = vpop.eup %4415  ;;  %v1968_v12 = vmul.f32 %v4414_v42, %v1965_v31  ;;  %v2082_v44 = vpop.xlane.xlu0 %2081  ;;  %vm1973_vm8 = vweird.f32 %v4414_v42 }
 0xad2   : > { %v2079_v53 = vpop.xlane.xlu2 %2078  ;;  %v1983_v8 = vmul.f32 %v4416_v46, %v1966_v20  ;;  %v2084_v28 = vadd.f32 1e-06, %v2082_v44  ;;  %vm1988_vm9 = vweird.f32 %v4416_v46  ;;  %vm1974_vm13 = vmor %vm1972_vm10, %vm1973_vm8 }
 0xad3   : > { %v2083_v32 = vadd.f32 1e-06, %v2079_v53  ;;  %v1969_v37 = vsub.f32 1.0, %v1968_v12  ;;  %vm1989_vm1 = vmor %vm1987_vm14, %vm1988_vm9 }
 0xad4   : > { %v1984_v40 = vsub.f32 1.0, %v1983_v8  ;;  %4417 = vrcp.f32 %v2084_v28  ;;  %v2111_v29 = vand.u32 2147483648, %v2084_v28  ;;  %v2109_v38 = vand.u32 2147483647, %v2084_v28 }
 0xad5   : > { %v1970_v16 = vmul.f32 %v4414_v42, %v1969_v37  ;;  %4419 = vrcp.f32 %v2083_v32  ;;  %v2096_v59 = vand.u32 2147483648, %v2083_v32  ;;  %v2094_v52 = vand.u32 2147483647, %v2083_v32  ;;  %v4566_v37 = vld [vmem:[%s6262_s9] sm:$0xff] }
 0xad6   : > { %v1985_v26 = vmul.f32 %v4416_v46, %v1984_v40  ;;  %vm2105_vm5 = vweird.f32 %v2084_v28  ;;  %vm2090_vm7 = vweird.f32 %v2083_v32  ;;  %vm2110_vm8 = vcmp.eq.f32.partialorder %v2109_v38, 8.507059e+37 }
 0xad7   : > { %v1971_v30 = vadd.f32 %v4414_v42, %v1970_v16  ;;  %v2097_v20 = vor.u32 1.1754944e-38, %v2096_v59  ;;  %vm2095_vm10 = vcmp.eq.f32.partialorder %v2094_v52, 8.507059e+37 }
 0xad8   : > { %v1986_v19 = vadd.f32 %v4416_v46, %v1985_v26 }
 0xad9   : > { %v1975_v60 = vsel %vm1974_vm13, %v4414_v42, %v1971_v30  ;;  %v4569_v30 = vld [vmem:[%s6258_s5 + $0x8] sm:$0xff] }
 0xada   : > { %v4418_v54 = vpop.eup %4417  ;;  %v1990_v33 = vsel %vm1989_vm1, %v4416_v46, %v1986_v19  ;;  %v1980_v58 = vsel %vm1977_vm15, %v1979_v49, %v1975_v60 }
 0xadb   : > { %v4420_v62 = vpop.eup %4419  ;;  %v2101_v45 = vmul.f32 %v4418_v54, %v2084_v28  ;;  %v1981_v21 = vmul.f32 %v1980_v58, %v5491_v41  ;;  %v1995_v50 = vsel %vm1992_vm2, %v1994_v56, %v1990_v33  ;;  %vm2106_vm3 = vweird.f32 %v4418_v54  ;;  %v4564_v28 = vld [vmem:[%s6262_s9 + $0x10] sm:$0xff] }
 0xadc   : > { %v2086_v24 = vmul.f32 %v4420_v62, %v2083_v32  ;;  %v1996_v17 = vmul.f32 %v1995_v50, %v5489_v61  ;;  %vm2091_vm4 = vweird.f32 %v4420_v62  ;;  %vm2107_vm6 = vmor %vm2105_vm5, %vm2106_vm3  ;;  %v2112_v41 = vor.u32 1.1754944e-38, %v2111_v29  ;;  %v4565_v32 = vld [vmem:[%s6262_s9 + $0x8] sm:$0xff] }
 0xadd   : > { %v2102_v25 = vsub.f32 1.0, %v2101_v45  ;;  %vm2092_vm9 = vmor %vm2090_vm7, %vm2091_vm4 }
 0xade   : > { %v2087_v10 = vsub.f32 1.0, %v2086_v24  ;;  %v1997_v63 = vpack.c.bf16 %v1996_v17, %v1981_v21 }
 0xadf   : > { %v2103_v51 = vmul.f32 %v4418_v54, %v2102_v25 }
 0xae0   : > { %v2088_v55 = vmul.f32 %v4420_v62, %v2087_v10  ;;  %4014 = vmatmul.msk.bf16.vlgmr.msrb.gmra.mxu0 %vm809_vm12, %v1997_v63 }
 0xae1   : > { %v2104_v34 = vadd.f32 %v4418_v54, %v2103_v51  ;;  %2229 = vmatpush.bf16.msrb.mxu0 %v5092_v11  ;;  %v4559_v11 = vld [vmem:[%s6262_s9 + $0x38] sm:$0xff] }
 0xae2   : > { %v2089_v61 = vadd.f32 %v4420_v62, %v2088_v55 }
 0xae3   : > { %v2108_v31 = vsel %vm2107_vm6, %v4418_v54, %v2104_v34 }
 0xae4   : > { %v2093_v42 = vsel %vm2092_vm9, %v4420_v62, %v2089_v61  ;;  %v2113_v46 = vsel %vm2110_vm8, %v2112_v41, %v2108_v31 }
 0xae5   : > { %v2098_v12 = vsel %vm2095_vm10, %v2097_v20, %v2093_v42  ;;  %v2114_v44 = vmul.f32 %v2113_v46, %v5497_v27  ;;  %2230 = vmatpush.bf16.msrb.mxu0 %v5142_v2  ;;  %v4560_v27 = vld [vmem:[%s6262_s9 + $0x30] sm:$0xff]  ;;  %v4561_v2 = vld [vmem:[%s6262_s9 + $0x28] sm:$0xff] }
 0xae6   : > { %v2099_v53 = vmul.f32 %v2098_v12, %v5499_v13  ;;  %v2198_v13 = vpack.c.bf16 %v5409_v3, %v5404_v47 }
 0xae8   : > { %v2115_v8 = vpack.c.bf16 %v2114_v44, %v2099_v53 }
 0xae9   : > { %2231 = vmatpush.bf16.msrb.mxu0 %v5151_v4  ;;  %v4562_v4 = vld [vmem:[%s6262_s9 + $0x20] sm:$0xff] }
 0xaea   : > { %4015 = vmatmul.msk.bf16.vlgmr.msrb.gmra.mxu2 %vm809_vm12, %v2115_v8 }
 0xaeb   : > { %2576 = vmatpush.bf16.msrb.mxu2 %v4559_v11 }
 0xaed   : > { %2232 = vmatpush.bf16.msrb.mxu0 %v5169_v6  ;;  %v4563_v6 = vld [vmem:[%s6262_s9 + $0x18] sm:$0xff] }
 0xaef   : > { %2577 = vmatpush.bf16.msrb.mxu2 %v4560_v27 }
 0xaf3   : > { %2578 = vmatpush.bf16.msrb.mxu2 %v4561_v2 }
 0xaf7   : > { %2579 = vmatpush.bf16.msrb.mxu2 %v4562_v4 }
 0xafa   : > { %4022 = vmatmul.msk.bf16.vlgmr.msra.gmra.mxu2 %vm442_vm0, %v2198_v13 }
 0xafb   : > { %2580 = vmatpush.bf16.msrb.mxu2 %v4563_v6 }
 0xaff   : > { %2581 = vmatpush.bf16.msrb.mxu2 %v4564_v28 }
 0xb03   : > { %2582 = vmatpush.bf16.msrb.mxu2 %v4565_v32 }
 0xb07   : > { %2583 = vmatpush.bf16.msrb.mxu2 %v4566_v37 }
 0xb0a   : > { %4023 = vmatmul.msk.bf16.gmra.mxu2 %vm442_vm0, %v2199_v15 }
 0xb0b   : > { %2859 = vmatpush.bf16.xpose.msra.mxu2 %v4935_v9 }
 0xb5d   : > { %v2010_v39 = vpop.f32.mrf.mxu0 }
 0xb65   : > { %v2012_v40 = vpop.f32.mrf.mxu0 }
 0xb66   : > { %v2133_v16 = vpack.c.bf16 %v2012_v40, %v2010_v39 }
 0xb68   : > { %4016 = vmatmul.msk.bf16.vlgmr.msra.gmra.mxu0 %vm442_vm0, %v2133_v16  ;;  %4018 = vmatmul.msk.bf16.vlgmr.msra.gmra.mxu1 %vm442_vm0, %v2133_v16 }
 0xb69   : > { %4020 = vmatmul.msk.bf16.vlgmr.msrb.gmra.mxu3 %vm442_vm0, %v2133_v16  ;;  %2739 = vmatpush.bf16.xpose.msra.mxu1 %v4845_v1 }
 0xb6a   : > { %2839 = vmatpush.bf16.msrb.mxu3 %v4845_v1  ;;  %2707 = vmatpush.bf16.msra.mxu0 %v4567_v48  ;;  %v4570_v1 = vld [vmem:[%s6258_s5] sm:$0xff] }
 0xb6d   : > { %v2128_v26 = vpop.f32.mrf.mxu2 }
 0xb6e   : > { %2708 = vmatpush.bf16.msra.mxu0 %v4568_v43 }
 0xb72   : > { %2709 = vmatpush.bf16.msra.mxu0 %v4569_v30 }
 0xb75   : > { %v2130_v49 = vpop.f32.mrf.mxu2 }
 0xb76   : > { %v2134_v19 = vpack.c.bf16 %v2130_v49, %v2128_v26  ;;  %2710 = vmatpush.bf16.msra.mxu0 %v4570_v1 }
 0xb78   : > { %4017 = vmatmul.msk.bf16.gmra.mxu0 %vm442_vm0, %v2134_v19  ;;  %4019 = vmatmul.msk.bf16.gmra.mxu1 %vm442_vm0, %v2134_v19 }
 0xb79   : > { %4021 = vmatmul.msk.bf16.gmra.mxu3 %vm442_vm0, %v2134_v19 }
 0xb7d   : > { %v2215_v60 = vpop.f32.mrf.mxu2 }
 0xb7e   : > { %v2216_v33 = vadd.f32 %v2215_v60, %v5209_v5 }
 0xb85   : > { %v2217_v62 = vpop.f32.mrf.mxu2 }
 0xb86   : > { %v2218_v17 = vadd.f32 %v2217_v62, %v5209_v5 }
 0xb88   : > { %4024 = vmatmul.msk.bf16.vlgmr.msrb.gmra.mxu0 %vm442_vm0, %v2198_v13  ;;  %4026 = vmatmul.msk.bf16.vlgmr.msrb.gmra.mxu1 %vm442_vm0, %v2198_v13 }
 0xb89   : > { %2959 = vmatpush.bf16.msrb.mxu1 %v4935_v9 }
 0xb8d   : > { %v2220_v29 = vpop.f32.mrf.mxu2 }
 0xb8e   : > { %v2221_v55 = vadd.f32 %v2220_v29, %v5209_v5 }
 0xb95   : > { %v2222_v31 = vpop.f32.mrf.mxu2 }
 0xb96   : > { %v2223_v44 = vadd.f32 %v2222_v31, %v5209_v5 }
 0xb98   : > { %4025 = vmatmul.msk.bf16.gmra.mxu0 %vm442_vm0, %v2199_v15  ;;  %4027 = vmatmul.msk.bf16.gmra.mxu1 %vm442_vm0, %v2199_v15 }
 0xbe5   : > { %v2150_v56 = vpop.f32.mrf.mxu0  ;;  %v2169_v54 = vpop.f32.mrf.mxu1 }
 0xbe6   : > { %v2151_v58 = vadd.f32 %v2150_v56, %v5207_v57  ;;  %v2170_v37 = vadd.f32 %v2169_v54, %v5229_v22 }
 0xbe8   : > { %v2263_v45 = vadd.f32 %v2216_v33, %v2151_v58 }
 0xbea   : > { %v4028_v21 = vmul.f32 -1.442695, %v2263_v45 }
 0xbec   : > { %4421 = vpow2.f32 %v4028_v21  ;;  %v2188_v15 = vpop.f32.mrf.mxu3 }
 0xbed   : > { %v2152_v50 = vpop.f32.mrf.mxu0  ;;  %v2171_v24 = vpop.f32.mrf.mxu1  ;;  %v2189_v31 = vadd.f32 %v2188_v15, %v5254_v35 }
 0xbee   : > { %v2153_v9 = vadd.f32 %v2152_v50, %v5207_v57  ;;  %v2172_v58 = vadd.f32 %v2171_v24, %v5229_v22 }
 0xbf0   : > { %v2264_v25 = vadd.f32 %v2218_v17, %v2153_v9 }
 0xbf2   : > { %v4422_v10 = vpop.eup %4421  ;;  %v4029_v63 = vmul.f32 -1.442695, %v2264_v25 }
 0xbf3   : > { %v2279_v51 = vadd.f32 1.0, %v4422_v10 }
 0xbf4   : > { %4423 = vpow2.f32 %v4029_v63  ;;  %v2190_v17 = vpop.f32.mrf.mxu3 }
 0xbf5   : > { %v2155_v38 = vpop.f32.mrf.mxu0  ;;  %v5575_v59 = vpop.f32.mrf.mxu1  ;;  %4425 = vrcp.f32 %v2279_v51  ;;  %v2294_v60 = vand.u32 2147483648, %v2279_v51  ;;  %vm2288_vm14 = vweird.f32 %v2279_v51  ;;  %v2292_v56 = vand.u32 2147483647, %v2279_v51 }
 0xbf6   : > { %v2156_v52 = vadd.f32 %v2155_v38, %v5207_v57 }
 0xbf7   : > { %v2295_v9 = vor.u32 1.1754944e-38, %v2294_v60  ;;  %vm2293_vm1 = vcmp.eq.f32.partialorder %v2292_v56, 8.507059e+37 }
 0xbf8   : > { %v2265_v34 = vadd.f32 %v2221_v55, %v2156_v52 }
 0xbfa   : > { %v4424_v41 = vpop.eup %4423  ;;  %v4030_v61 = vmul.f32 -1.442695, %v2265_v34 }
 0xbfb   : > { %v5579_v20 = vadd.f32 1.0, %v4424_v41  ;;  %v4426_v42 = vpop.eup %4425 }
 0xbfc   : > { %4427 = vpow2.f32 %v4030_v61  ;;  %v2284_v8 = vmul.f32 %v4426_v42, %v2279_v51  ;;  %vm2289_vm13 = vweird.f32 %v4426_v42  ;;  %v2193_v15 = vpop.f32.mrf.mxu3 }
 0xbfd   : > { %4429 = vrcp.f32 %v5579_v20  ;;  %v2157_v46 = vpop.f32.mrf.mxu0  ;;  %v5582_v12 = vpop.f32.mrf.mxu1  ;;  %vm2290_vm15 = vmor %vm2288_vm14, %vm2289_vm13  ;;  %v2309_v38 = vand.u32 2147483648, %v5579_v20  ;;  %vm2303_vm3 = vweird.f32 %v5579_v20  ;;  %v2307_v41 = vand.u32 2147483647, %v5579_v20 }
 0xbfe   : > { %v2158_v53 = vadd.f32 %v2157_v46, %v5207_v57  ;;  %v2285_v6 = vsub.f32 1.0, %v2284_v8  ;;  %v2194_v60 = vadd.f32 %v2193_v15, %v5254_v35  ;;  %v2177_v56 = vadd.f32 %v5582_v12, %v5229_v22 }
 0xbff   : > { %v2310_v8 = vor.u32 1.1754944e-38, %v2309_v38  ;;  %vm2308_vm5 = vcmp.eq.f32.partialorder %v2307_v41, 8.507059e+37 }
 0xc00   : > { %v2266_v11 = vadd.f32 %v2223_v44, %v2158_v53  ;;  %v2286_v16 = vmul.f32 %v4426_v42, %v2285_v6  ;;  %v2175_v53 = vadd.f32 %v5575_v59, %v5229_v22 }
 0xc02   : > { %v4428_v27 = vpop.eup %4427  ;;  %v4031_v2 = vmul.f32 -1.442695, %v2266_v11  ;;  %v2287_v1 = vadd.f32 %v4426_v42, %v2286_v16 }
 0xc03   : > { %v5586_v4 = vpop.eup %4429  ;;  %v5588_v13 = vadd.f32 1.0, %v4428_v27 }
 0xc04   : > { %4431 = vpow2.f32 %v4031_v2  ;;  %v2299_v32 = vmul.f32 %v5586_v4, %v5579_v20  ;;  %v2291_v50 = vsel %vm2290_vm15, %v4426_v42, %v2287_v1  ;;  %vm2304_vm2 = vweird.f32 %v5586_v4 }
 0xc05   : > { %4433 = vrcp.f32 %v5588_v13  ;;  %v2234_v28 = vpop.f32.mrf.mxu0  ;;  %v2253_v40 = vpop.f32.mrf.mxu1  ;;  %v2296_v63 = vsel %vm2293_vm1, %v2295_v9, %v2291_v50  ;;  %vm2305_vm4 = vmor %vm2303_vm3, %vm2304_vm2  ;;  %vm2318_vm7 = vweird.f32 %v5588_v13  ;;  %v2322_v1 = vand.u32 2147483647, %v5588_v13 }
 0xc06   : > { %v2235_v39 = vadd.f32 %v2234_v28, %v5231_v23  ;;  %v2300_v26 = vsub.f32 1.0, %v2299_v32  ;;  %v2254_v21 = vadd.f32 %v2253_v40, %v5244_v7 }
 0xc07   : > { %vm2323_vm9 = vcmp.eq.f32.partialorder %v2322_v1, 8.507059e+37 }
 0xc08   : > { %v2343_v48 = vadd.f32 %v2235_v39, %v2170_v37  ;;  %v2301_v33 = vmul.f32 %v5586_v4, %v2300_v26  ;;  %v2423_v34 = vmul.f32 %v2296_v63, %v2254_v21  ;;  %v2324_v26 = vand.u32 2147483648, %v5588_v13 }
 0xc0a   : > { %v4432_v43 = vpop.eup %4431  ;;  %v4032_v30 = vmul.f32 -1.442695, %v2343_v48  ;;  %v2302_v10 = vadd.f32 %v5586_v4, %v2301_v33  ;;  %v2427_v27 = vadd.f32 %v2423_v34, %v2189_v31  ;;  %v2325_v12 = vor.u32 1.1754944e-38, %v2324_v26 }
 0xc0b   : > { %v5595_v49 = vpop.eup %4433  ;;  %v5597_v19 = vadd.f32 1.0, %v4432_v43 }
 0xc0c   : > { %4435 = vpow2.f32 %v4032_v30  ;;  %v2314_v45 = vmul.f32 %v5595_v49, %v5588_v13  ;;  %v2306_v46 = vsel %vm2305_vm4, %v5586_v4, %v2302_v10  ;;  %v2191_v4 = vadd.f32 %v2190_v17, %v5254_v35 }
 0xc0d   : > { %v2236_v54 = vpop.f32.mrf.mxu0  ;;  %4437 = vrcp.f32 %v5597_v19  ;;  %v2255_v29 = vpop.f32.mrf.mxu1  ;;  %v2311_v6 = vsel %vm2308_vm5, %v2310_v8, %v2306_v46  ;;  %vm2319_vm6 = vweird.f32 %v5595_v49  ;;  %vm2333_vm2 = vweird.f32 %v5597_v19 }
 0xc0e   : > { %v2237_v62 = vadd.f32 %v2236_v54, %v5231_v23  ;;  %v2315_v55 = vsub.f32 1.0, %v2314_v45  ;;  %v2256_v42 = vadd.f32 %v2255_v29, %v5244_v7  ;;  %vm5638_vm8 = vmor %vm2318_vm7, %vm2319_vm6  ;;  %v2337_v8 = vand.u32 2147483647, %v5597_v19 }
 0xc10   : > { %v2344_v25 = vadd.f32 %v2237_v62, %v2172_v58  ;;  %v2316_v20 = vmul.f32 %v5595_v49, %v2315_v55  ;;  %v2424_v32 = vmul.f32 %v2311_v6, %v2256_v42  ;;  %vm2338_vm5 = vcmp.eq.f32.partialorder %v2337_v8, 8.507059e+37 }
 0xc12   : > { %v4436_v24 = vpop.eup %4435  ;;  %v4033_v51 = vmul.f32 -1.442695, %v2344_v25  ;;  %v2317_v59 = vadd.f32 %v5595_v49, %v2316_v20  ;;  %v2428_v54 = vadd.f32 %v2424_v32, %v2191_v4 }
 0xc13   : > { %v5609_v52 = vadd.f32 1.0, %v4436_v24  ;;  %v5613_v61 = vpop.eup %4437 }
 0xc14   : > { %4439 = vpow2.f32 %v4033_v51  ;;  %v2329_v2 = vmul.f32 %v5613_v61, %v5597_v19  ;;  %v2321_v45 = vsel %vm5638_vm8, %v5595_v49, %v2317_v59  ;;  %vm2334_vm13 = vweird.f32 %v5613_v61  ;;  %v2195_v59 = vpop.f32.mrf.mxu3 }
 0xc15   : > { %4441 = vrcp.f32 %v5609_v52  ;;  %v2239_v44 = vpop.f32.mrf.mxu0  ;;  %v2258_v40 = vpop.f32.mrf.mxu1  ;;  %v2372_v21 = vand.u32 2147483647, %v5609_v52  ;;  %v2374_v9 = vand.u32 2147483648, %v5609_v52  ;;  %v2326_v24 = vsel %vm2323_vm9, %v2325_v12, %v2321_v45  ;;  %vm5664_vm3 = vmor %vm2333_vm2, %vm2334_vm13 }
 0xc16   : > { %v2240_v11 = vadd.f32 %v2239_v44, %v5231_v23  ;;  %4443 = vtanh.f32 %v2427_v27  ;;  %v2330_v43 = vsub.f32 1.0, %v2329_v2  ;;  %v2259_v50 = vadd.f32 %v2258_v40, %v5244_v7 }
 0xc17   : > { %v2339_v49 = vand.u32 2147483648, %v5597_v19  ;;  %vm2368_vm14 = vweird.f32 %v5609_v52  ;;  %vm2373_vm15 = vcmp.eq.f32.partialorder %v2372_v21, 8.507059e+37  ;;  %v2375_v42 = vor.u32 1.1754944e-38, %v2374_v9 }
 0xc18   : > { %v2345_v28 = vadd.f32 %v2240_v11, %v2175_v53  ;;  %v2331_v17 = vmul.f32 %v5613_v61, %v2330_v43  ;;  %v2425_v41 = vmul.f32 %v2326_v24, %v2259_v50 }
 0xc19   : > { %v2340_v2 = vor.u32 1.1754944e-38, %v2339_v49 }
 0xc1a   : > { %v4440_v37 = vpop.eup %4439  ;;  %v4034_v39 = vmul.f32 -1.442695, %v2345_v28  ;;  %v2332_v31 = vadd.f32 %v5613_v61, %v2331_v17  ;;  %v2429_v28 = vadd.f32 %v2425_v41, %v2194_v60 }
 0xc1b   : > { %v4442_v16 = vpop.eup %4441  ;;  %v5628_v48 = vadd.f32 1.0, %v4440_v37 }
 0xc1c   : > { %v2364_v30 = vmul.f32 %v4442_v16, %v5609_v52  ;;  %4445 = vpow2.f32 %v4034_v39  ;;  %vm2369_vm10 = vweird.f32 %v4442_v16  ;;  %v4444_v10 = vpop.eup %4443 }
 0xc1d   : > { %4447 = vrcp.f32 %v5628_v48  ;;  %v2241_v58 = vpop.f32.mrf.mxu0  ;;  %vm2370_vm1 = vmor %vm2368_vm14, %vm2369_vm10  ;;  %v2260_v44 = vpop.f32.mrf.mxu1  ;;  %v2435_v52 = vsub.f32 %v5404_v47, %v4444_v10  ;;  %v2336_v47 = vsel %vm5664_vm3, %v5613_v61, %v2332_v31  ;;  %v2389_v37 = vand.u32 2147483648, %v5628_v48 }
 0xc1e   : > { %v2365_v62 = vsub.f32 1.0, %v2364_v30  ;;  %v2242_v13 = vadd.f32 %v2241_v58, %v5231_v23  ;;  %4449 = vtanh.f32 %v2428_v54  ;;  %v2261_v32 = vadd.f32 %v2260_v44, %v5244_v7 }
 0xc1f   : > { %v2387_v39 = vand.u32 2147483647, %v5628_v48  ;;  %vm2383_vm6 = vweird.f32 %v5628_v48  ;;  %v2390_v60 = vor.u32 1.1754944e-38, %v2389_v37  ;;  %v2196_v58 = vadd.f32 %v2195_v59, %v5254_v35 }
 0xc20   : > { %v2346_v25 = vadd.f32 %v2242_v13, %v2177_v56  ;;  %v2366_v29 = vmul.f32 %v4442_v16, %v2365_v62 }
 0xc21   : > { %vm2388_vm8 = vcmp.eq.f32.partialorder %v2387_v39, 8.507059e+37 }
 0xc22   : > { %v4446_v63 = vpop.eup %4445  ;;  %v4035_v51 = vmul.f32 -1.442695, %v2346_v25  ;;  %v2367_v38 = vadd.f32 %v4442_v16, %v2366_v29 }
 0xc23   : > { %v4448_v55 = vpop.eup %4447  ;;  %v5653_v34 = vadd.f32 1.0, %v4446_v63 }
 0xc24   : > { %v2379_v46 = vmul.f32 %v4448_v55, %v5628_v48  ;;  %4451 = vpow2.f32 %v4035_v51  ;;  %v2371_v53 = vsel %vm2370_vm1, %v4442_v16, %v2367_v38  ;;  %v4450_v19 = vpop.eup %4449  ;;  %vm2384_vm4 = vweird.f32 %v4448_v55 }
 0xc25   : > { %4453 = vrcp.f32 %v5653_v34  ;;  %v2376_v11 = vsel %vm2373_vm15, %v2375_v42, %v2371_v53  ;;  %v2341_v16 = vsel %vm2338_vm5, %v2340_v2, %v2336_v47  ;;  %vm2385_vm7 = vmor %vm2383_vm6, %vm2384_vm4  ;;  %v2436_v33 = vsub.f32 %v5409_v3, %v4450_v19 }
 0xc26   : > { %v2380_v20 = vsub.f32 1.0, %v2379_v46  ;;  %v2439_v6 = vmul.f32 %v2435_v52, %v2376_v11  ;;  %4455 = vtanh.f32 %v2429_v28  ;;  %v2426_v1 = vmul.f32 %v2341_v16, %v2261_v32 }
 0xc27   : > { %v2404_v21 = vand.u32 2147483648, %v5653_v34  ;;  %v2402_v17 = vand.u32 2147483647, %v5653_v34  ;;  %vm2398_vm10 = vweird.f32 %v5653_v34 }
 0xc28   : > { %v5673_v4 = vadd.f32 %v4444_v10, %v2439_v6  ;;  %v2381_v15 = vmul.f32 %v4448_v55, %v2380_v20  ;;  %v2430_v48 = vadd.f32 %v2426_v1, %v2196_v58 }
 0xc29   : > { %v2405_v10 = vor.u32 1.1754944e-38, %v2404_v21  ;;  %vm2403_vm14 = vcmp.eq.f32.partialorder %v2402_v17, 8.507059e+37 }
 0xc2a   : > { %v4452_v40 = vpop.eup %4451  ;;  %v2447_v26 = vsel %vm442_vm0, %v5673_v4, 0.0  ;;  %v2382_v43 = vadd.f32 %v4448_v55, %v2381_v15 }
 0xc2b   : > { %v4454_v61 = vpop.eup %4453  ;;  %v2362_v30 = vadd.f32 1.0, %v4452_v40  ;;  %2448 = vadd.xlane.f32.xlu1 %v2447_v26 }
 0xc2c   : > { %v2394_v56 = vmul.f32 %v4454_v61, %v5653_v34  ;;  %v2386_v54 = vsel %vm2385_vm7, %v4448_v55, %v2382_v43  ;;  %vm2399_vm9 = vweird.f32 %v4454_v61  ;;  %v4456_v9 = vpop.eup %4455 }
 0xc2d   : > { %4457 = vrcp.f32 %v2362_v30  ;;  %v2391_v62 = vsel %vm2388_vm8, %v2390_v60, %v2386_v54  ;;  %vm2400_vm13 = vmor %vm2398_vm10, %vm2399_vm9  ;;  %v2437_v63 = vsub.f32 %v5414_v0, %v4456_v9  ;;  %v2419_v41 = vand.u32 2147483648, %v2362_v30 }
 0xc2e   : > { %v2395_v45 = vsub.f32 1.0, %v2394_v56  ;;  %v2440_v13 = vmul.f32 %v2436_v33, %v2391_v62  ;;  %4459 = vtanh.f32 %v2430_v48  ;;  %v2417_v46 = vand.u32 2147483647, %v2362_v30 }
 0xc2f   : > { %vm2413_vm1 = vweird.f32 %v2362_v30  ;;  %v2420_v52 = vor.u32 1.1754944e-38, %v2419_v41 }
 0xc30   : > { %v5683_v50 = vadd.f32 %v4450_v19, %v2440_v13  ;;  %v2396_v12 = vmul.f32 %v4454_v61, %v2395_v45  ;;  %vm2418_vm3 = vcmp.eq.f32.partialorder %v2417_v46, 8.507059e+37 }
 0xc32   : > { %v2450_v25 = vsel %vm442_vm0, %v5683_v50, 0.0  ;;  %v2397_v3 = vadd.f32 %v4454_v61, %v2396_v12 }
 0xc33   : > { %v4458_v29 = vpop.eup %4457  ;;  %2451 = vadd.xlane.f32.xlu2 %v2450_v25 }
 0xc34   : > { %v2409_v24 = vmul.f32 %v4458_v29, %v2362_v30  ;;  %v2401_v49 = vsel %vm2400_vm13, %v4454_v61, %v2397_v3  ;;  %vm2414_vm15 = vweird.f32 %v4458_v29  ;;  %v4460_v34 = vpop.eup %4459 }
 0xc35   : > { %v2406_v51 = vsel %vm2403_vm14, %v2405_v10, %v2401_v49  ;;  %vm2415_vm2 = vmor %vm2413_vm1, %vm2414_vm15  ;;  %v2438_v0 = vsub.f32 %v5419_v18, %v4460_v34 }
 0xc36   : > { %v2410_v38 = vsub.f32 1.0, %v2409_v24  ;;  %v2441_v55 = vmul.f32 %v2437_v63, %v2406_v51 }
 0xc38   : > { %v5690_v31 = vadd.f32 %v4456_v9, %v2441_v55  ;;  %v2411_v42 = vmul.f32 %v4458_v29, %v2410_v38 }
 0xc3a   : > { %v2453_v44 = vsel %vm442_vm0, %v5690_v31, 0.0  ;;  %v2412_v53 = vadd.f32 %v4458_v29, %v2411_v42 }
 0xc3b   : > { %2454 = vadd.xlane.f32.xlu0 %v2453_v44 }
 0xc3c   : > { %v2416_v8 = vsel %vm2415_vm2, %v4458_v29, %v2412_v53 }
 0xc3d   : > { %v2421_v11 = vsel %vm2418_vm3, %v2420_v52, %v2416_v8 }
 0xc3e   : > { %v2442_v20 = vmul.f32 %v2438_v0, %v2421_v11 }
 0xc40   : > { %v5695_v27 = vadd.f32 %v4460_v34, %v2442_v20  ;;  %v4571_v20 = vld [vmem:[%s6255_s2 + $0x4] ss:$0 sm:$0xff] }
 0xc42   : > { %v2456_v2 = vsel %vm442_vm0, %v5695_v27, 0.0 }
 0xc43   : > { %2457 = vadd.xlane.f32.xlu1 %v2456_v2 }
 0xc9e   : > { %v2449_v6 = vpop.xlane.xlu1 %2448 }
 0xc9f   : > { %v2459_v28 = vmul.f32 %v2449_v6, %v4686_v14 }
 0xca1   : > { %v2463_v32 = vsub.f32 %v5673_v4, %v2459_v28 }
 0xca3   : > { %v2467_v47 = vmul.f32 %v2463_v32, %v2463_v32 }
 0xca5   : > { %v2471_v37 = vsel %vm442_vm0, %v2467_v47, 0.0 }
 0xca6   : > { %v2452_v19 = vpop.xlane.xlu2 %2451  ;;  %2472 = vadd.xlane.f32.xlu2 %v2471_v37 }
 0xca7   : > { %v2460_v18 = vmul.f32 %v2452_v19, %v4686_v14 }
 0xca9   : > { %v2464_v15 = vsub.f32 %v5683_v50, %v2460_v18 }
 0xcab   : > { %v2468_v39 = vmul.f32 %v2464_v15, %v2464_v15 }
 0xcad   : > { %v2474_v40 = vsel %vm442_vm0, %v2468_v39, 0.0 }
 0xcae   : > { %v2455_v59 = vpop.xlane.xlu0 %2454  ;;  %2475 = vadd.xlane.f32.xlu0 %v2474_v40 }
 0xcaf   : > { %v2461_v16 = vmul.f32 %v2455_v59, %v4686_v14 }
 0xcb1   : > { %v5707_v26 = vsub.f32 %v5690_v31, %v2461_v16 }
 0xcb3   : > { %v2469_v43 = vmul.f32 %v5707_v26, %v5707_v26 }
 0xcb5   : > { %v2477_v61 = vsel %vm442_vm0, %v2469_v43, 0.0 }
 0xcb6   : > { %2478 = vadd.xlane.f32.xlu1 %v2477_v61  ;;  %v2458_v30 = vpop.xlane.xlu1 %2457 }
 0xcb7   : > { %v2462_v1 = vmul.f32 %v2458_v30, %v4686_v14 }
 0xcb9   : > { %v5714_v60 = vsub.f32 %v5695_v27, %v2462_v1 }
 0xcbb   : > { %v2470_v56 = vmul.f32 %v5714_v60, %v5714_v60 }
 0xcbd   : > { %v2480_v54 = vsel %vm442_vm0, %v2470_v56, 0.0 }
 0xcbe   : > { %2481 = vadd.xlane.f32.xlu2 %v2480_v54 }
 0xd19   : > { %v2473_v33 = vpop.xlane.xlu2 %2472 }
 0xd1a   : > { %v2483_v58 = vmul.f32 %v2473_v33, %v4686_v14 }
 0xd1c   : > { %v2487_v62 = vadd.f32 1e-05, %v2483_v58 }
 0xd1e   : > { %4461 = vrsqrt.f32 %v2487_v62  ;;  %vm2497_vm5 = vweird.f32 %v2487_v62 }
 0xd21   : > { %v2476_v45 = vpop.xlane.xlu0 %2475 }
 0xd22   : > { %v2484_v13 = vmul.f32 %v2476_v45, %v4686_v14 }
 0xd24   : > { %v4462_v48 = vpop.eup %4461  ;;  %v2488_v21 = vadd.f32 1e-05, %v2484_v13 }
 0xd25   : > { %v2492_v12 = vmul.f32 %v4462_v48, %v2487_v62  ;;  %vm2498_vm4 = vweird.f32 %v4462_v48 }
 0xd26   : > { %4463 = vrsqrt.f32 %v2488_v21  ;;  %vm2499_vm6 = vmor %vm2497_vm5, %vm2498_vm4  ;;  %vm2507_vm8 = vweird.f32 %v2488_v21 }
 0xd27   : > { %v2493_v17 = vmul.f32 %v4462_v48, %v2492_v12  ;;  %v4573_v12 = vld [vmem:[%s6255_s2 + $0x6] ss:$0 sm:$0xff] }
 0xd29   : > { %v2494_v9 = vmul.f32 0.5, %v2493_v17  ;;  %v2479_v25 = vpop.xlane.xlu1 %2478 }
 0xd2a   : > { %v2485_v3 = vmul.f32 %v2479_v25, %v4686_v14 }
 0xd2b   : > { %v2495_v29 = vsub.f32 1.5, %v2494_v9 }
 0xd2c   : > { %v4464_v10 = vpop.eup %4463  ;;  %v2489_v24 = vadd.f32 1e-05, %v2485_v3 }
 0xd2d   : > { %v2496_v49 = vmul.f32 %v4462_v48, %v2495_v29  ;;  %v2502_v63 = vmul.f32 %v4464_v10, %v2488_v21  ;;  %vm2508_vm7 = vweird.f32 %v4464_v10 }
 0xd2e   : > { %4465 = vrsqrt.f32 %v2489_v24  ;;  %vm2509_vm9 = vmor %vm2507_vm8, %vm2508_vm7  ;;  %vm2517_vm13 = vweird.f32 %v2489_v24 }
 0xd2f   : > { %v2503_v51 = vmul.f32 %v4464_v10, %v2502_v63  ;;  %v2500_v38 = vsel %vm2499_vm6, %v4462_v48, %v2496_v49 }
 0xd30   : > { %v2531_v44 = vmul.f32 %v2500_v38, %v2463_v32  ;;  %v4572_v32 = vld [vmem:[%s6255_s2 + $0x5] ss:$0 sm:$0xff] }
 0xd31   : > { %v2504_v55 = vmul.f32 0.5, %v2503_v51  ;;  %v2482_v41 = vpop.xlane.xlu2 %2481 }
 0xd32   : > { %v2486_v42 = vmul.f32 %v2482_v41, %v4686_v14  ;;  %v2535_v2 = vmul.f32 %v4571_v20, %v2531_v44  ;;  %v4574_v41 = vld [vmem:[%s6255_s2 + $0x7] ss:$0 sm:$0xff] }
 0xd33   : > { %v2505_v46 = vsub.f32 1.5, %v2504_v55 }
 0xd34   : > { %v4466_v34 = vpop.eup %4465  ;;  %v2490_v53 = vadd.f32 1e-05, %v2486_v42  ;;  %v2539_v18 = vadd.f32 %v4572_v32, %v2535_v2 }
 0xd35   : > { %v2506_v52 = vmul.f32 %v4464_v10, %v2505_v46  ;;  %v2512_v8 = vmul.f32 %v4466_v34, %v2489_v24  ;;  %vm2518_vm10 = vweird.f32 %v4466_v34 }
 0xd36   : > { %4467 = vrsqrt.f32 %v2490_v53  ;;  %vm2519_vm14 = vmor %vm2517_vm13, %vm2518_vm10  ;;  %vm2527_vm1 = vweird.f32 %v2490_v53 }
 0xd37   : > { %v2510_v0 = vsel %vm2509_vm9, %v4464_v10, %v2506_v52  ;;  %v2513_v11 = vmul.f32 %v4466_v34, %v2512_v8 }
 0xd38   : > { %v2532_v6 = vmul.f32 %v2510_v0, %v2464_v15 }
 0xd39   : > { %v2514_v28 = vmul.f32 0.5, %v2513_v11 }
 0xd3a   : > { %v2536_v47 = vmul.f32 %v4571_v20, %v2532_v6 }
 0xd3b   : > { %v2515_v37 = vsub.f32 1.5, %v2514_v28 }
 0xd3c   : > { %v4468_v19 = vpop.eup %4467  ;;  %v2540_v39 = vadd.f32 %v4572_v32, %v2536_v47 }
 0xd3d   : > { %v2516_v40 = vmul.f32 %v4466_v34, %v2515_v37  ;;  %v2522_v59 = vmul.f32 %v4468_v19, %v2490_v53  ;;  %vm2528_vm15 = vweird.f32 %v4468_v19 }
 0xd3e   : > { %v2543_v16 = vpack.c.bf16 %v2540_v39, %v2539_v18  ;;  %vm2529_vm2 = vmor %vm2527_vm1, %vm2528_vm15 }
 0xd3f   : > { %v2523_v43 = vmul.f32 %v4468_v19, %v2522_v59  ;;  %v2520_v15 = vsel %vm2519_vm14, %v4466_v34, %v2516_v40 }
 0xd40   : > { %4036 = vmatmul.msk.bf16.vlgmr.msra.gmra.mxu3 %vm442_vm0, %v2543_v16  ;;  %v2533_v1 = vmul.f32 %v2520_v15, %v5707_v26 }
 0xd41   : > { %v2524_v61 = vmul.f32 0.5, %v2523_v43 }
 0xd42   : > { %v2537_v58 = vmul.f32 %v4571_v20, %v2533_v1 }
 0xd43   : > { %v2525_v30 = vsub.f32 1.5, %v2524_v61 }
 0xd44   : > { %v2541_v45 = vadd.f32 %v4572_v32, %v2537_v58 }
 0xd45   : > { %v2526_v56 = vmul.f32 %v4468_v19, %v2525_v30 }
 0xd47   : > { %v2530_v54 = vsel %vm2529_vm2, %v4468_v19, %v2526_v56 }
 0xd48   : > { %v2534_v33 = vmul.f32 %v2530_v54, %v5714_v60 }
 0xd4a   : > { %v2538_v62 = vmul.f32 %v4571_v20, %v2534_v33 }
 0xd4c   : > { %v2542_v13 = vadd.f32 %v4572_v32, %v2538_v62 }
 0xd4e   : > { %v2544_v48 = vpack.c.bf16 %v2542_v13, %v2541_v45 }
 0xd50   : > { %4037 = vmatmul.msk.bf16.gmra.mxu3 %vm442_vm0, %v2544_v48 }
 0xdc3   : > { %v2560_v21 = vpop.f32.mrf.mxu3 }
 0xdc4   : > { %v2561_v17 = vadd.f32 %v4573_v12, %v2560_v21 }
 0xdc6   : > { %v2570_v25 = vmax.f32 %v2561_v17, 0.0 }
 0xdcb   : > { %v2562_v26 = vpop.f32.mrf.mxu3 }
 0xdcc   : > { %v2563_v9 = vadd.f32 %v4573_v12, %v2562_v26 }
 0xdce   : > { %v2571_v3 = vmax.f32 %v2563_v9, 0.0 }
 0xdd0   : > { %v2574_v29 = vpack.c.bf16 %v2571_v3, %v2570_v25 }
 0xdd2   : > { %2584 = vmatmul.bf16.vlgmr.msrb.gmra.mxu2 %v2574_v29 }
 0xdd3   : > { %v2565_v60 = vpop.f32.mrf.mxu3 }
 0xdd4   : > { %v2566_v10 = vadd.f32 %v4573_v12, %v2565_v60 }
 0xdd6   : > { %v2572_v63 = vmax.f32 %v2566_v10, 0.0 }
 0xddb   : > { %v2567_v24 = vpop.f32.mrf.mxu3 }
 0xddc   : > { %v2568_v49 = vadd.f32 %v4573_v12, %v2567_v24 }
 0xdde   : > { %v2573_v51 = vmax.f32 %v2568_v49, 0.0 }
 0xde0   : > { %v2575_v38 = vpack.c.bf16 %v2573_v51, %v2572_v63 }
 0xde2   : > { %2589 = vmatmul.bf16.gmra.mxu2 %v2575_v38 }
 0xe55   : > { %v2585_v55 = vpop.f32.mrf.mxu2 }
 0xe56   : > { %v2586_v42 = vadd.f32 %v4574_v41, %v2585_v55 }
 0xe58   : > { %v5740_v46 = vadd.f32 %v2586_v42, %v5673_v4 }
 0xe5a   : > { %v2599_v34 = vsel %vm442_vm0, %v5740_v46, 0.0 }
 0xe5b   : > { %2600 = vadd.xlane.f32.xlu0 %v2599_v34 }
 0xe5d   : > { %v2587_v44 = vpop.f32.mrf.mxu2 }
 0xe5e   : > { %v2588_v53 = vadd.f32 %v4574_v41, %v2587_v44 }
 0xe60   : > { %v5745_v52 = vadd.f32 %v2588_v53, %v5683_v50 }
 0xe62   : > { %v2602_v8 = vsel %vm442_vm0, %v5745_v52, 0.0 }
 0xe63   : > { %2603 = vadd.xlane.f32.xlu1 %v2602_v8 }
 0xe65   : > { %v2590_v0 = vpop.f32.mrf.mxu2 }
 0xe66   : > { %v2591_v11 = vadd.f32 %v4574_v41, %v2590_v0 }
 0xe68   : > { %v5750_v20 = vadd.f32 %v2591_v11, %v5690_v31 }
 0xe6a   : > { %v2605_v4 = vsel %vm442_vm0, %v5750_v20, 0.0 }
 0xe6b   : > { %2606 = vadd.xlane.f32.xlu2 %v2605_v4 }
 0xe6d   : > { %v2592_v2 = vpop.f32.mrf.mxu2 }
 0xe6e   : > { %v2593_v6 = vadd.f32 %v4574_v41, %v2592_v2 }
 0xe70   : > { %v5755_v28 = vadd.f32 %v2593_v6, %v5695_v27  ;;  %v4575_v6 = vld [vmem:[%s6255_s2 + $0x2] ss:$0 sm:$0xff] }
 0xe72   : > { %v2608_v50 = vsel %vm442_vm0, %v5755_v28, 0.0 }
 0xe73   : > { %2609 = vadd.xlane.f32.xlu0 %v2608_v50 }
 0xece   : > { %v2601_v47 = vpop.xlane.xlu0 %2600 }
 0xecf   : > { %v2611_v37 = vmul.f32 %v2601_v47, %v4686_v14 }
 0xed1   : > { %v2615_v19 = vsub.f32 %v5740_v46, %v2611_v37 }
 0xed3   : > { %v2619_v31 = vmul.f32 %v2615_v19, %v2615_v19 }
 0xed5   : > { %v2623_v32 = vsel %vm442_vm0, %v2619_v31, 0.0 }
 0xed6   : > { %2624 = vadd.xlane.f32.xlu1 %v2623_v32  ;;  %v2604_v18 = vpop.xlane.xlu1 %2603 }
 0xed7   : > { %v2612_v39 = vmul.f32 %v2604_v18, %v4686_v14 }
 0xed9   : > { %v2616_v40 = vsub.f32 %v5745_v52, %v2612_v39 }
 0xedb   : > { %v2620_v27 = vmul.f32 %v2616_v40, %v2616_v40 }
 0xedd   : > { %v2626_v59 = vsel %vm442_vm0, %v2620_v27, 0.0 }
 0xede   : > { %v2607_v16 = vpop.xlane.xlu2 %2606  ;;  %2627 = vadd.xlane.f32.xlu2 %v2626_v59 }
 0xedf   : > { %v2613_v43 = vmul.f32 %v2607_v16, %v4686_v14 }
 0xee1   : > { %v5767_v15 = vsub.f32 %v5750_v20, %v2613_v43 }
 0xee3   : > { %v2621_v61 = vmul.f32 %v5767_v15, %v5767_v15 }
 0xee5   : > { %v2629_v30 = vsel %vm442_vm0, %v2621_v61, 0.0 }
 0xee6   : > { %v2610_v1 = vpop.xlane.xlu0 %2609  ;;  %2630 = vadd.xlane.f32.xlu0 %v2629_v30 }
 0xee7   : > { %v2614_v56 = vmul.f32 %v2610_v1, %v4686_v14 }
 0xee9   : > { %v5774_v54 = vsub.f32 %v5755_v28, %v2614_v56 }
 0xeeb   : > { %v2622_v33 = vmul.f32 %v5774_v54, %v5774_v54 }
 0xeed   : > { %v2632_v58 = vsel %vm442_vm0, %v2622_v33, 0.0 }
 0xeee   : > { %2633 = vadd.xlane.f32.xlu1 %v2632_v58 }
 0xf49   : > { %v2625_v62 = vpop.xlane.xlu1 %2624 }
 0xf4a   : > { %v2635_v45 = vmul.f32 %v2625_v62, %v4686_v14 }
 0xf4c   : > { %v2639_v13 = vadd.f32 1e-05, %v2635_v45 }
 0xf4e   : > { %4469 = vrsqrt.f32 %v2639_v13  ;;  %vm2649_vm4 = vweird.f32 %v2639_v13 }
 0xf51   : > { %v2628_v48 = vpop.xlane.xlu2 %2627 }
 0xf52   : > { %v2636_v21 = vmul.f32 %v2628_v48, %v4686_v14 }
 0xf54   : > { %v4470_v12 = vpop.eup %4469  ;;  %v2640_v17 = vadd.f32 1e-05, %v2636_v21 }
 0xf55   : > { %v2644_v26 = vmul.f32 %v4470_v12, %v2639_v13  ;;  %vm2650_vm3 = vweird.f32 %v4470_v12 }
 0xf56   : > { %4471 = vrsqrt.f32 %v2640_v17  ;;  %vm2651_vm5 = vmor %vm2649_vm4, %vm2650_vm3  ;;  %vm2659_vm7 = vweird.f32 %v2640_v17 }
 0xf57   : > { %v2645_v9 = vmul.f32 %v4470_v12, %v2644_v26 }
 0xf59   : > { %v2646_v25 = vmul.f32 0.5, %v2645_v9  ;;  %v2631_v3 = vpop.xlane.xlu0 %2630 }
 0xf5a   : > { %v2637_v29 = vmul.f32 %v2631_v3, %v4686_v14 }
 0xf5b   : > { %v2647_v60 = vsub.f32 1.5, %v2646_v25 }
 0xf5c   : > { %v4472_v10 = vpop.eup %4471  ;;  %v2641_v24 = vadd.f32 1e-05, %v2637_v29 }
 0xf5d   : > { %v2648_v49 = vmul.f32 %v4470_v12, %v2647_v60  ;;  %v2654_v63 = vmul.f32 %v4472_v10, %v2640_v17  ;;  %vm2660_vm6 = vweird.f32 %v4472_v10 }
 0xf5e   : > { %4473 = vrsqrt.f32 %v2641_v24  ;;  %vm2661_vm8 = vmor %vm2659_vm7, %vm2660_vm6  ;;  %vm2669_vm10 = vweird.f32 %v2641_v24 }
 0xf5f   : > { %v2655_v51 = vmul.f32 %v4472_v10, %v2654_v63  ;;  %v2652_v38 = vsel %vm2651_vm5, %v4470_v12, %v2648_v49 }
 0xf60   : > { %v2683_v53 = vmul.f32 %v2652_v38, %v2615_v19  ;;  %v4576_v19 = vld [vmem:[%s6255_s2 + $0x3] ss:$0 sm:$0xff] }
 0xf61   : > { %v2656_v55 = vmul.f32 0.5, %v2655_v51  ;;  %v2634_v41 = vpop.xlane.xlu1 %2633 }
 0xf62   : > { %v2638_v42 = vmul.f32 %v2634_v41, %v4686_v14  ;;  %v2687_v50 = vmul.f32 %v4575_v6, %v2683_v53 }
 0xf63   : > { %v2657_v34 = vsub.f32 1.5, %v2656_v55 }
 0xf64   : > { %v4474_v44 = vpop.eup %4473  ;;  %v2642_v8 = vadd.f32 1e-05, %v2638_v42  ;;  %v2691_v39 = vadd.f32 %v4576_v19, %v2687_v50 }
 0xf65   : > { %v2658_v0 = vmul.f32 %v4472_v10, %v2657_v34  ;;  %v2664_v11 = vmul.f32 %v4474_v44, %v2641_v24  ;;  %vm2670_vm9 = vweird.f32 %v4474_v44 }
 0xf66   : > { %4475 = vrsqrt.f32 %v2642_v8  ;;  %vm2671_vm13 = vmor %vm2669_vm10, %vm2670_vm9  ;;  %vm2679_vm15 = vweird.f32 %v2642_v8 }
 0xf67   : > { %v2662_v4 = vsel %vm2661_vm8, %v4472_v10, %v2658_v0  ;;  %v2665_v2 = vmul.f32 %v4474_v44, %v2664_v11 }
 0xf68   : > { %v2684_v47 = vmul.f32 %v2662_v4, %v2616_v40 }
 0xf69   : > { %v2666_v37 = vmul.f32 0.5, %v2665_v2 }
 0xf6a   : > { %v2688_v31 = vmul.f32 %v4575_v6, %v2684_v47 }
 0xf6b   : > { %v2667_v32 = vsub.f32 1.5, %v2666_v37 }
 0xf6c   : > { %v4476_v18 = vpop.eup %4475  ;;  %v2692_v27 = vadd.f32 %v4576_v19, %v2688_v31 }
 0xf6d   : > { %v2668_v59 = vmul.f32 %v4474_v44, %v2667_v32  ;;  %v2674_v16 = vmul.f32 %v4476_v18, %v2642_v8  ;;  %vm2680_vm14 = vweird.f32 %v4476_v18 }
 0xf6e   : > { %v2695_v43 = vpack.c.bf16 %v2692_v27, %v2691_v39  ;;  %vm2681_vm1 = vmor %vm2679_vm15, %vm2680_vm14 }
 0xf6f   : > { %v2675_v61 = vmul.f32 %v4476_v18, %v2674_v16  ;;  %v2672_v40 = vsel %vm2671_vm13, %v4474_v44, %v2668_v59 }
 0xf70   : > { %4038 = vmatmul.msk.bf16.vlgmr.msra.gmra.mxu0 %vm442_vm0, %v2695_v43  ;;  %v2685_v56 = vmul.f32 %v2672_v40, %v5767_v15 }
 0xf71   : > { %v2676_v30 = vmul.f32 0.5, %v2675_v61 }
 0xf72   : > { %v2689_v45 = vmul.f32 %v4575_v6, %v2685_v56 }
 0xf73   : > { %v2677_v1 = vsub.f32 1.5, %v2676_v30 }
 0xf74   : > { %v2693_v48 = vadd.f32 %v4576_v19, %v2689_v45 }
 0xf75   : > { %v2678_v33 = vmul.f32 %v4476_v18, %v2677_v1 }
 0xf77   : > { %v2682_v58 = vsel %vm2681_vm1, %v4476_v18, %v2678_v33 }
 0xf78   : > { %v2686_v62 = vmul.f32 %v2682_v58, %v5774_v54 }
 0xf7a   : > { %v2690_v13 = vmul.f32 %v4575_v6, %v2686_v62 }
 0xf7c   : > { %v2694_v21 = vadd.f32 %v4576_v19, %v2690_v13 }
 0xf7e   : > { %v2696_v12 = vpack.c.bf16 %v2694_v21, %v2693_v48 }
 0xf80   : > { %4039 = vmatmul.msk.bf16.gmra.mxu0 %vm442_vm0, %v2696_v12 }
 0xfed   : > { %v2712_v17 = vpop.f32.mrf.mxu0 }
 0xfee   : > { %v2722_v26 = vpack.c.bf16 %v2712_v17, %v2712_v17 }
 0xff0   : > { %v2728_v3 = vunpack.c.l.b16 %v2722_v26 }
 0xff5   : > { %v2714_v9 = vpop.f32.mrf.mxu0 }
 0xff6   : > { %v2723_v25 = vpack.c.bf16 %v2714_v9, %v2714_v9 }
 0xff8   : > { %v2729_v29 = vunpack.c.l.b16 %v2723_v25 }
 0xffa   : > { %v2730_v15 = vpack.c.b16 %v2729_v29, %v2728_v3 }
 0xffc   : > { %2740 = vmatmul.bf16.vlgmr.msra.gmra.mxu1 %v2730_v15 }
 0xffd   : > { %v2717_v60 = vpop.f32.mrf.mxu0 }
 0xffe   : > { %v2724_v10 = vpack.c.bf16 %v2717_v60, %v2717_v60 }
0x1000   : > { %v2848_v54 = vunpack.c.l.b16 %v2724_v10 }
0x1005   : > { %v2719_v24 = vpop.f32.mrf.mxu0 }
0x1006   : > { %v2725_v49 = vpack.c.bf16 %v2719_v24, %v2719_v24 }
0x1008   : > { %v2849_v63 = vunpack.c.l.b16 %v2725_v49 }
0x100a   : > { %v2850_v51 = vpack.c.b16 %v2849_v63, %v2848_v54 }
0x100c   : > { %2860 = vmatmul.bf16.vlgmr.msra.gmra.mxu2 %v2850_v51 }
0x1079   : > { %v2741_v38 = vpop.f32.mrf.mxu1 }
0x107a   : > { %v2748_v42 = vsel %vm809_vm12, %v2741_v38, -inf }
0x1081   : > { %v2743_v55 = vpop.f32.mrf.mxu1 }
0x1082   : > { %v2747_v41 = vsel %vm615_vm11, %v2743_v55, -1e+30 }
0x1083   : > { %v2749_v34 = vsel %vm809_vm12, %v2747_v41, -inf }
0x1084   : > { %v2750_v44 = vmax.f32 %v2748_v42, %v2749_v34 }
0x1086   : > { %v2751_v53 = vrot.slane %v2750_v44, 4 }
0x1088   : > { %v2752_v8 = vmax.f32 %v2750_v44, %v2751_v53 }
0x108a   : > { %v2753_v0 = vrot.slane %v2752_v8, 2 }
0x108c   : > { %v2754_v11 = vmax.f32 %v2752_v8, %v2753_v0 }
0x108e   : > { %v2755_v4 = vrot.slane %v2754_v11, 1 }
0x108f   : > { %v2861_v2 = vpop.f32.mrf.mxu2 }
0x1090   : > { %v2756_v6 = vmax.f32 %v2754_v11, %v2755_v4  ;;  %v2868_v19 = vsel %vm809_vm12, %v2861_v2, -inf }
0x1092   : > { %v2757_v50 = vsub.f32 %v2741_v38, %v2756_v6  ;;  %v2758_v47 = vsub.f32 %v2747_v41, %v2756_v6 }
0x1094   : > { %v2759_v37 = vmul.f32 1.442695, %v2757_v50  ;;  %v2761_v31 = vmul.f32 1.442695, %v2758_v47 }
0x1096   : > { %4477 = vpow2.f32 %v2759_v37 }
0x1097   : > { %4479 = vpow2.f32 %v2761_v31  ;;  %v2863_v32 = vpop.f32.mrf.mxu2 }
0x1098   : > { %v2867_v18 = vsel %vm615_vm11, %v2863_v32, -1e+30 }
0x1099   : > { %v2869_v39 = vsel %vm809_vm12, %v2867_v18, -inf }
0x109a   : > { %v2870_v27 = vmax.f32 %v2868_v19, %v2869_v39 }
0x109c   : > { %v4478_v59 = vpop.eup %4477  ;;  %v2871_v16 = vrot.slane %v2870_v27, 4 }
0x109d   : > { %v4480_v43 = vpop.eup %4479  ;;  %v2763_v61 = vsel %vm809_vm12, %v4478_v59, 0.0 }
0x109e   : > { %v2764_v40 = vsel %vm809_vm12, %v4480_v43, 0.0  ;;  %v2872_v30 = vmax.f32 %v2870_v27, %v2871_v16 }
0x109f   : > { %v2765_v1 = vadd.f32 %v2764_v40, %v2763_v61 }
0x10a0   : > { %v2873_v56 = vrot.slane %v2872_v30, 2 }
0x10a1   : > { %v2766_v33 = vrot.slane %v2765_v1, 4 }
0x10a2   : > { %v2874_v58 = vmax.f32 %v2872_v30, %v2873_v56 }
0x10a3   : > { %v2767_v62 = vadd.f32 %v2766_v33, %v2765_v1 }
0x10a4   : > { %v2875_v36 = vrot.slane %v2874_v58, 1 }
0x10a5   : > { %v2768_v45 = vrot.slane %v2767_v62, 2 }
0x10a6   : > { %v2876_v13 = vmax.f32 %v2874_v58, %v2875_v36 }
0x10a7   : > { %v2769_v48 = vadd.f32 %v2768_v45, %v2767_v62 }
0x10a8   : > { %v2877_v21 = vsub.f32 %v2861_v2, %v2876_v13  ;;  %v2878_v12 = vsub.f32 %v2867_v18, %v2876_v13 }
0x10a9   : > { %v2770_v17 = vrot.slane %v2769_v48, 1 }
0x10aa   : > { %v2879_v26 = vmul.f32 1.442695, %v2877_v21  ;;  %v2881_v9 = vmul.f32 1.442695, %v2878_v12 }
0x10ab   : > { %v2771_v25 = vadd.f32 %v2770_v17, %v2769_v48 }
0x10ac   : > { %4481 = vpow2.f32 %v2879_v26 }
0x10ad   : > { %4483 = vrcp.f32 %v2771_v25  ;;  %v2783_v63 = vand.u32 2147483648, %v2771_v25  ;;  %v2781_v55 = vand.u32 2147483647, %v2771_v25  ;;  %vm2777_vm2 = vweird.f32 %v2771_v25 }
0x10ae   : > { %4485 = vpow2.f32 %v2881_v9 }
0x10af   : > { %v2784_v34 = vor.u32 1.1754944e-38, %v2783_v63  ;;  %vm2782_vm4 = vcmp.eq.f32.partialorder %v2781_v55, 8.507059e+37 }
0x10b2   : > { %v4482_v3 = vpop.eup %4481 }
0x10b3   : > { %v4484_v29 = vpop.eup %4483  ;;  %v2883_v15 = vsel %vm809_vm12, %v4482_v3, 0.0 }
0x10b4   : > { %v4486_v60 = vpop.eup %4485  ;;  %v2773_v10 = vmul.f32 %v4484_v29, %v2771_v25  ;;  %vm2778_vm11 = vweird.f32 %v4484_v29 }
0x10b5   : > { %v2884_v24 = vsel %vm809_vm12, %v4486_v60, 0.0  ;;  %vm2779_vm3 = vmor %vm2777_vm2, %vm2778_vm11 }
0x10b6   : > { %v2885_v49 = vadd.f32 %v2884_v24, %v2883_v15  ;;  %v2774_v54 = vsub.f32 1.0, %v2773_v10  ;;  %v4134_v15 = vld [vmem:[%s6260_s7 + $0x48] sm:$0xf] }
0x10b8   : > { %v2886_v51 = vrot.slane %v2885_v49, 4  ;;  %v2775_v38 = vmul.f32 %v4484_v29, %v2774_v54  ;;  %v4273_v54 = vld [vmem:[%s6260_s7 + $0x38] sm:$0xf0] }
0x10ba   : > { %v2887_v41 = vadd.f32 %v2886_v51, %v2885_v49  ;;  %v2776_v42 = vadd.f32 %v4484_v29, %v2775_v38  ;;  %v4122_v49 = vld [vmem:[%s6260_s7 + $0x30] sm:$0xf] }
0x10bc   : > { %v2888_v44 = vrot.slane %v2887_v41, 2  ;;  %v2780_v53 = vsel %vm2779_vm3, %v4484_v29, %v2776_v42 }
0x10bd   : > { %v2785_v8 = vsel %vm2782_vm4, %v2784_v34, %v2780_v53  ;;  %v4270_v53 = vld [vmem:[%s6260_s7 + $0x20] sm:$0xf0] }
0x10be   : > { %v2889_v0 = vadd.f32 %v2888_v44, %v2887_v41  ;;  %v5811_v11 = vmul.f32 %v4480_v43, %v2785_v8  ;;  %v5813_v4 = vmul.f32 %v4478_v59, %v2785_v8  ;;  %v4123_v41 = vor.u32 %v4273_v54, %v4122_v49  ;;  %v4110_v44 = vld [vmem:[%s6260_s7 + $0x18] sm:$0xf] }
0x10c0   : > { %v2890_v2 = vrot.slane %v2889_v0, 1  ;;  %v2793_v6 = vsel %vm809_vm12, %v5811_v11, 0.0  ;;  %v2790_v50 = vsel %vm809_vm12, %v5813_v4, 0.0  ;;  %2788 = vst.msk [vmem:[%s5809_s29] sm:$0xff] %vm809_vm12, %v5813_v4 }
0x10c1   : > { %2794 = vadd.xlane.f32.xlu0 %v2793_v6  ;;  %2791 = vadd.xlane.f32.xlu2 %v2790_v50  ;;  %2789 = vst.msk [vmem:[%s5809_s29 + $0x8] sm:$0xff] %vm809_vm12, %v5811_v11  ;;  %v4111_v6 = vor.u32 %v4270_v53, %v4110_v44  ;;  %v4076_v44 = vld [vmem:[%s6259_s6 + $0x38] sm:$0xf] }
0x10c2   : > { %v2891_v47 = vadd.f32 %v2890_v2, %v2889_v0 }
0x10c4   : > { %4487 = vrcp.f32 %v2891_v47  ;;  %v2903_v18 = vand.u32 2147483648, %v2891_v47  ;;  %v2901_v39 = vand.u32 2147483647, %v2891_v47  ;;  %vm2897_vm6 = vweird.f32 %v2891_v47 }
0x10c6   : > { %v2904_v59 = vor.u32 1.1754944e-38, %v2903_v18  ;;  %vm2902_vm8 = vcmp.eq.f32.partialorder %v2901_v39, 8.507059e+37 }
0x10ca   : > { %v4488_v37 = vpop.eup %4487 }
0x10cb   : > { %v2893_v31 = vmul.f32 %v4488_v37, %v2891_v47  ;;  %vm2898_vm5 = vweird.f32 %v4488_v37 }
0x10cc   : > { %vm2899_vm7 = vmor %vm2897_vm6, %vm2898_vm5 }
0x10cd   : > { %v2894_v32 = vsub.f32 1.0, %v2893_v31  ;;  %v4098_v31 = vld [vmem:[%s6260_s7] sm:$0xf] }
0x10cf   : > { %v2895_v19 = vmul.f32 %v4488_v37, %v2894_v32  ;;  %v4267_v32 = vld [vmem:[%s6260_s7 + $0x8] sm:$0xf0] }
0x10d1   : > { %v2896_v27 = vadd.f32 %v4488_v37, %v2895_v19 }
0x10d3   : > { %v2900_v16 = vsel %vm2899_vm7, %v4488_v37, %v2896_v27 }
0x10d4   : > { %v2905_v43 = vsel %vm2902_vm8, %v2904_v59, %v2900_v16 }
0x10d5   : > { %v5825_v61 = vmul.f32 %v4486_v60, %v2905_v43  ;;  %v5827_v40 = vmul.f32 %v4482_v3, %v2905_v43  ;;  %v4276_v60 = vld [vmem:[%s6260_s7 + $0x50] sm:$0xf0] }
0x10d6   : > { %v4135_v24 = vor.u32 %v4276_v60, %v4134_v15  ;;  %v4264_v15 = vld [vmem:[%s6259_s6 + $0x50] sm:$0xf0]  ;;  %v4263_v60 = vld [vmem:[%s6259_s6 + $0x4c] sm:$0xf] }
0x10d7   : > { %v2913_v30 = vsel %vm809_vm12, %v5825_v61, 0.0  ;;  %v2910_v1 = vsel %vm809_vm12, %v5827_v40, 0.0  ;;  %2908 = vst.msk [vmem:[%s5809_s29 + $0x10] sm:$0xff] %vm809_vm12, %v5827_v40 }
0x10d8   : > { %2914 = vadd.xlane.f32.xlu2 %v2913_v30  ;;  %2911 = vadd.xlane.f32.xlu1 %v2910_v1  ;;  %2909 = vst.msk [vmem:[%s5809_s29 + $0x18] sm:$0xff] %vm809_vm12, %v5825_v61 }
0x10d9   : > { %3203 = vmatpush.bf16.msra.mxu1 %v4135_v24  ;;  %v4265_v24 = vld [vmem:[%s6259_s6 + $0x58] sm:$0xf0] }
0x10dd   : > { %3204 = vmatpush.bf16.msra.mxu1 %v4123_v41  ;;  %v5902_v41 = vpack.c.bf16 %v5755_v28, %v5750_v20 }
0x10e1   : > { %3205 = vmatpush.bf16.msra.mxu1 %v4111_v6 }
0x1134   : > { %v2795_v56 = vpop.xlane.xlu0 %2794  ;;  %v2792_v33 = vpop.xlane.xlu2 %2791 }
0x1135   : > { %v2797_v58 = vadd.f32 1e-06, %v2795_v56  ;;  %v2796_v62 = vadd.f32 1e-06, %v2792_v33 }
0x1137   : > { %4489 = vrcp.f32 %v2797_v58  ;;  %v2824_v12 = vand.u32 2147483648, %v2797_v58  ;;  %v2822_v9 = vand.u32 2147483647, %v2797_v58  ;;  %v2809_v25 = vand.u32 2147483648, %v2796_v62 }
0x1138   : > { %4491 = vrcp.f32 %v2796_v62  ;;  %v2807_v29 = vand.u32 2147483647, %v2796_v62  ;;  %vm2818_vm13 = vweird.f32 %v2797_v58  ;;  %vm2803_vm15 = vweird.f32 %v2796_v62 }
0x1139   : > { %v2825_v63 = vor.u32 1.1754944e-38, %v2824_v12  ;;  %vm2823_vm1 = vcmp.eq.f32.partialorder %v2822_v9, 8.507059e+37  ;;  %v2810_v55 = vor.u32 1.1754944e-38, %v2809_v25 }
0x113a   : > { %vm2808_vm2 = vcmp.eq.f32.partialorder %v2807_v29, 8.507059e+37  ;;  %v4080_v29 = vld [vmem:[%s6259_s6 + $0x48] sm:$0xf] }
0x113d   : > { %v4490_v36 = vpop.eup %4489 }
0x113e   : > { %v4492_v45 = vpop.eup %4491  ;;  %v2814_v13 = vmul.f32 %v4490_v36, %v2797_v58  ;;  %vm2819_vm9 = vweird.f32 %v4490_v36 }
0x113f   : > { %v2799_v48 = vmul.f32 %v4492_v45, %v2796_v62  ;;  %vm2804_vm10 = vweird.f32 %v4492_v45  ;;  %vm2820_vm14 = vmor %vm2818_vm13, %vm2819_vm9 }
0x1140   : > { %v2815_v21 = vsub.f32 1.0, %v2814_v13  ;;  %vm2805_vm11 = vmor %vm2803_vm15, %vm2804_vm10 }
0x1141   : > { %v2800_v17 = vsub.f32 1.0, %v2799_v48 }
0x1142   : > { %v2816_v26 = vmul.f32 %v4490_v36, %v2815_v21 }
0x1143   : > { %v2801_v3 = vmul.f32 %v4492_v45, %v2800_v17 }
0x1144   : > { %v2817_v10 = vadd.f32 %v4490_v36, %v2816_v26 }
0x1145   : > { %v2802_v51 = vadd.f32 %v4492_v45, %v2801_v3 }
0x1146   : > { %v2821_v38 = vsel %vm2820_vm14, %v4490_v36, %v2817_v10  ;;  %v4081_v10 = vor.u32 %v4264_v15, %v4080_v29  ;;  %v4266_v15 = vld [vmem:[%s6260_s7 + $0x4] sm:$0xf] }
0x1147   : > { %v2826_v42 = vsel %vm2823_vm1, %v2825_v63, %v2821_v38  ;;  %v2806_v34 = vsel %vm2805_vm11, %v4492_v45, %v2802_v51  ;;  %v4068_v63 = vld [vmem:[%s6259_s6 + $0x30] sm:$0xf]  ;;  %v4261_v51 = vld [vmem:[%s6259_s6 + $0x38] sm:$0xf0] }
0x1148   : > { %v2827_v8 = vmul.f32 %v2826_v42, %v5811_v11  ;;  %v2811_v0 = vsel %vm2808_vm2, %v2810_v55, %v2806_v34  ;;  %v4099_v11 = vor.u32 %v4267_v32, %v4098_v31  ;;  %3058 = vmatpush.bf16.msra.mxu3 %v4081_v10  ;;  %v4069_v38 = vor.u32 %v4261_v51, %v4068_v63  ;;  %v4260_v42 = vld [vmem:[%s6259_s6 + $0x34] sm:$0xf]  ;;  %v4070_v34 = vld [vmem:[%s6259_s6 + $0x3c] sm:$0xf0] }
0x1149   : > { %v2812_v2 = vmul.f32 %v2811_v0, %v5813_v4  ;;  %v5896_v55 = vpack.c.bf16 %v5745_v52, %v5740_v46  ;;  %v4073_v53 = vor.u32 %v4260_v42, %v4070_v34  ;;  %v4056_v0 = vld [vmem:[%s6259_s6 + $0x18] sm:$0xf]  ;;  %v4064_v31 = vld [vmem:[%s6259_s6 + $0x20] sm:$0xf] }
0x114a   : > { %3206 = vmatpush.bf16.msra.mxu1 %v4099_v11  ;;  %v4255_v11 = vld [vmem:[%s6259_s6 + $0x8] sm:$0xf0]  ;;  %v4118_v10 = vld [vmem:[%s6260_s7 + $0x20] sm:$0xf] }
0x114b   : > { %v2915_v50 = vpop.xlane.xlu2 %2914  ;;  %v2912_v47 = vpop.xlane.xlu1 %2911  ;;  %v2828_v37 = vpack.c.bf16 %v2827_v8, %v2812_v2  ;;  %v4262_v8 = vld [vmem:[%s6259_s6 + $0x40] sm:$0xf0] }
0x114c   : > { %v2917_v18 = vadd.f32 1e-06, %v2915_v50  ;;  %v2916_v19 = vadd.f32 1e-06, %v2912_v47  ;;  %3059 = vmatpush.bf16.msra.mxu3 %v4069_v38  ;;  %v4258_v2 = vld [vmem:[%s6259_s6 + $0x20] sm:$0xf0]  ;;  %v4077_v6 = vor.u32 %v4262_v8, %v4076_v44 }
0x114d   : > { %4040 = vmatmul.msk.bf16.vlgmr.msrb.gmra.mxu3 %vm809_vm12, %v2828_v37  ;;  %v4057_v50 = vor.u32 %v4258_v2, %v4056_v0  ;;  %v4257_v47 = vld [vmem:[%s6259_s6 + $0x1c] sm:$0xf]  ;;  %v4058_v37 = vld [vmem:[%s6259_s6 + $0x24] sm:$0xf0] }
0x114e   : > { %4493 = vrcp.f32 %v2917_v18  ;;  %v2944_v43 = vand.u32 2147483648, %v2917_v18  ;;  %v2942_v56 = vand.u32 2147483647, %v2917_v18  ;;  %v2929_v33 = vand.u32 2147483648, %v2916_v19 }
0x114f   : > { %4495 = vrcp.f32 %v2916_v19  ;;  %v2927_v62 = vand.u32 2147483647, %v2916_v19  ;;  %vm2938_vm5 = vweird.f32 %v2917_v18  ;;  %vm2923_vm7 = vweird.f32 %v2916_v19 }
0x1150   : > { %v2945_v45 = vor.u32 1.1754944e-38, %v2944_v43  ;;  %vm2943_vm8 = vcmp.eq.f32.partialorder %v2942_v56, 8.507059e+37  ;;  %v2930_v21 = vor.u32 1.1754944e-38, %v2929_v33  ;;  %v4061_v32 = vor.u32 %v4257_v47, %v4058_v37  ;;  %3060 = vmatpush.bf16.msra.mxu3 %v4057_v50  ;;  %v4275_v56 = vld [vmem:[%s6260_s7 + $0x4c] sm:$0xf] }
0x1151   : > { %vm2928_vm10 = vcmp.eq.f32.partialorder %v2927_v62, 8.507059e+37  ;;  %v4136_v33 = vld [vmem:[%s6260_s7 + $0x54] sm:$0xf0]  ;;  %v4272_v62 = vld [vmem:[%s6260_s7 + $0x34] sm:$0xf] }
0x1154   : > { %v4494_v4 = vpop.eup %4493 }
0x1155   : > { %v4496_v39 = vpop.eup %4495  ;;  %v2934_v27 = vmul.f32 %v4494_v4, %v2917_v18  ;;  %vm2939_vm3 = vweird.f32 %v4494_v4  ;;  %v4259_v18 = vld [vmem:[%s6259_s6 + $0x28] sm:$0xf0] }
0x1156   : > { %v2919_v59 = vmul.f32 %v4496_v39, %v2916_v19  ;;  %vm2924_vm4 = vweird.f32 %v4496_v39  ;;  %vm2940_vm6 = vmor %vm2938_vm5, %vm2939_vm3  ;;  %v4044_v19 = vld [vmem:[%s6259_s6] sm:$0xf] }
0x1157   : > { %v2935_v16 = vsub.f32 1.0, %v2934_v27  ;;  %vm2925_vm9 = vmor %vm2923_vm7, %vm2924_vm4  ;;  %v4254_v27 = vld [vmem:[%s6259_s6 + $0x4] sm:$0xf] }
0x1158   : > { %v2920_v30 = vsub.f32 1.0, %v2919_v59  ;;  %v4046_v59 = vld [vmem:[%s6259_s6 + $0xc] sm:$0xf0] }
0x1159   : > { %v2936_v1 = vmul.f32 %v4494_v4, %v2935_v16  ;;  %v4052_v16 = vld [vmem:[%s6259_s6 + $0x8] sm:$0xf]  ;;  %v4049_v43 = vor.u32 %v4254_v27, %v4046_v59 }
0x115a   : > { %v2921_v58 = vmul.f32 %v4496_v39, %v2920_v30  ;;  %v4256_v30 = vld [vmem:[%s6259_s6 + $0x10] sm:$0xf0] }
0x115b   : > { %v2937_v36 = vadd.f32 %v4494_v4, %v2936_v1  ;;  %v4053_v1 = vor.u32 %v4256_v30, %v4052_v16 }
0x115c   : > { %v2922_v13 = vadd.f32 %v4496_v39, %v2921_v58  ;;  %v4139_v58 = vor.u32 %v4275_v56, %v4136_v33 }
0x115d   : > { %v2941_v48 = vsel %vm2940_vm6, %v4494_v4, %v2937_v36  ;;  %v4065_v4 = vor.u32 %v4259_v18, %v4064_v31  ;;  %v4124_v36 = vld [vmem:[%s6260_s7 + $0x3c] sm:$0xf0] }
0x115e   : > { %v2946_v12 = vsel %vm2943_vm8, %v2945_v45, %v2941_v48  ;;  %v2926_v17 = vsel %vm2925_vm9, %v4496_v39, %v2922_v13  ;;  %v4045_v39 = vor.u32 %v4255_v11, %v4044_v19  ;;  %v4127_v45 = vor.u32 %v4272_v62, %v4124_v36  ;;  %v4142_v13 = vld [vmem:[%s6260_s7 + $0x50] sm:$0xf]  ;;  %v4277_v48 = vld [vmem:[%s6260_s7 + $0x58] sm:$0xf0] }
0x115f   : > { %v2947_v26 = vmul.f32 %v2946_v12, %v5825_v61  ;;  %v2931_v9 = vsel %vm2928_vm10, %v2930_v21, %v2926_v17  ;;  %v4082_v61 = vld [vmem:[%s6259_s6 + $0x54] sm:$0xf0]  ;;  %v4143_v21 = vor.u32 %v4277_v48, %v4142_v13  ;;  %v4269_v12 = vld [vmem:[%s6260_s7 + $0x1c] sm:$0xf]  ;;  %v4112_v17 = vld [vmem:[%s6260_s7 + $0x24] sm:$0xf0] }
0x1160   : > { %v2932_v25 = vmul.f32 %v2931_v9, %v5827_v40  ;;  %v4088_v40 = vld [vmem:[%s6259_s6 + $0x50] sm:$0xf]  ;;  %v4085_v49 = vor.u32 %v4263_v60, %v4082_v61  ;;  %3061 = vmatpush.bf16.msra.mxu3 %v4045_v39  ;;  %v4130_v9 = vld [vmem:[%s6260_s7 + $0x38] sm:$0xf] }
0x1161   : > { %v4089_v54 = vor.u32 %v4265_v24, %v4088_v40  ;;  %v4100_v60 = vld [vmem:[%s6260_s7 + $0xc] sm:$0xf0]  ;;  %v4271_v40 = vld [vmem:[%s6260_s7 + $0x28] sm:$0xf0] }
0x1162   : > { %v2948_v3 = vpack.c.bf16 %v2947_v26, %v2932_v25  ;;  %3077 = vmatpush.bf16.msrb.mxu2 %v4085_v49  ;;  %v4115_v26 = vor.u32 %v4269_v12, %v4112_v17  ;;  %v4274_v25 = vld [vmem:[%s6260_s7 + $0x40] sm:$0xf0]  ;;  %v4103_v61 = vor.u32 %v4266_v15, %v4100_v60  ;;  %v4119_v24 = vor.u32 %v4271_v40, %v4118_v10  ;;  %v4106_v49 = vld [vmem:[%s6260_s7 + $0x8] sm:$0xf] }
0x1163   : > { %3096 = vmatpush.bf16.msrb.mxu0 %v4089_v54  ;;  %v4131_v29 = vor.u32 %v4274_v25, %v4130_v9  ;;  %v4268_v54 = vld [vmem:[%s6260_s7 + $0x10] sm:$0xf0] }
0x1164   : > { %4041 = vmatmul.msk.bf16.vlgmr.msrb.gmra.mxu1 %vm809_vm12, %v2948_v3  ;;  %3222 = vmatpush.bf16.msrb.mxu3 %v4139_v58  ;;  %v4107_v51 = vor.u32 %v4268_v54, %v4106_v49 }
0x1166   : > { %3078 = vmatpush.bf16.msrb.mxu2 %v4073_v53 }
0x1167   : > { %3097 = vmatpush.bf16.msrb.mxu0 %v4077_v6 }
0x1168   : > { %3223 = vmatpush.bf16.msrb.mxu3 %v4127_v45 }
0x116a   : > { %3079 = vmatpush.bf16.msrb.mxu2 %v4061_v32 }
0x116b   : > { %3098 = vmatpush.bf16.msrb.mxu0 %v4065_v4 }
0x116c   : > { %3224 = vmatpush.bf16.msrb.mxu3 %v4115_v26 }
0x116e   : > { %3080 = vmatpush.bf16.msrb.mxu2 %v4049_v43 }
0x116f   : > { %3099 = vmatpush.bf16.msrb.mxu0 %v4053_v1 }
0x1170   : > { %3225 = vmatpush.bf16.msrb.mxu3 %v4103_v61 }
0x1172   : > { %3241 = vmatpush.bf16.msra.mxu2 %v4143_v21 }
0x1174   : > { %4144 = vmatmul.msk.bf16.vlgmr.msra.gmra.mxu1 %vm442_vm0, %v5896_v55 }
0x1176   : > { %3242 = vmatpush.bf16.msra.mxu2 %v4131_v29 }
0x117a   : > { %3243 = vmatpush.bf16.msra.mxu2 %v4119_v24 }
0x117e   : > { %3244 = vmatpush.bf16.msra.mxu2 %v4107_v51 }
0x1184   : > { %4145 = vmatmul.msk.bf16.gmra.mxu1 %vm442_vm0, %v5902_v41 }
0x11d0   : > { %v2841_v3 = vpop.f32.mrf.mxu3 }
0x11d8   : > { %v2843_v63 = vpop.f32.mrf.mxu3 }
0x11d9   : > { %v2966_v38 = vpack.c.bf16 %v2843_v63, %v2841_v3 }
0x11db   : > { %4090 = vmatmul.msk.bf16.vlgmr.msra.gmra.mxu3 %vm442_vm0, %v2966_v38  ;;  %4092 = vmatmul.msk.bf16.vlgmr.msrb.gmra.mxu2 %vm442_vm0, %v2966_v38 }
0x11dc   : > { %4094 = vmatmul.msk.bf16.vlgmr.msrb.gmra.mxu0 %vm442_vm0, %v2966_v38 }
0x11e1   : > { %v2961_v42 = vpop.f32.mrf.mxu1 }
0x11e9   : > { %v2963_v34 = vpop.f32.mrf.mxu1 }
0x11ea   : > { %v2967_v44 = vpack.c.bf16 %v2963_v34, %v2961_v42 }
0x11ec   : > { %4091 = vmatmul.msk.bf16.gmra.mxu3 %vm442_vm0, %v2967_v44  ;;  %4093 = vmatmul.msk.bf16.gmra.mxu2 %vm442_vm0, %v2967_v44 }
0x11ed   : > { %4095 = vmatmul.msk.bf16.gmra.mxu0 %vm442_vm0, %v2967_v44 }
0x11f1   : > { %v3208_v53 = vpop.f32.mrf.mxu1 }
0x11f2   : > { %v3209_v2 = vadd.f32 %v3208_v53, %v5209_v5 }
0x11f9   : > { %v3210_v50 = vpop.f32.mrf.mxu1 }
0x11fc   : > { %4146 = vmatmul.msk.bf16.vlgmr.msrb.gmra.mxu3 %vm442_vm0, %v5896_v55  ;;  %4148 = vmatmul.msk.bf16.vlgmr.msra.gmra.mxu2 %vm442_vm0, %v5896_v55  ;;  %v3211_v55 = vadd.f32 %v3210_v50, %v5209_v5 }
0x120c   : > { %4147 = vmatmul.msk.bf16.gmra.mxu3 %vm442_vm0, %v5902_v41  ;;  %4149 = vmatmul.msk.bf16.gmra.mxu2 %vm442_vm0, %v5902_v41  ;;  %v3213_v41 = vpop.f32.mrf.mxu1 }
0x120d   : > { %v3214_v16 = vadd.f32 %v3213_v41, %v5209_v5 }
0x1214   : > { %v3215_v58 = vpop.f32.mrf.mxu1 }
0x1215   : > { %v3216_v13 = vadd.f32 %v3215_v58, %v5209_v5 }
0x1259   : > { %v3101_v29 = vpop.f32.mrf.mxu0 }
0x125e   : > { %v3063_v8 = vpop.f32.mrf.mxu3  ;;  %v3082_v0 = vpop.f32.mrf.mxu2 }
0x125f   : > { %v3064_v6 = vadd.f32 %v3063_v8, %v5207_v57  ;;  %v3083_v10 = vadd.f32 %v3082_v0, %v5229_v22 }
0x1261   : > { %v3256_v47 = vadd.f32 %v3209_v2, %v3064_v6  ;;  %v3103_v2 = vpop.f32.mrf.mxu0 }
0x1263   : > { %v4150_v37 = vmul.f32 -1.442695, %v3256_v47 }
0x1265   : > { %4497 = vpow2.f32 %v4150_v37 }
0x1266   : > { %v3065_v31 = vpop.f32.mrf.mxu3  ;;  %v3084_v32 = vpop.f32.mrf.mxu2 }
0x1267   : > { %v3066_v18 = vadd.f32 %v3065_v31, %v5207_v57  ;;  %v3085_v8 = vadd.f32 %v3084_v32, %v5229_v22 }
0x1269   : > { %v3257_v19 = vadd.f32 %v3211_v55, %v3066_v18 }
0x126b   : > { %v4498_v11 = vpop.eup %4497  ;;  %v4151_v4 = vmul.f32 -1.442695, %v3257_v19 }
0x126c   : > { %v3272_v39 = vadd.f32 1.0, %v4498_v11 }
0x126d   : > { %4499 = vpow2.f32 %v4151_v4 }
0x126e   : > { %4501 = vrcp.f32 %v3272_v39  ;;  %v3287_v42 = vand.u32 2147483648, %v3272_v39  ;;  %vm3281_vm13 = vweird.f32 %v3272_v39  ;;  %v3285_v34 = vand.u32 2147483647, %v3272_v39 }
0x126f   : > { %v3068_v27 = vpop.f32.mrf.mxu3  ;;  %v6020_v59 = vpop.f32.mrf.mxu2 }
0x1270   : > { %v3069_v43 = vadd.f32 %v3068_v27, %v5207_v57  ;;  %v3288_v37 = vor.u32 1.1754944e-38, %v3287_v42  ;;  %vm3286_vm15 = vcmp.eq.f32.partialorder %v3285_v34, 8.507059e+37 }
0x1272   : > { %v3258_v30 = vadd.f32 %v3214_v16, %v3069_v43 }
0x1273   : > { %v4500_v1 = vpop.eup %4499 }
0x1274   : > { %v6024_v56 = vadd.f32 1.0, %v4500_v1  ;;  %v4152_v33 = vmul.f32 -1.442695, %v3258_v30  ;;  %v4502_v62 = vpop.eup %4501  ;;  %v3102_v30 = vadd.f32 %v3101_v29, %v5254_v35 }
0x1275   : > { %v3277_v21 = vmul.f32 %v4502_v62, %v3272_v39  ;;  %vm3282_vm12 = vweird.f32 %v4502_v62 }
0x1276   : > { %4503 = vrcp.f32 %v6024_v56  ;;  %vm3283_vm14 = vmor %vm3281_vm13, %vm3282_vm12  ;;  %vm3296_vm11 = vweird.f32 %v6024_v56  ;;  %v3302_v41 = vand.u32 2147483648, %v6024_v56  ;;  %v3300_v27 = vand.u32 2147483647, %v6024_v56 }
0x1277   : > { %4505 = vpow2.f32 %v4152_v33  ;;  %v3070_v36 = vpop.f32.mrf.mxu3  ;;  %v6027_v45 = vpop.f32.mrf.mxu2  ;;  %v3278_v25 = vsub.f32 1.0, %v3277_v21 }
0x1278   : > { %v3071_v48 = vadd.f32 %v3070_v36, %v5207_v57  ;;  %v3303_v36 = vor.u32 1.1754944e-38, %v3302_v41  ;;  %vm3301_vm3 = vcmp.eq.f32.partialorder %v3300_v27, 8.507059e+37 }
0x1279   : > { %v3279_v61 = vmul.f32 %v4502_v62, %v3278_v25 }
0x127a   : > { %v3259_v12 = vadd.f32 %v3216_v13, %v3071_v48 }
0x127b   : > { %v3280_v51 = vadd.f32 %v4502_v62, %v3279_v61 }
0x127c   : > { %v6031_v17 = vpop.eup %4503  ;;  %v4153_v26 = vmul.f32 -1.442695, %v3259_v12 }
0x127d   : > { %v4506_v9 = vpop.eup %4505  ;;  %v3292_v60 = vmul.f32 %v6031_v17, %v6024_v56  ;;  %v3284_v50 = vsel %vm3283_vm14, %v4502_v62, %v3280_v51  ;;  %vm3297_vm1 = vweird.f32 %v6031_v17  ;;  %v3088_v62 = vadd.f32 %v6020_v59, %v5229_v22 }
0x127e   : > { %v6033_v3 = vadd.f32 1.0, %v4506_v9  ;;  %4507 = vpow2.f32 %v4153_v26  ;;  %v3289_v19 = vsel %vm3286_vm15, %v3288_v37, %v3284_v50  ;;  %vm3298_vm2 = vmor %vm3296_vm11, %vm3297_vm1  ;;  %v3106_v9 = vpop.f32.mrf.mxu0 }
0x127f   : > { %v3227_v15 = vpop.f32.mrf.mxu3  ;;  %v3246_v5 = vpop.f32.mrf.mxu2  ;;  %v3293_v24 = vsub.f32 1.0, %v3292_v60 }
0x1280   : > { %4509 = vrcp.f32 %v6033_v3  ;;  %v3228_v57 = vadd.f32 %v3227_v15, %v5231_v23  ;;  %v3247_v6 = vadd.f32 %v3246_v5, %v5244_v7  ;;  %v3315_v59 = vand.u32 2147483647, %v6033_v3 }
0x1281   : > { %v3294_v53 = vmul.f32 %v6031_v17, %v3293_v24  ;;  %vm3311_vm5 = vweird.f32 %v6033_v3 }
0x1282   : > { %v3336_v40 = vadd.f32 %v3228_v57, %v3083_v10  ;;  %v3416_v39 = vmul.f32 %v3289_v19, %v3247_v6  ;;  %vm6089_vm7 = vcmp.eq.f32.partialorder %v3315_v59, 8.507059e+37 }
0x1283   : > { %v3295_v18 = vadd.f32 %v6031_v17, %v3294_v53 }
0x1284   : > { %v4508_v49 = vpop.eup %4507  ;;  %v4154_v54 = vmul.f32 -1.442695, %v3336_v40  ;;  %v3420_v13 = vadd.f32 %v3416_v39, %v3102_v30  ;;  %v3107_v40 = vadd.f32 %v3106_v9, %v5254_v35 }
0x1285   : > { %v6040_v63 = vadd.f32 1.0, %v4508_v49  ;;  %v3299_v33 = vsel %vm3298_vm2, %v6031_v17, %v3295_v18  ;;  %v3104_v17 = vadd.f32 %v3103_v2, %v5254_v35  ;;  %v3317_v49 = vand.u32 2147483648, %v6033_v3 }
0x1286   : > { %v6042_v38 = vpop.eup %4509  ;;  %4511 = vpow2.f32 %v4154_v54  ;;  %v3304_v12 = vsel %vm3301_vm3, %v3303_v36, %v3299_v33  ;;  %v3090_v54 = vadd.f32 %v6027_v45, %v5229_v22 }
0x1287   : > { %v3229_v44 = vpop.f32.mrf.mxu3  ;;  %4513 = vrcp.f32 %v6040_v63  ;;  %v3307_v47 = vmul.f32 %v6042_v38, %v6033_v3  ;;  %v3248_v55 = vpop.f32.mrf.mxu2  ;;  %vm3312_vm4 = vweird.f32 %v6042_v38  ;;  %v3318_v6 = vor.u32 1.1754944e-38, %v3317_v49 }
0x1288   : > { %v3230_v0 = vadd.f32 %v3229_v44, %v5231_v23  ;;  %v3249_v1 = vadd.f32 %v3248_v55, %v5244_v7  ;;  %vm6085_vm6 = vmor %vm3311_vm5, %vm3312_vm4  ;;  %vm3326_vm14 = vweird.f32 %v6040_v63 }
0x1289   : > { %v3308_v16 = vsub.f32 1.0, %v3307_v47 }
0x128a   : > { %v3337_v31 = vadd.f32 %v3230_v0, %v3085_v8  ;;  %v3417_v25 = vmul.f32 %v3304_v12, %v3249_v1  ;;  %v3330_v1 = vand.u32 2147483647, %v6040_v63 }
0x128b   : > { %v3309_v48 = vmul.f32 %v6042_v38, %v3308_v16 }
0x128c   : > { %v4512_v32 = vpop.eup %4511  ;;  %v4155_v11 = vmul.f32 -1.442695, %v3337_v31  ;;  %v3421_v51 = vadd.f32 %v3417_v25, %v3104_v17  ;;  %vm3331_vm11 = vcmp.eq.f32.partialorder %v3330_v1, 8.507059e+37 }
0x128d   : > { %v6055_v4 = vadd.f32 1.0, %v4512_v32  ;;  %v6058_v43 = vpop.eup %4513  ;;  %v3310_v5 = vadd.f32 %v6042_v38, %v3309_v48 }
0x128e   : > { %4515 = vpow2.f32 %v4155_v11  ;;  %v3322_v21 = vmul.f32 %v6058_v43, %v6040_v63  ;;  %vm3327_vm9 = vweird.f32 %v6058_v43 }
0x128f   : > { %4517 = vrcp.f32 %v6055_v4  ;;  %v3232_v58 = vpop.f32.mrf.mxu3  ;;  %v3251_v60 = vpop.f32.mrf.mxu2  ;;  %v3365_v22 = vand.u32 2147483647, %v6055_v4  ;;  %v3314_v3 = vsel %vm6085_vm6, %v6042_v38, %v3310_v5  ;;  %v3367_v2 = vand.u32 2147483648, %v6055_v4  ;;  %vm6117_vm15 = vmor %vm3326_vm14, %vm3327_vm9 }
0x1290   : > { %v3233_v56 = vadd.f32 %v3232_v58, %v5231_v23  ;;  %4519 = vtanh.f32 %v3420_v13  ;;  %v3323_v61 = vsub.f32 1.0, %v3322_v21  ;;  %v3252_v45 = vadd.f32 %v3251_v60, %v5244_v7 }
0x1291   : > { %vm3361_vm10 = vweird.f32 %v6055_v4  ;;  %v3319_v38 = vsel %vm6089_vm7, %v3318_v6, %v3314_v3  ;;  %vm3366_vm12 = vcmp.eq.f32.partialorder %v3365_v22, 8.507059e+37  ;;  %v3368_v39 = vor.u32 1.1754944e-38, %v3367_v2 }
0x1292   : > { %v3338_v26 = vadd.f32 %v3233_v56, %v3088_v62  ;;  %v3324_v0 = vmul.f32 %v6058_v43, %v3323_v61  ;;  %v3418_v11 = vmul.f32 %v3319_v38, %v3252_v45 }
0x1294   : > { %v4516_v29 = vpop.eup %4515  ;;  %v4156_v15 = vmul.f32 -1.442695, %v3338_v26  ;;  %v3325_v41 = vadd.f32 %v6058_v43, %v3324_v0  ;;  %v3422_v48 = vadd.f32 %v3418_v11, %v3107_v40 }
0x1295   : > { %v4518_v10 = vpop.eup %4517  ;;  %v6073_v57 = vadd.f32 1.0, %v4516_v29  ;;  %v3108_v29 = vpop.f32.mrf.mxu0 }
0x1296   : > { %v3357_v24 = vmul.f32 %v4518_v10, %v6055_v4  ;;  %4521 = vpow2.f32 %v4156_v15  ;;  %vm3362_vm8 = vweird.f32 %v4518_v10  ;;  %v4520_v37 = vpop.eup %4519  ;;  %v3329_v21 = vsel %vm6117_vm15, %v6058_v43, %v3325_v41 }
0x1297   : > { %4523 = vrcp.f32 %v6073_v57  ;;  %v3234_v42 = vpop.f32.mrf.mxu3  ;;  %vm3363_vm13 = vmor %vm3361_vm10, %vm3362_vm8  ;;  %v3253_v4 = vpop.f32.mrf.mxu2  ;;  %v3428_v30 = vsub.f32 %v5740_v46, %v4520_v37  ;;  %v3380_v9 = vand.u32 2147483647, %v6073_v57  ;;  %vm3376_vm2 = vweird.f32 %v6073_v57 }
0x1298   : > { %v3358_v34 = vsub.f32 1.0, %v3357_v24  ;;  %v3235_v8 = vadd.f32 %v3234_v42, %v5231_v23  ;;  %4525 = vtanh.f32 %v3421_v51  ;;  %v3332_v23 = vand.u32 2147483648, %v6040_v63 }
0x1299   : > { %v3254_v46 = vadd.f32 %v3253_v4, %v5244_v7  ;;  %v3382_v63 = vand.u32 2147483648, %v6073_v57  ;;  %vm3381_vm4 = vcmp.eq.f32.partialorder %v3380_v9, 8.507059e+37  ;;  %v3109_v24 = vadd.f32 %v3108_v29, %v5254_v35 }
0x129a   : > { %v3339_v50 = vadd.f32 %v3235_v8, %v3090_v54  ;;  %v3359_v47 = vmul.f32 %v4518_v10, %v3358_v34  ;;  %v3333_v36 = vor.u32 1.1754944e-38, %v3332_v23 }
0x129c   : > { %v4522_v31 = vpop.eup %4521  ;;  %v4157_v55 = vmul.f32 -1.442695, %v3339_v50  ;;  %v3360_v18 = vadd.f32 %v4518_v10, %v3359_v47  ;;  %v3334_v17 = vsel %vm3331_vm11, %v3333_v36, %v3329_v21 }
0x129d   : > { %v4524_v32 = vpop.eup %4523  ;;  %v6106_v19 = vadd.f32 1.0, %v4522_v31  ;;  %v3419_v59 = vmul.f32 %v3334_v17, %v3254_v46 }
0x129e   : > { %v3372_v27 = vmul.f32 %v4524_v32, %v6073_v57  ;;  %4527 = vpow2.f32 %v4157_v55  ;;  %v3364_v16 = vsel %vm3363_vm13, %v4518_v10, %v3360_v18  ;;  %v4526_v13 = vpop.eup %4525  ;;  %vm3377_vm1 = vweird.f32 %v4524_v32 }
0x129f   : > { %4529 = vrcp.f32 %v6106_v19  ;;  %v3369_v33 = vsel %vm3366_vm12, %v3368_v39, %v3364_v16  ;;  %vm3378_vm3 = vmor %vm3376_vm2, %vm3377_vm1  ;;  %v3383_v10 = vor.u32 1.1754944e-38, %v3382_v63  ;;  %v3429_v40 = vsub.f32 %v5745_v52, %v4526_v13 }
0x12a0   : > { %v3373_v58 = vsub.f32 1.0, %v3372_v27  ;;  %v3432_v56 = vmul.f32 %v3428_v30, %v3369_v33  ;;  %4531 = vtanh.f32 %v3422_v48  ;;  %v3423_v57 = vadd.f32 %v3419_v59, %v3109_v24 }
0x12a1   : > { %v3397_v42 = vand.u32 2147483648, %v6106_v19  ;;  %v3395_v53 = vand.u32 2147483647, %v6106_v19  ;;  %vm3391_vm6 = vweird.f32 %v6106_v19 }
0x12a2   : > { %v6126_v12 = vadd.f32 %v4520_v37, %v3432_v56  ;;  %v3374_v26 = vmul.f32 %v4524_v32, %v3373_v58 }
0x12a3   : > { %v3398_v45 = vor.u32 1.1754944e-38, %v3397_v42  ;;  %vm3396_vm8 = vcmp.eq.f32.partialorder %v3395_v53, 8.507059e+37 }
0x12a4   : > { %v4528_v25 = vpop.eup %4527  ;;  %v3440_v15 = vsel %vm442_vm0, %v6126_v12, 0.0  ;;  %v3375_v7 = vadd.f32 %v4524_v32, %v3374_v26 }
0x12a5   : > { %v4530_v60 = vpop.eup %4529  ;;  %v3355_v43 = vadd.f32 1.0, %v4528_v25  ;;  %3441 = vadd.xlane.f32.xlu0 %v3440_v15 }
0x12a6   : > { %v3387_v5 = vmul.f32 %v4530_v60, %v6106_v19  ;;  %v3379_v61 = vsel %vm3378_vm3, %v4524_v32, %v3375_v7  ;;  %vm3392_vm5 = vweird.f32 %v4530_v60  ;;  %v4532_v8 = vpop.eup %4531  ;;  %v4281_v7 = vld [vmem:[%s6261_s8 + $0x18] sm:$0xff] }
0x12a7   : > { %4533 = vrcp.f32 %v3355_v43  ;;  %v3384_v49 = vsel %vm3381_vm4, %v3383_v10, %v3379_v61  ;;  %vm3393_vm7 = vmor %vm3391_vm6, %vm3392_vm5  ;;  %v3430_v2 = vsub.f32 %v5750_v20, %v4532_v8  ;;  %v3412_v37 = vand.u32 2147483648, %v3355_v43  ;;  %3580 = vmatpush.bf16.msra.mxu0 %v4281_v7  ;;  %v4279_v10 = vld [vmem:[%s6261_s8 + $0x8] sm:$0xff]  ;;  %v4278_v61 = vld [vmem:[%s6261_s8] sm:$0xff] }
0x12a8   : > { %v3388_v54 = vsub.f32 1.0, %v3387_v5  ;;  %v3433_v51 = vmul.f32 %v3429_v40, %v3384_v49  ;;  %4535 = vtanh.f32 %v3423_v57  ;;  %v3410_v38 = vand.u32 2147483647, %v3355_v43 }
0x12a9   : > { %vm3406_vm10 = vweird.f32 %v3355_v43  ;;  %v3413_v19 = vor.u32 1.1754944e-38, %v3412_v37  ;;  %v4288_v37 = vld [vmem:[%s6262_s9 + $0x30] sm:$0xff] }
0x12aa   : > { %v6136_v34 = vadd.f32 %v4526_v13, %v3433_v51  ;;  %v3389_v44 = vmul.f32 %v4530_v60, %v3388_v54  ;;  %vm3411_vm13 = vcmp.eq.f32.partialorder %v3410_v38, 8.507059e+37 }
0x12ac   : > { %v3443_v22 = vsel %vm442_vm0, %v6136_v34, 0.0  ;;  %v3390_v52 = vadd.f32 %v4530_v60, %v3389_v44 }
0x12ad   : > { %v4534_v35 = vpop.eup %4533  ;;  %3444 = vadd.xlane.f32.xlu1 %v3443_v22 }
0x12ae   : > { %v3402_v3 = vmul.f32 %v4534_v35, %v3355_v43  ;;  %v3394_v0 = vsel %vm3393_vm7, %v4530_v60, %v3390_v52  ;;  %vm3407_vm9 = vweird.f32 %v4534_v35  ;;  %v4536_v55 = vpop.eup %4535  ;;  %v4280_v60 = vld [vmem:[%s6261_s8 + $0x10] sm:$0xff] }
0x12af   : > { %v3399_v6 = vsel %vm3396_vm8, %v3398_v45, %v3394_v0  ;;  %vm3408_vm12 = vmor %vm3406_vm10, %vm3407_vm9  ;;  %v3431_v20 = vsub.f32 %v5755_v28, %v4536_v55  ;;  %3581 = vmatpush.bf16.msra.mxu0 %v4280_v60  ;;  %v4289_v0 = vld [vmem:[%s6262_s9 + $0x38] sm:$0xff] }
0x12b0   : > { %v3403_v50 = vsub.f32 1.0, %v3402_v3  ;;  %v3434_v47 = vmul.f32 %v3430_v2, %v3399_v6  ;;  %3665 = vmatpush.bf16.msrb.mxu1 %v4289_v0 }
0x12b2   : > { %v6143_v23 = vadd.f32 %v4532_v8, %v3434_v47  ;;  %v3404_v31 = vmul.f32 %v4534_v35, %v3403_v50 }
0x12b3   : > { %3582 = vmatpush.bf16.msra.mxu0 %v4279_v10 }
0x12b4   : > { %v3446_v18 = vsel %vm442_vm0, %v6143_v23, 0.0  ;;  %v3405_v32 = vadd.f32 %v4534_v35, %v3404_v31  ;;  %3666 = vmatpush.bf16.msrb.mxu1 %v4288_v37 }
0x12b5   : > { %3447 = vadd.xlane.f32.xlu2 %v3446_v18 }
0x12b6   : > { %v3409_v11 = vsel %vm3408_vm12, %v4534_v35, %v3405_v32 }
0x12b7   : > { %v3414_v41 = vsel %vm3411_vm13, %v3413_v19, %v3409_v11  ;;  %3583 = vmatpush.bf16.msra.mxu0 %v4278_v61 }
0x12b8   : > { %v3435_v39 = vmul.f32 %v3431_v20, %v3414_v41  ;;  %v4577_v41 = vld [vmem:[%s6255_s2 + $0x4] ss:$0 sm:$0xff] }
0x12ba   : > { %v6148_v27 = vadd.f32 %v4536_v55, %v3435_v39 }
0x12bc   : > { %v3449_v4 = vsel %vm442_vm0, %v6148_v27, 0.0 }
0x12bd   : > { %3450 = vadd.xlane.f32.xlu0 %v3449_v4 }
0x1318   : > { %v3442_v16 = vpop.xlane.xlu0 %3441 }
0x1319   : > { %v3452_v30 = vmul.f32 %v3442_v16, %v4686_v14 }
0x131b   : > { %v6154_v1 = vsub.f32 %v6126_v12, %v3452_v30 }
0x131d   : > { %v3460_v33 = vmul.f32 %v6154_v1, %v6154_v1 }
0x131f   : > { %v3464_v58 = vsel %vm442_vm0, %v3460_v33, 0.0 }
0x1320   : > { %v3445_v28 = vpop.xlane.xlu1 %3444  ;;  %3465 = vadd.xlane.f32.xlu1 %v3464_v58 }
0x1321   : > { %v3453_v62 = vmul.f32 %v3445_v28, %v4686_v14  ;;  %v4578_v28 = vld [vmem:[%s6255_s2 + $0x5] ss:$0 sm:$0xff] }
0x1323   : > { %v6161_v36 = vsub.f32 %v6136_v34, %v3453_v62 }
0x1325   : > { %v3461_v56 = vmul.f32 %v6161_v36, %v6161_v36 }
0x1327   : > { %v3467_v13 = vsel %vm442_vm0, %v3461_v56, 0.0 }
0x1328   : > { %3468 = vadd.xlane.f32.xlu2 %v3467_v13  ;;  %v3448_v48 = vpop.xlane.xlu2 %3447 }
0x1329   : > { %v3454_v46 = vmul.f32 %v3448_v48, %v4686_v14 }
0x132b   : > { %v6168_v21 = vsub.f32 %v6143_v23, %v3454_v46 }
0x132d   : > { %v3462_v63 = vmul.f32 %v6168_v21, %v6168_v21 }
0x132f   : > { %v3470_v26 = vsel %vm442_vm0, %v3462_v63, 0.0 }
0x1330   : > { %v3451_v9 = vpop.xlane.xlu0 %3450  ;;  %3471 = vadd.xlane.f32.xlu0 %v3470_v26 }
0x1331   : > { %v3455_v25 = vmul.f32 %v3451_v9, %v4686_v14 }
0x1333   : > { %v6175_v29 = vsub.f32 %v6148_v27, %v3455_v25 }
0x1335   : > { %v3463_v17 = vmul.f32 %v6175_v29, %v6175_v29 }
0x1337   : > { %v3473_v15 = vsel %vm442_vm0, %v3463_v17, 0.0 }
0x1338   : > { %3474 = vadd.xlane.f32.xlu1 %v3473_v15 }
0x1393   : > { %v3466_v43 = vpop.xlane.xlu1 %3465 }
0x1394   : > { %v3476_v59 = vmul.f32 %v3466_v43, %v4686_v14 }
0x1396   : > { %v3480_v5 = vadd.f32 1e-05, %v3476_v59 }
0x1398   : > { %4537 = vrsqrt.f32 %v3480_v5  ;;  %vm3490_vm15 = vweird.f32 %v3480_v5 }
0x139b   : > { %v3469_v40 = vpop.xlane.xlu2 %3468 }
0x139c   : > { %v3477_v24 = vmul.f32 %v3469_v40, %v4686_v14  ;;  %v4284_v40 = vld [vmem:[%s6262_s9 + $0x10] sm:$0xff] }
0x139e   : > { %v4538_v49 = vpop.eup %4537  ;;  %v3481_v54 = vadd.f32 1e-05, %v3477_v24 }
0x139f   : > { %v3485_v51 = vmul.f32 %v4538_v49, %v3480_v5  ;;  %vm3491_vm14 = vweird.f32 %v4538_v49 }
0x13a0   : > { %4539 = vrsqrt.f32 %v3481_v54  ;;  %vm3492_vm1 = vmor %vm3490_vm15, %vm3491_vm14  ;;  %vm3500_vm2 = vweird.f32 %v3481_v54 }
0x13a1   : > { %v3486_v57 = vmul.f32 %v4538_v49, %v3485_v51 }
0x13a3   : > { %v3487_v42 = vmul.f32 0.5, %v3486_v57  ;;  %v3472_v44 = vpop.xlane.xlu0 %3471 }
0x13a4   : > { %v3478_v53 = vmul.f32 %v3472_v44, %v4686_v14 }
0x13a5   : > { %v3488_v8 = vsub.f32 1.5, %v3487_v42 }
0x13a6   : > { %v4540_v22 = vpop.eup %4539  ;;  %v3482_v52 = vadd.f32 1e-05, %v3478_v53 }
0x13a7   : > { %v3489_v35 = vmul.f32 %v4538_v49, %v3488_v8  ;;  %v3495_v45 = vmul.f32 %v4540_v22, %v3481_v54  ;;  %vm3501_vm11 = vweird.f32 %v4540_v22 }
0x13a8   : > { %4541 = vrsqrt.f32 %v3482_v52  ;;  %vm3502_vm3 = vmor %vm3500_vm2, %vm3501_vm11  ;;  %vm3510_vm5 = vweird.f32 %v3482_v52 }
0x13a9   : > { %v3496_v3 = vmul.f32 %v4540_v22, %v3495_v45  ;;  %v3493_v2 = vsel %vm3492_vm1, %v4538_v49, %v3489_v35  ;;  %v4579_v49 = vld [vmem:[%s6255_s2 + $0x6] ss:$0 sm:$0xff] }
0x13aa   : > { %v3524_v55 = vmul.f32 %v3493_v2, %v6154_v1  ;;  %v4286_v1 = vld [vmem:[%s6262_s9 + $0x20] sm:$0xff] }
0x13ab   : > { %v3497_v6 = vmul.f32 0.5, %v3496_v3  ;;  %v3475_v50 = vpop.xlane.xlu1 %3474 }
0x13ac   : > { %v3479_v47 = vmul.f32 %v3475_v50, %v4686_v14  ;;  %v4287_v14 = vld [vmem:[%s6262_s9 + $0x28] sm:$0xff]  ;;  %v3528_v39 = vmul.f32 %v4577_v41, %v3524_v55 }
0x13ad   : > { %v3498_v31 = vsub.f32 1.5, %v3497_v6  ;;  %3667 = vmatpush.bf16.msrb.mxu1 %v4287_v14  ;;  %v4580_v6 = vld [vmem:[%s6255_s2 + $0x7] ss:$0 sm:$0xff] }
0x13ae   : > { %v4542_v38 = vpop.eup %4541  ;;  %v3483_v18 = vadd.f32 1e-05, %v3479_v47  ;;  %v3532_v62 = vadd.f32 %v4578_v28, %v3528_v39 }
0x13af   : > { %v3499_v32 = vmul.f32 %v4540_v22, %v3498_v31  ;;  %v3505_v19 = vmul.f32 %v4542_v38, %v3482_v52  ;;  %vm3511_vm4 = vweird.f32 %v4542_v38 }
0x13b0   : > { %4543 = vrsqrt.f32 %v3483_v18  ;;  %vm3512_vm6 = vmor %vm3510_vm5, %vm3511_vm4  ;;  %vm3520_vm8 = vweird.f32 %v3483_v18 }
0x13b1   : > { %v3503_v11 = vsel %vm3502_vm3, %v4540_v22, %v3499_v32  ;;  %v3506_v20 = vmul.f32 %v4542_v38, %v3505_v19  ;;  %3668 = vmatpush.bf16.msrb.mxu1 %v4286_v1 }
0x13b2   : > { %v3525_v4 = vmul.f32 %v3503_v11, %v6161_v36  ;;  %v4285_v36 = vld [vmem:[%s6262_s9 + $0x18] sm:$0xff] }
0x13b3   : > { %v3507_v16 = vmul.f32 0.5, %v3506_v20 }
0x13b4   : > { %v3529_v30 = vmul.f32 %v4577_v41, %v3525_v4 }
0x13b5   : > { %v3508_v33 = vsub.f32 1.5, %v3507_v16  ;;  %3669 = vmatpush.bf16.msrb.mxu1 %v4285_v36 }
0x13b6   : > { %v4544_v58 = vpop.eup %4543  ;;  %v3533_v56 = vadd.f32 %v4578_v28, %v3529_v30 }
0x13b7   : > { %v3509_v13 = vmul.f32 %v4542_v38, %v3508_v33  ;;  %v3515_v48 = vmul.f32 %v4544_v58, %v3483_v18  ;;  %vm3521_vm7 = vweird.f32 %v4544_v58 }
0x13b8   : > { %v3536_v46 = vpack.c.bf16 %v3533_v56, %v3532_v62  ;;  %vm3522_vm9 = vmor %vm3520_vm8, %vm3521_vm7 }
0x13b9   : > { %v3516_v63 = vmul.f32 %v4544_v58, %v3515_v48  ;;  %v3513_v26 = vsel %vm3512_vm6, %v4542_v38, %v3509_v13  ;;  %3670 = vmatpush.bf16.msrb.mxu1 %v4284_v40 }
0x13ba   : > { %4174 = vmatmul.msk.bf16.vlgmr.msra.gmra.mxu0 %vm442_vm0, %v3536_v46  ;;  %v3526_v17 = vmul.f32 %v3513_v26, %v6168_v21  ;;  %v4283_v21 = vld [vmem:[%s6262_s9 + $0x8] sm:$0xff] }
0x13bb   : > { %v3517_v9 = vmul.f32 0.5, %v3516_v63 }
0x13bc   : > { %v3530_v43 = vmul.f32 %v4577_v41, %v3526_v17 }
0x13bd   : > { %v3518_v25 = vsub.f32 1.5, %v3517_v9  ;;  %3671 = vmatpush.bf16.msrb.mxu1 %v4283_v21 }
0x13be   : > { %v3534_v10 = vadd.f32 %v4578_v28, %v3530_v43 }
0x13bf   : > { %v3519_v15 = vmul.f32 %v4544_v58, %v3518_v25 }
0x13c1   : > { %v3523_v7 = vsel %vm3522_vm9, %v4544_v58, %v3519_v15 }
0x13c2   : > { %v3527_v60 = vmul.f32 %v3523_v7, %v6175_v29  ;;  %v4282_v29 = vld [vmem:[%s6262_s9] sm:$0xff] }
0x13c3   : > { %3672 = vmatpush.bf16.msrb.mxu1 %v4282_v29 }
0x13c4   : > { %v3531_v59 = vmul.f32 %v4577_v41, %v3527_v60 }
0x13c6   : > { %v3535_v5 = vadd.f32 %v4578_v28, %v3531_v59 }
0x13c8   : > { %v3537_v61 = vpack.c.bf16 %v3535_v5, %v3534_v10 }
0x13ca   : > { %4175 = vmatmul.msk.bf16.gmra.mxu0 %vm442_vm0, %v3537_v61 }
0x1437   : > { %v3585_v24 = vpop.f32.mrf.mxu0 }
0x1438   : > { %v3586_v54 = vadd.f32 %v4579_v49, %v3585_v24 }
0x143a   : > { %v3595_v42 = vmax.f32 %v3586_v54, 0.0 }
0x143f   : > { %v3587_v51 = vpop.f32.mrf.mxu0 }
0x1440   : > { %v3588_v57 = vadd.f32 %v4579_v49, %v3587_v51 }
0x1442   : > { %v3596_v44 = vmax.f32 %v3588_v57, 0.0 }
0x1444   : > { %v3599_v53 = vpack.c.bf16 %v3596_v44, %v3595_v42 }
0x1446   : > { %3673 = vmatmul.bf16.vlgmr.msrb.gmra.mxu1 %v3599_v53 }
0x1447   : > { %v3590_v8 = vpop.f32.mrf.mxu0 }
0x1448   : > { %v3591_v22 = vadd.f32 %v4579_v49, %v3590_v8 }
0x144a   : > { %v3597_v45 = vmax.f32 %v3591_v22, 0.0 }
0x144f   : > { %v3592_v52 = vpop.f32.mrf.mxu0 }
0x1450   : > { %v3593_v35 = vadd.f32 %v4579_v49, %v3592_v52 }
0x1452   : > { %v3598_v3 = vmax.f32 %v3593_v35, 0.0 }
0x1454   : > { %v3600_v0 = vpack.c.bf16 %v3598_v3, %v3597_v45 }
0x1456   : > { %3678 = vmatmul.bf16.gmra.mxu1 %v3600_v0 }
0x14c3   : > { %v3674_v2 = vpop.f32.mrf.mxu1 }
0x14c4   : > { %v3675_v50 = vadd.f32 %v4580_v6, %v3674_v2 }
0x14c6   : > { %v3684_v47 = vadd.f32 %v3675_v50, %v6126_v12 }
0x14c8   : > { %3688 = vst.msk [vmem:[%s418_s24] sm:$0xff] %vm442_vm0, %v3684_v47 }
0x14cb   : > { %v3676_v37 = vpop.f32.mrf.mxu1 }
0x14cc   : > { %v3677_v31 = vadd.f32 %v4580_v6, %v3676_v37 }
0x14ce   : > { %v3685_v38 = vadd.f32 %v3677_v31, %v6136_v34 }
0x14d0   : > { %3689 = vst.msk [vmem:[%s418_s24 + $0x8] sm:$0xff] %vm442_vm0, %v3685_v38 }
0x14d3   : > { %v3679_v55 = vpop.f32.mrf.mxu1 }
0x14d4   : > { %v3680_v18 = vadd.f32 %v4580_v6, %v3679_v55 }
0x14d6   : > { %v3686_v32 = vadd.f32 %v3680_v18, %v6143_v23 }
0x14d8   : > { %3690 = vst.msk [vmem:[%s418_s24 + $0x10] sm:$0xff] %vm442_vm0, %v3686_v32 }
0x14db   : > { %v3681_v19 = vpop.f32.mrf.mxu1 }
0x14dc   : > { %v3682_v14 = vadd.f32 %v4580_v6, %v3681_v19 }
0x14de   : > { %v3687_v11 = vadd.f32 %v3682_v14, %v6148_v27 }
0x14e0   : > { %3691 = vst.msk [vmem:[%s418_s24 + $0x18] sm:$0xff] %vm442_vm0, %v3687_v11 }
0x14e1 PF: > { %s22_s17 = sadd.s32 1, %s4587_s17  }
0x14e2   : > { %p19_p4 = scmp.ge.s32.totalorder %s22_s17, 4  }
0x14e4   :  { %21 = sbr.rel (!%p19_p4) target bundleno = 1 (0x1), region = 106 }

</bundles_post_ra>
